<compile_context>
chip_gen: v7x
topology: tpu7x:2x2x1
jax: 0.10.0
libtpu: 0.0.40
codegen_flags: <defaults>
</compile_context>

<pallas_src>
import functools

import jax
import jax.numpy as jnp
from jax.experimental import pallas as pl
from jax.experimental.pallas import tpu as pltpu

EPS = 1e-5
VMEM_LIMIT = 32 * 1024 * 1024   # explicit scoped-VMEM budget (safe on v5e/v6e/v7x)
TM_TARGET = 512                 # rows per M-tile (multiple of 8)


def _round_up(x, m):
    return ((x + m - 1) // m) * m


def _tiles(m):
    tm = min(TM_TARGET, _round_up(m, 8))
    mp = _round_up(m, tm)
    return tm, mp


def _pad_rows(x, mp):
    m = x.shape[0]
    if mp > m:
        x = jnp.pad(x, ((0, mp - m), (0, 0)))
    return x


def _compiler_params():
    return pltpu.CompilerParams(dimension_semantics=("parallel",),
                                vmem_limit_bytes=VMEM_LIMIT)


# ---------------- phase-1 kernel: matmul + per-tile BN partial stats ------------
def _mm_stats_kernel(x_ref, w_ref, h_ref, s_ref, q_ref):
    acc = jnp.dot(x_ref[...], w_ref[...], preferred_element_type=jnp.float32)
    h_ref[...] = acc
    s = jnp.sum(acc, axis=0, keepdims=True)
    q = jnp.sum(acc * acc, axis=0, keepdims=True)
    # 8-sublane replicate so the per-tile stats block satisfies the (8,128) rule.
    s_ref[...] = jnp.broadcast_to(s[None], s_ref.shape)
    q_ref[...] = jnp.broadcast_to(q[None], q_ref.shape)


def matmul_stats(x, w, tm):
    mp, k = x.shape
    c = w.shape[1]
    g = mp // tm
    return pl.pallas_call(
        _mm_stats_kernel,
        out_shape=(jax.ShapeDtypeStruct((mp, c), jnp.float32),
                   jax.ShapeDtypeStruct((g, 8, c), jnp.float32),
                   jax.ShapeDtypeStruct((g, 8, c), jnp.float32)),
        grid=(g,),
        in_specs=[pl.BlockSpec((tm, k), lambda i: (i, 0)),
                  pl.BlockSpec((k, c), lambda i: (0, 0))],
        out_specs=(pl.BlockSpec((tm, c), lambda i: (i, 0)),
                   pl.BlockSpec((1, 8, c), lambda i: (i, 0, 0)),
                   pl.BlockSpec((1, 8, c), lambda i: (i, 0, 0))),
        compiler_params=_compiler_params(),
    )(x, w)


# ---------------- phase-2 kernel: y = relu(h * a + b) ---------------------------
def _norm_relu_kernel(h_ref, a_ref, b_ref, o_ref):
    y = jnp.maximum(h_ref[...] * a_ref[...] + b_ref[...], 0.0)
    o_ref[...] = y.astype(o_ref.dtype)


def norm_relu(h, a, b, tm, out_dtype):
    mp, c = h.shape
    g = mp // tm
    return pl.pallas_call(
        _norm_relu_kernel,
        out_shape=jax.ShapeDtypeStruct((mp, c), out_dtype),
        grid=(g,),
        in_specs=[pl.BlockSpec((tm, c), lambda i: (i, 0)),
                  pl.BlockSpec((1, c), lambda i: (0, 0)),
                  pl.BlockSpec((1, c), lambda i: (0, 0))],
        out_specs=pl.BlockSpec((tm, c), lambda i: (i, 0)),
        compiler_params=_compiler_params(),
    )(h, a, b)


# -------- fused kernel: relu(h*a+b) -> matmul -> per-tile partial stats ---------
def _norm_mm_stats_kernel(h_ref, a_ref, b_ref, w_ref, o_ref, s_ref, q_ref,
                          *, tm, m_true, need_mask):
    y = jnp.maximum(h_ref[...] * a_ref[...] + b_ref[...], 0.0)
    if need_mask:
        # padded rows would become relu(b) != 0 and pollute the stage-3 stats
        rows = pl.program_id(0) * tm + jax.lax.broadcasted_iota(jnp.int32, y.shape, 0)
        y = jnp.where(rows < m_true, y, 0.0)
    acc = jnp.dot(y.astype(jnp.bfloat16), w_ref[...],
                  preferred_element_type=jnp.float32)
    o_ref[...] = acc
    s = jnp.sum(acc, axis=0, keepdims=True)
    q = jnp.sum(acc * acc, axis=0, keepdims=True)
    s_ref[...] = jnp.broadcast_to(s[None], s_ref.shape)
    q_ref[...] = jnp.broadcast_to(q[None], q_ref.shape)


def norm_relu_matmul_stats(h, a, b, w, tm, m_true):
    mp, k = h.shape
    c = w.shape[1]
    g = mp // tm
    kernel = functools.partial(_norm_mm_stats_kernel, tm=tm, m_true=m_true,
                               need_mask=(mp != m_true))
    return pl.pallas_call(
        kernel,
        out_shape=(jax.ShapeDtypeStruct((mp, c), jnp.float32),
                   jax.ShapeDtypeStruct((g, 8, c), jnp.float32),
                   jax.ShapeDtypeStruct((g, 8, c), jnp.float32)),
        grid=(g,),
        in_specs=[pl.BlockSpec((tm, k), lambda i: (i, 0)),
                  pl.BlockSpec((1, k), lambda i: (0, 0)),
                  pl.BlockSpec((1, k), lambda i: (0, 0)),
                  pl.BlockSpec((k, c), lambda i: (0, 0))],
        out_specs=(pl.BlockSpec((tm, c), lambda i: (i, 0)),
                   pl.BlockSpec((1, 8, c), lambda i: (i, 0, 0)),
                   pl.BlockSpec((1, 8, c), lambda i: (i, 0, 0))),
        compiler_params=_compiler_params(),
    )(h, a, b, w)


# --------- turn per-tile partial sums into per-channel BN scale/shift -----------
def _bn_coeffs(psum, psumsq, count, gamma, beta, blocks):
    s = jnp.sum(psum[:, 0, :], axis=0)
    q = jnp.sum(psumsq[:, 0, :], axis=0)
    if blocks > 1:                        # fold parity column-blocks per channel
        s = s.reshape(blocks, -1).sum(axis=0)
        q = q.reshape(blocks, -1).sum(axis=0)
    mean = s / count
    var = q / count - mean * mean         # biased variance (BN training mode)
    a = gamma * jax.lax.rsqrt(var + EPS)
    b = beta - mean * a
    if blocks > 1:
        a = jnp.tile(a, blocks)
        b = jnp.tile(b, blocks)
    return a.reshape(1, -1), b.reshape(1, -1)


# --------------------------------------------------------------------------
# Parameter packing: logical (PyTorch-layout) weights -> kernel weights
# --------------------------------------------------------------------------
def pack_kernel_params(p):
    cmid = p["w1"].shape[1]
    # flipped HWIO taps of the ConvTranspose2d weight: wf[ky, kx] is (Cin, Cout)
    wf = jnp.flip(jnp.transpose(p["w2_pt"], (2, 3, 0, 1)), axis=(0, 1))
    z = jnp.zeros((cmid, cmid), jnp.float32)
    # 4-parity block weight.  X4 row blocks: [h1, h1(x+1), h1(y+1), h1(x+1,y+1)];
    # output column blocks: [EE, EO, OE, OO] (output row/col parity).
    w2big = jnp.concatenate([
        jnp.concatenate([wf[1, 1], wf[1, 0], wf[0, 1], wf[0, 0]], axis=1),
        jnp.concatenate([z,        wf[1, 2], z,        wf[0, 2]], axis=1),
        jnp.concatenate([z,        z,        wf[2, 1], wf[2, 0]], axis=1),
        jnp.concatenate([z,        z,        z,        wf[2, 2]], axis=1),
    ], axis=0)
    # block-diagonal stage-3 1x1 conv so it can run on the parity-packed layout
    w3blk = jnp.kron(jnp.eye(4, dtype=jnp.float32), p["w3"])
    # NOTE: conv/deconv biases are intentionally absent: a per-channel constant
    # added before training-mode BatchNorm is cancelled by the mean subtraction.
    return dict(
        w1=p["w1"].astype(jnp.bfloat16),
        w2=w2big.astype(jnp.bfloat16),
        w3=w3blk.astype(jnp.bfloat16),
        g1=p["g1"], be1=p["be1"],
        g2=p["g2"], be2=p["be2"],
        g3=p["g3"], be3=p["be3"],
    )


# --------------------------------------------------------------------------
# DecoderBlock forward (Pallas kernels + thin JAX layout glue)
# --------------------------------------------------------------------------
def decoder_block(x_nchw, kp):
    n, cin, h, w = x_nchw.shape
    cmid = kp["w1"].shape[1]
    cout = kp["g3"].shape[0]
    m1 = n * h * w
    tm, mp = _tiles(m1)

    # TODO(synk): fold this NCHW->NHWC transpose into the stage-1 input BlockSpec.
    x = jnp.transpose(x_nchw, (0, 2, 3, 1)).reshape(m1, cin).astype(jnp.bfloat16)
    x = _pad_rows(x, mp)

    # ---- stage 1: 1x1 conv, two-phase BN + ReLU -----------------------------
    h1raw, s1, q1 = matmul_stats(x, kp["w1"], tm)
    a1, b1 = _bn_coeffs(s1, q1, m1, kp["g1"], kp["be1"], blocks=1)
    h1 = norm_relu(h1raw, a1, b1, tm, jnp.bfloat16)[:m1].reshape(n, h, w, cmid)

    # ---- stage 2: ConvTranspose2d as a 4-parity (sub-pixel) matmul -----------
    hx = jnp.pad(h1[:, :, 1:, :], ((0, 0), (0, 0), (0, 1), (0, 0)))
    hy = jnp.pad(h1[:, 1:, :, :], ((0, 0), (0, 1), (0, 0), (0, 0)))
    hxy = jnp.pad(h1[:, 1:, 1:, :], ((0, 0), (0, 1), (0, 1), (0, 0)))
    x4 = jnp.concatenate([h1, hx, hy, hxy], axis=-1).reshape(m1, 4 * cmid)
    x4 = _pad_rows(x4, mp)
    h2raw, s2, q2 = matmul_stats(x4, kp["w2"], tm)
    a2, b2 = _bn_coeffs(s2, q2, 4 * m1, kp["g2"], kp["be2"], blocks=4)

    # ---- stage-2 normalize+ReLU fused with stage-3 1x1 conv ------------------
    h3raw, s3, q3 = norm_relu_matmul_stats(h2raw, a2, b2, kp["w3"], tm, m1)
    a3, b3 = _bn_coeffs(s3, q3, 4 * m1, kp["g3"], kp["be3"], blocks=4)
    y = norm_relu(h3raw, a3, b3, tm, jnp.float32)[:m1]       # (m1, 4*cout)

    # un-interleave the 4 parity planes -> NHWC -> NCHW
    y = y.reshape(n, h, w, 2, 2, cout)
    y = jnp.transpose(y, (0, 1, 3, 2, 4, 5)).reshape(n, 2 * h, 2 * w, cout)
    return jnp.transpose(y, (0, 3, 1, 2))


# --------------------------------------------------------------------------
# Deterministic logical parameters (shapes follow the module __init__)
# --------------------------------------------------------------------------
def init_params(key, in_channels, n_filters):
    cmid = in_channels // 4
    ks = jax.random.split(key, 12)
    return dict(
        w1=0.1 * jax.random.normal(ks[0], (in_channels, cmid), jnp.float32),
        b1=0.1 * jax.random.normal(ks[1], (cmid,), jnp.float32),
        w2_pt=0.1 * jax.random.normal(ks[2], (cmid, cmid, 3, 3), jnp.float32),
        b2=0.1 * jax.random.normal(ks[3], (cmid,), jnp.float32),
        w3=0.1 * jax.random.normal(ks[4], (cmid, n_filters), jnp.float32),
        b3=0.1 * jax.random.normal(ks[5], (n_filters,), jnp.float32),
        g1=1.0 + 0.1 * jax.random.normal(ks[6], (cmid,), jnp.float32),
        be1=0.1 * jax.random.normal(ks[7], (cmid,), jnp.float32),
        g2=1.0 + 0.1 * jax.random.normal(ks[8], (cmid,), jnp.float32),
        be2=0.1 * jax.random.normal(ks[9], (cmid,), jnp.float32),
        g3=1.0 + 0.1 * jax.random.normal(ks[10], (n_filters,), jnp.float32),
        be3=0.1 * jax.random.normal(ks[11], (n_filters,), jnp.float32),
    )


# --------------------------------------------------------------------------
# Pure-JAX f32 reference (faithful to the PyTorch forward, incl. biases)
# --------------------------------------------------------------------------
def _bn_train(h, g, b):
    mean = jnp.mean(h, axis=(0, 1, 2), keepdims=True)
    var = jnp.mean(jnp.square(h - mean), axis=(0, 1, 2), keepdims=True)
    return (h - mean) * (g / jnp.sqrt(var + EPS)) + b


def reference_forward(x_nchw, p):
    x = jnp.transpose(x_nchw, (0, 2, 3, 1)).astype(jnp.float32)
    h = jnp.einsum("nhwc,cd->nhwd", x, p["w1"]) + p["b1"]
    h = jax.nn.relu(_bn_train(h, p["g1"], p["be1"]))
    wf = jnp.flip(jnp.transpose(p["w2_pt"], (2, 3, 0, 1)), axis=(0, 1))
    h = jax.lax.conv_general_dilated(
        h, wf, window_strides=(1, 1), padding=((1, 2), (1, 2)),
        lhs_dilation=(2, 2),
        dimension_numbers=("NHWC", "HWIO", "NHWC")) + p["b2"]
    h = jax.nn.relu(_bn_train(h, p["g2"], p["be2"]))
    h = jnp.einsum("nhwc,cd->nhwd", h, p["w3"]) + p["b3"]
    h = jax.nn.relu(_bn_train(h, p["g3"], p["be3"]))
    return jnp.transpose(h, (0, 3, 1, 2))


if __name__ == "__main__":
    n, in_channels, sh, sw = 2, 64, 16, 16
    n_filters = 32

    key = jax.random.PRNGKey(0)
    k_x, k_p = jax.random.split(key)
    x = jax.random.normal(k_x, (n, in_channels, sh, sw), jnp.float32)   # NCHW
    params = init_params(k_p, in_channels, n_filters)
    kparams = pack_kernel_params(params)

    out = jax.jit(decoder_block)(x, kparams)
    out = jax.block_until_ready(out)
    assert out.shape == (n, n_filters, 2 * sh, 2 * sw), out.shape

    ref = reference_forward(x, params)
    max_err = float(jnp.max(jnp.abs(out - ref)))
    # bf16 MXU operands vs f32 reference -> loose-but-safe tolerance
    assert jnp.allclose(out, ref, atol=5e-2, rtol=5e-2), max_err

    print("KERNEL_OK")
</pallas_src>

<mosaic_0001>
module attributes {stable_mosaic.version = 11 : i64} {
  func.func @_mm_stats_kernel(%arg0: i32, %arg1: memref<512x64xbf16, #tpu.memory_space<vmem>>, %arg2: memref<64x16xbf16, #tpu.memory_space<vmem>>, %arg3: memref<512x16xf32, #tpu.memory_space<vmem>>, %arg4: memref<1x8x16xf32, #tpu.memory_space<vmem>>, %arg5: memref<1x8x16xf32, #tpu.memory_space<vmem>>) attributes {dimension_semantics = [#tpu.dimension_semantics<parallel>], iteration_bounds = array<i64: 1>, scalar_prefetch = 0 : i64, scratch_operands = 0 : i64, tpu.core_type = #tpu.core_type<tc>, window_params = [{transform_indices = @transform_0, window_bounds = array<i64: 512, 64>}, {pipeline_mode = #tpu.pipeline_mode<synchronous>, transform_indices = @transform_1, window_bounds = array<i64: 64, 16>}, {transform_indices = @transform_2, window_bounds = array<i64: 512, 16>}, {transform_indices = @transform_3, window_bounds = array<i64: 1, 8, 16>}, {transform_indices = @transform_4, window_bounds = array<i64: 1, 8, 16>}]} {
    %c0 = arith.constant 0 : index
    %c0_0 = arith.constant 0 : index
    %0 = vector.load %arg1[%c0, %c0_0] : memref<512x64xbf16, #tpu.memory_space<vmem>>, vector<512x64xbf16>
    %c0_1 = arith.constant 0 : index
    %c0_2 = arith.constant 0 : index
    %1 = vector.load %arg2[%c0_1, %c0_2] : memref<64x16xbf16, #tpu.memory_space<vmem>>, vector<64x16xbf16>
    %cst = arith.constant dense<0.000000e+00> : vector<512x16xf32>
    %2 = tpu.matmul %0, %1, %cst {dimension_numbers = #tpu.dot_dimension_numbers<[1], [0], [0], [1], [0, 0, 1, 1], [], []>} : vector<512x64xbf16>, vector<64x16xbf16>, vector<512x16xf32> -> vector<512x16xf32>
    %c0_3 = arith.constant 0 : index
    %c0_4 = arith.constant 0 : index
    %3 = vector.load %arg3[%c0_3, %c0_4] : memref<512x16xf32, #tpu.memory_space<vmem>>, vector<512x16xf32>
    tpu.vector_store %arg3[%c0_3, %c0_4], %2 {strides = array<i32>} : memref<512x16xf32, #tpu.memory_space<vmem>>, vector<512x16xf32>,
    %cst_5 = arith.constant dense<0.000000e+00> : vector<16xf32>
    %4 = vector.multi_reduction <add>, %2, %cst_5 [0] : vector<512x16xf32> to vector<16xf32>
    %5 = vector.shape_cast %4 : vector<16xf32> to vector<1x16xf32>
    %6 = arith.mulf %2, %2 : vector<512x16xf32>
    %cst_6 = arith.constant dense<0.000000e+00> : vector<16xf32>
    %7 = vector.multi_reduction <add>, %6, %cst_6 [0] : vector<512x16xf32> to vector<16xf32>
    %8 = vector.shape_cast %7 : vector<16xf32> to vector<1x16xf32>
    %9 = vector.shape_cast %5 : vector<1x16xf32> to vector<1x1x16xf32>
    %10 = vector.shape_cast %9 : vector<1x1x16xf32> to vector<1x1x16xf32>
    %11 = vector.broadcast %10 : vector<1x1x16xf32> to vector<1x8x16xf32>
    %c0_7 = arith.constant 0 : index
    %c0_8 = arith.constant 0 : index
    %c0_9 = arith.constant 0 : index
    %12 = vector.load %arg4[%c0_7, %c0_8, %c0_9] : memref<1x8x16xf32, #tpu.memory_space<vmem>>, vector<1x8x16xf32>
    tpu.vector_store %arg4[%c0_7, %c0_8, %c0_9], %11 {strides = array<i32>} : memref<1x8x16xf32, #tpu.memory_space<vmem>>, vector<1x8x16xf32>,
    %13 = vector.shape_cast %8 : vector<1x16xf32> to vector<1x1x16xf32>
    %14 = vector.shape_cast %13 : vector<1x1x16xf32> to vector<1x1x16xf32>
    %15 = vector.broadcast %14 : vector<1x1x16xf32> to vector<1x8x16xf32>
    %c0_10 = arith.constant 0 : index
    %c0_11 = arith.constant 0 : index
    %c0_12 = arith.constant 0 : index
    %16 = vector.load %arg5[%c0_10, %c0_11, %c0_12] : memref<1x8x16xf32, #tpu.memory_space<vmem>>, vector<1x8x16xf32>
    tpu.vector_store %arg5[%c0_10, %c0_11, %c0_12], %15 {strides = array<i32>} : memref<1x8x16xf32, #tpu.memory_space<vmem>>, vector<1x8x16xf32>,
    return
  }
  func.func @transform_0(%arg0: i32) -> (i32, i32) {
    %c0_i32 = arith.constant 0 : i32
    %c0_i32_0 = arith.constant 0 : i32
    return %arg0, %c0_i32 : i32, i32
  }
  func.func @transform_1(%arg0: i32) -> (i32, i32) {
    %c0_i32 = arith.constant 0 : i32
    %c0_i32_0 = arith.constant 0 : i32
    %c0_i32_1 = arith.constant 0 : i32
    return %c0_i32, %c0_i32_0 : i32, i32
  }
  func.func @transform_2(%arg0: i32) -> (i32, i32) {
    %c0_i32 = arith.constant 0 : i32
    %c0_i32_0 = arith.constant 0 : i32
    return %arg0, %c0_i32 : i32, i32
  }
  func.func @transform_3(%arg0: i32) -> (i32, i32, i32) {
    %c0_i32 = arith.constant 0 : i32
    %c0_i32_0 = arith.constant 0 : i32
    %c0_i32_1 = arith.constant 0 : i32
    return %arg0, %c0_i32, %c0_i32_0 : i32, i32, i32
  }
  func.func @transform_4(%arg0: i32) -> (i32, i32, i32) {
    %c0_i32 = arith.constant 0 : i32
    %c0_i32_0 = arith.constant 0 : i32
    %c0_i32_1 = arith.constant 0 : i32
    return %arg0, %c0_i32, %c0_i32_0 : i32, i32, i32
  }
}

module attributes {stable_mosaic.version = 11 : i64} {
  func.func @_norm_relu_kernel(%arg0: i32, %arg1: memref<512x16xf32, #tpu.memory_space<vmem>>, %arg2: memref<1x16xf32, #tpu.memory_space<vmem>>, %arg3: memref<1x16xf32, #tpu.memory_space<vmem>>, %arg4: memref<512x16xbf16, #tpu.memory_space<vmem>>) attributes {dimension_semantics = [#tpu.dimension_semantics<parallel>], iteration_bounds = array<i64: 1>, scalar_prefetch = 0 : i64, scratch_operands = 0 : i64, tpu.core_type = #tpu.core_type<tc>, window_params = [{transform_indices = @transform_0, window_bounds = array<i64: 512, 16>}, {pipeline_mode = #tpu.pipeline_mode<synchronous>, transform_indices = @transform_1, window_bounds = array<i64: 1, 16>}, {pipeline_mode = #tpu.pipeline_mode<synchronous>, transform_indices = @transform_2, window_bounds = array<i64: 1, 16>}, {transform_indices = @transform_3, window_bounds = array<i64: 512, 16>}]} {
    %c0 = arith.constant 0 : index
    %c0_0 = arith.constant 0 : index
    %0 = vector.load %arg1[%c0, %c0_0] : memref<512x16xf32, #tpu.memory_space<vmem>>, vector<512x16xf32>
    %c0_1 = arith.constant 0 : index
    %c0_2 = arith.constant 0 : index
    %1 = vector.load %arg2[%c0_1, %c0_2] : memref<1x16xf32, #tpu.memory_space<vmem>>, vector<1x16xf32>
    %2 = vector.broadcast %1 : vector<1x16xf32> to vector<512x16xf32>
    %3 = arith.mulf %0, %2 : vector<512x16xf32>
    %c0_3 = arith.constant 0 : index
    %c0_4 = arith.constant 0 : index
    %4 = vector.load %arg3[%c0_3, %c0_4] : memref<1x16xf32, #tpu.memory_space<vmem>>, vector<1x16xf32>
    %5 = vector.broadcast %4 : vector<1x16xf32> to vector<512x16xf32>
    %6 = arith.addf %3, %5 : vector<512x16xf32>
    %cst = arith.constant 0.000000e+00 : f32
    %7 = vector.broadcast %cst : f32 to vector<512x16xf32>
    %8 = arith.maximumf %6, %7 : vector<512x16xf32>
    %9 = arith.truncf %8 : vector<512x16xf32> to vector<512x16xbf16>
    %c0_5 = arith.constant 0 : index
    %c0_6 = arith.constant 0 : index
    %10 = vector.load %arg4[%c0_5, %c0_6] : memref<512x16xbf16, #tpu.memory_space<vmem>>, vector<512x16xbf16>
    tpu.vector_store %arg4[%c0_5, %c0_6], %9 {strides = array<i32>} : memref<512x16xbf16, #tpu.memory_space<vmem>>, vector<512x16xbf16>,
    return
  }
  func.func @transform_0(%arg0: i32) -> (i32, i32) {
    %c0_i32 = arith.constant 0 : i32
    %c0_i32_0 = arith.constant 0 : i32
    return %arg0, %c0_i32 : i32, i32
  }
  func.func @transform_1(%arg0: i32) -> (i32, i32) {
    %c0_i32 = arith.constant 0 : i32
    %c0_i32_0 = arith.constant 0 : i32
    %c0_i32_1 = arith.constant 0 : i32
    return %c0_i32, %c0_i32_0 : i32, i32
  }
  func.func @transform_2(%arg0: i32) -> (i32, i32) {
    %c0_i32 = arith.constant 0 : i32
    %c0_i32_0 = arith.constant 0 : i32
    %c0_i32_1 = arith.constant 0 : i32
    return %c0_i32, %c0_i32_0 : i32, i32
  }
  func.func @transform_3(%arg0: i32) -> (i32, i32) {
    %c0_i32 = arith.constant 0 : i32
    %c0_i32_0 = arith.constant 0 : i32
    return %arg0, %c0_i32 : i32, i32
  }
}

module attributes {stable_mosaic.version = 11 : i64} {
  func.func @_mm_stats_kernel(%arg0: i32, %arg1: memref<512x64xbf16, #tpu.memory_space<vmem>>, %arg2: memref<64x64xbf16, #tpu.memory_space<vmem>>, %arg3: memref<512x64xf32, #tpu.memory_space<vmem>>, %arg4: memref<1x8x64xf32, #tpu.memory_space<vmem>>, %arg5: memref<1x8x64xf32, #tpu.memory_space<vmem>>) attributes {dimension_semantics = [#tpu.dimension_semantics<parallel>], iteration_bounds = array<i64: 1>, scalar_prefetch = 0 : i64, scratch_operands = 0 : i64, tpu.core_type = #tpu.core_type<tc>, window_params = [{transform_indices = @transform_0, window_bounds = array<i64: 512, 64>}, {pipeline_mode = #tpu.pipeline_mode<synchronous>, transform_indices = @transform_1, window_bounds = array<i64: 64, 64>}, {transform_indices = @transform_2, window_bounds = array<i64: 512, 64>}, {transform_indices = @transform_3, window_bounds = array<i64: 1, 8, 64>}, {transform_indices = @transform_4, window_bounds = array<i64: 1, 8, 64>}]} {
    %c0 = arith.constant 0 : index
    %c0_0 = arith.constant 0 : index
    %0 = vector.load %arg1[%c0, %c0_0] : memref<512x64xbf16, #tpu.memory_space<vmem>>, vector<512x64xbf16>
    %c0_1 = arith.constant 0 : index
    %c0_2 = arith.constant 0 : index
    %1 = vector.load %arg2[%c0_1, %c0_2] : memref<64x64xbf16, #tpu.memory_space<vmem>>, vector<64x64xbf16>
    %cst = arith.constant dense<0.000000e+00> : vector<512x64xf32>
    %2 = tpu.matmul %0, %1, %cst {dimension_numbers = #tpu.dot_dimension_numbers<[1], [0], [0], [1], [0, 0, 1, 1], [], []>} : vector<512x64xbf16>, vector<64x64xbf16>, vector<512x64xf32> -> vector<512x64xf32>
    %c0_3 = arith.constant 0 : index
    %c0_4 = arith.constant 0 : index
    %3 = vector.load %arg3[%c0_3, %c0_4] : memref<512x64xf32, #tpu.memory_space<vmem>>, vector<512x64xf32>
    tpu.vector_store %arg3[%c0_3, %c0_4], %2 {strides = array<i32>} : memref<512x64xf32, #tpu.memory_space<vmem>>, vector<512x64xf32>,
    %cst_5 = arith.constant dense<0.000000e+00> : vector<64xf32>
    %4 = vector.multi_reduction <add>, %2, %cst_5 [0] : vector<512x64xf32> to vector<64xf32>
    %5 = vector.shape_cast %4 : vector<64xf32> to vector<1x64xf32>
    %6 = arith.mulf %2, %2 : vector<512x64xf32>
    %cst_6 = arith.constant dense<0.000000e+00> : vector<64xf32>
    %7 = vector.multi_reduction <add>, %6, %cst_6 [0] : vector<512x64xf32> to vector<64xf32>
    %8 = vector.shape_cast %7 : vector<64xf32> to vector<1x64xf32>
    %9 = vector.shape_cast %5 : vector<1x64xf32> to vector<1x1x64xf32>
    %10 = vector.shape_cast %9 : vector<1x1x64xf32> to vector<1x1x64xf32>
    %11 = vector.broadcast %10 : vector<1x1x64xf32> to vector<1x8x64xf32>
    %c0_7 = arith.constant 0 : index
    %c0_8 = arith.constant 0 : index
    %c0_9 = arith.constant 0 : index
    %12 = vector.load %arg4[%c0_7, %c0_8, %c0_9] : memref<1x8x64xf32, #tpu.memory_space<vmem>>, vector<1x8x64xf32>
    tpu.vector_store %arg4[%c0_7, %c0_8, %c0_9], %11 {strides = array<i32>} : memref<1x8x64xf32, #tpu.memory_space<vmem>>, vector<1x8x64xf32>,
    %13 = vector.shape_cast %8 : vector<1x64xf32> to vector<1x1x64xf32>
    %14 = vector.shape_cast %13 : vector<1x1x64xf32> to vector<1x1x64xf32>
    %15 = vector.broadcast %14 : vector<1x1x64xf32> to vector<1x8x64xf32>
    %c0_10 = arith.constant 0 : index
    %c0_11 = arith.constant 0 : index
    %c0_12 = arith.constant 0 : index
    %16 = vector.load %arg5[%c0_10, %c0_11, %c0_12] : memref<1x8x64xf32, #tpu.memory_space<vmem>>, vector<1x8x64xf32>
    tpu.vector_store %arg5[%c0_10, %c0_11, %c0_12], %15 {strides = array<i32>} : memref<1x8x64xf32, #tpu.memory_space<vmem>>, vector<1x8x64xf32>,
    return
  }
  func.func @transform_0(%arg0: i32) -> (i32, i32) {
    %c0_i32 = arith.constant 0 : i32
    %c0_i32_0 = arith.constant 0 : i32
    return %arg0, %c0_i32 : i32, i32
  }
  func.func @transform_1(%arg0: i32) -> (i32, i32) {
    %c0_i32 = arith.constant 0 : i32
    %c0_i32_0 = arith.constant 0 : i32
    %c0_i32_1 = arith.constant 0 : i32
    return %c0_i32, %c0_i32_0 : i32, i32
  }
  func.func @transform_2(%arg0: i32) -> (i32, i32) {
    %c0_i32 = arith.constant 0 : i32
    %c0_i32_0 = arith.constant 0 : i32
    return %arg0, %c0_i32 : i32, i32
  }
  func.func @transform_3(%arg0: i32) -> (i32, i32, i32) {
    %c0_i32 = arith.constant 0 : i32
    %c0_i32_0 = arith.constant 0 : i32
    %c0_i32_1 = arith.constant 0 : i32
    return %arg0, %c0_i32, %c0_i32_0 : i32, i32, i32
  }
  func.func @transform_4(%arg0: i32) -> (i32, i32, i32) {
    %c0_i32 = arith.constant 0 : i32
    %c0_i32_0 = arith.constant 0 : i32
    %c0_i32_1 = arith.constant 0 : i32
    return %arg0, %c0_i32, %c0_i32_0 : i32, i32, i32
  }
}

module attributes {stable_mosaic.version = 11 : i64} {
  func.func @_norm_mm_stats_kernel(%arg0: i32, %arg1: memref<512x64xf32, #tpu.memory_space<vmem>>, %arg2: memref<1x64xf32, #tpu.memory_space<vmem>>, %arg3: memref<1x64xf32, #tpu.memory_space<vmem>>, %arg4: memref<64x128xbf16, #tpu.memory_space<vmem>>, %arg5: memref<512x128xf32, #tpu.memory_space<vmem>>, %arg6: memref<1x8x128xf32, #tpu.memory_space<vmem>>, %arg7: memref<1x8x128xf32, #tpu.memory_space<vmem>>) attributes {dimension_semantics = [#tpu.dimension_semantics<parallel>], iteration_bounds = array<i64: 1>, scalar_prefetch = 0 : i64, scratch_operands = 0 : i64, tpu.core_type = #tpu.core_type<tc>, window_params = [{transform_indices = @transform_0, window_bounds = array<i64: 512, 64>}, {pipeline_mode = #tpu.pipeline_mode<synchronous>, transform_indices = @transform_1, window_bounds = array<i64: 1, 64>}, {pipeline_mode = #tpu.pipeline_mode<synchronous>, transform_indices = @transform_2, window_bounds = array<i64: 1, 64>}, {pipeline_mode = #tpu.pipeline_mode<synchronous>, transform_indices = @transform_3, window_bounds = array<i64: 64, 128>}, {transform_indices = @transform_4, window_bounds = array<i64: 512, 128>}, {transform_indices = @transform_5, window_bounds = array<i64: 1, 8, 128>}, {transform_indices = @transform_6, window_bounds = array<i64: 1, 8, 128>}]} {
    %c0 = arith.constant 0 : index
    %c0_0 = arith.constant 0 : index
    %0 = vector.load %arg1[%c0, %c0_0] : memref<512x64xf32, #tpu.memory_space<vmem>>, vector<512x64xf32>
    %c0_1 = arith.constant 0 : index
    %c0_2 = arith.constant 0 : index
    %1 = vector.load %arg2[%c0_1, %c0_2] : memref<1x64xf32, #tpu.memory_space<vmem>>, vector<1x64xf32>
    %2 = vector.broadcast %1 : vector<1x64xf32> to vector<512x64xf32>
    %3 = arith.mulf %0, %2 : vector<512x64xf32>
    %c0_3 = arith.constant 0 : index
    %c0_4 = arith.constant 0 : index
    %4 = vector.load %arg3[%c0_3, %c0_4] : memref<1x64xf32, #tpu.memory_space<vmem>>, vector<1x64xf32>
    %5 = vector.broadcast %4 : vector<1x64xf32> to vector<512x64xf32>
    %6 = arith.addf %3, %5 : vector<512x64xf32>
    %cst = arith.constant 0.000000e+00 : f32
    %7 = vector.broadcast %cst : f32 to vector<512x64xf32>
    %8 = arith.maximumf %6, %7 : vector<512x64xf32>
    %9 = arith.truncf %8 : vector<512x64xf32> to vector<512x64xbf16>
    %c0_5 = arith.constant 0 : index
    %c0_6 = arith.constant 0 : index
    %10 = vector.load %arg4[%c0_5, %c0_6] : memref<64x128xbf16, #tpu.memory_space<vmem>>, vector<64x128xbf16>
    %cst_7 = arith.constant dense<0.000000e+00> : vector<512x128xf32>
    %11 = tpu.matmul %9, %10, %cst_7 {dimension_numbers = #tpu.dot_dimension_numbers<[1], [0], [0], [1], [0, 0, 1, 1], [], []>} : vector<512x64xbf16>, vector<64x128xbf16>, vector<512x128xf32> -> vector<512x128xf32>
    %c0_8 = arith.constant 0 : index
    %c0_9 = arith.constant 0 : index
    %12 = vector.load %arg5[%c0_8, %c0_9] : memref<512x128xf32, #tpu.memory_space<vmem>>, vector<512x128xf32>
    tpu.vector_store %arg5[%c0_8, %c0_9], %11 {strides = array<i32>} : memref<512x128xf32, #tpu.memory_space<vmem>>, vector<512x128xf32>,
    %cst_10 = arith.constant dense<0.000000e+00> : vector<128xf32>
    %13 = vector.multi_reduction <add>, %11, %cst_10 [0] : vector<512x128xf32> to vector<128xf32>
    %14 = vector.shape_cast %13 : vector<128xf32> to vector<1x128xf32>
    %15 = arith.mulf %11, %11 : vector<512x128xf32>
    %cst_11 = arith.constant dense<0.000000e+00> : vector<128xf32>
    %16 = vector.multi_reduction <add>, %15, %cst_11 [0] : vector<512x128xf32> to vector<128xf32>
    %17 = vector.shape_cast %16 : vector<128xf32> to vector<1x128xf32>
    %18 = vector.shape_cast %14 : vector<1x128xf32> to vector<1x1x128xf32>
    %19 = vector.shape_cast %18 : vector<1x1x128xf32> to vector<1x1x128xf32>
    %20 = vector.broadcast %19 : vector<1x1x128xf32> to vector<1x8x128xf32>
    %c0_12 = arith.constant 0 : index
    %c0_13 = arith.constant 0 : index
    %c0_14 = arith.constant 0 : index
    %21 = vector.load %arg6[%c0_12, %c0_13, %c0_14] : memref<1x8x128xf32, #tpu.memory_space<vmem>>, vector<1x8x128xf32>
    tpu.vector_store %arg6[%c0_12, %c0_13, %c0_14], %20 {strides = array<i32>} : memref<1x8x128xf32, #tpu.memory_space<vmem>>, vector<1x8x128xf32>,
    %22 = vector.shape_cast %17 : vector<1x128xf32> to vector<1x1x128xf32>
    %23 = vector.shape_cast %22 : vector<1x1x128xf32> to vector<1x1x128xf32>
    %24 = vector.broadcast %23 : vector<1x1x128xf32> to vector<1x8x128xf32>
    %c0_15 = arith.constant 0 : index
    %c0_16 = arith.constant 0 : index
    %c0_17 = arith.constant 0 : index
    %25 = vector.load %arg7[%c0_15, %c0_16, %c0_17] : memref<1x8x128xf32, #tpu.memory_space<vmem>>, vector<1x8x128xf32>
    tpu.vector_store %arg7[%c0_15, %c0_16, %c0_17], %24 {strides = array<i32>} : memref<1x8x128xf32, #tpu.memory_space<vmem>>, vector<1x8x128xf32>,
    return
  }
  func.func @transform_0(%arg0: i32) -> (i32, i32) {
    %c0_i32 = arith.constant 0 : i32
    %c0_i32_0 = arith.constant 0 : i32
    return %arg0, %c0_i32 : i32, i32
  }
  func.func @transform_1(%arg0: i32) -> (i32, i32) {
    %c0_i32 = arith.constant 0 : i32
    %c0_i32_0 = arith.constant 0 : i32
    %c0_i32_1 = arith.constant 0 : i32
    return %c0_i32, %c0_i32_0 : i32, i32
  }
  func.func @transform_2(%arg0: i32) -> (i32, i32) {
    %c0_i32 = arith.constant 0 : i32
    %c0_i32_0 = arith.constant 0 : i32
    %c0_i32_1 = arith.constant 0 : i32
    return %c0_i32, %c0_i32_0 : i32, i32
  }
  func.func @transform_3(%arg0: i32) -> (i32, i32) {
    %c0_i32 = arith.constant 0 : i32
    %c0_i32_0 = arith.constant 0 : i32
    %c0_i32_1 = arith.constant 0 : i32
    return %c0_i32, %c0_i32_0 : i32, i32
  }
  func.func @transform_4(%arg0: i32) -> (i32, i32) {
    %c0_i32 = arith.constant 0 : i32
    %c0_i32_0 = arith.constant 0 : i32
    return %arg0, %c0_i32 : i32, i32
  }
  func.func @transform_5(%arg0: i32) -> (i32, i32, i32) {
    %c0_i32 = arith.constant 0 : i32
    %c0_i32_0 = arith.constant 0 : i32
    %c0_i32_1 = arith.constant 0 : i32
    return %arg0, %c0_i32, %c0_i32_0 : i32, i32, i32
  }
  func.func @transform_6(%arg0: i32) -> (i32, i32, i32) {
    %c0_i32 = arith.constant 0 : i32
    %c0_i32_0 = arith.constant 0 : i32
    %c0_i32_1 = arith.constant 0 : i32
    return %arg0, %c0_i32, %c0_i32_0 : i32, i32, i32
  }
}

module attributes {stable_mosaic.version = 11 : i64} {
  func.func @_norm_relu_kernel(%arg0: i32, %arg1: memref<512x128xf32, #tpu.memory_space<vmem>>, %arg2: memref<1x128xf32, #tpu.memory_space<vmem>>, %arg3: memref<1x128xf32, #tpu.memory_space<vmem>>, %arg4: memref<512x128xf32, #tpu.memory_space<vmem>>) attributes {dimension_semantics = [#tpu.dimension_semantics<parallel>], iteration_bounds = array<i64: 1>, scalar_prefetch = 0 : i64, scratch_operands = 0 : i64, tpu.core_type = #tpu.core_type<tc>, window_params = [{transform_indices = @transform_0, window_bounds = array<i64: 512, 128>}, {pipeline_mode = #tpu.pipeline_mode<synchronous>, transform_indices = @transform_1, window_bounds = array<i64: 1, 128>}, {pipeline_mode = #tpu.pipeline_mode<synchronous>, transform_indices = @transform_2, window_bounds = array<i64: 1, 128>}, {transform_indices = @transform_3, window_bounds = array<i64: 512, 128>}]} {
    %c0 = arith.constant 0 : index
    %c0_0 = arith.constant 0 : index
    %0 = vector.load %arg1[%c0, %c0_0] : memref<512x128xf32, #tpu.memory_space<vmem>>, vector<512x128xf32>
    %c0_1 = arith.constant 0 : index
    %c0_2 = arith.constant 0 : index
    %1 = vector.load %arg2[%c0_1, %c0_2] : memref<1x128xf32, #tpu.memory_space<vmem>>, vector<1x128xf32>
    %2 = vector.broadcast %1 : vector<1x128xf32> to vector<512x128xf32>
    %3 = arith.mulf %0, %2 : vector<512x128xf32>
    %c0_3 = arith.constant 0 : index
    %c0_4 = arith.constant 0 : index
    %4 = vector.load %arg3[%c0_3, %c0_4] : memref<1x128xf32, #tpu.memory_space<vmem>>, vector<1x128xf32>
    %5 = vector.broadcast %4 : vector<1x128xf32> to vector<512x128xf32>
    %6 = arith.addf %3, %5 : vector<512x128xf32>
    %cst = arith.constant 0.000000e+00 : f32
    %7 = vector.broadcast %cst : f32 to vector<512x128xf32>
    %8 = arith.maximumf %6, %7 : vector<512x128xf32>
    %c0_5 = arith.constant 0 : index
    %c0_6 = arith.constant 0 : index
    %9 = vector.load %arg4[%c0_5, %c0_6] : memref<512x128xf32, #tpu.memory_space<vmem>>, vector<512x128xf32>
    tpu.vector_store %arg4[%c0_5, %c0_6], %8 {strides = array<i32>} : memref<512x128xf32, #tpu.memory_space<vmem>>, vector<512x128xf32>,
    return
  }
  func.func @transform_0(%arg0: i32) -> (i32, i32) {
    %c0_i32 = arith.constant 0 : i32
    %c0_i32_0 = arith.constant 0 : i32
    return %arg0, %c0_i32 : i32, i32
  }
  func.func @transform_1(%arg0: i32) -> (i32, i32) {
    %c0_i32 = arith.constant 0 : i32
    %c0_i32_0 = arith.constant 0 : i32
    %c0_i32_1 = arith.constant 0 : i32
    return %c0_i32, %c0_i32_0 : i32, i32
  }
  func.func @transform_2(%arg0: i32) -> (i32, i32) {
    %c0_i32 = arith.constant 0 : i32
    %c0_i32_0 = arith.constant 0 : i32
    %c0_i32_1 = arith.constant 0 : i32
    return %c0_i32, %c0_i32_0 : i32, i32
  }
  func.func @transform_3(%arg0: i32) -> (i32, i32) {
    %c0_i32 = arith.constant 0 : i32
    %c0_i32_0 = arith.constant 0 : i32
    return %arg0, %c0_i32 : i32, i32
  }
}

</mosaic_0001>

<bundles_post_ra>
// kernel: decoder_block.5
= control target key start
LH: loop header
LB: loop body
LE: loop exit
PB: predicated region body
PF: predicated region fallthrough
CT: control target
= control target key end

     0   :  { %vm271_vm0 = vcmask 523264   ;;  %vm657_vm1 = vcmask 130048   ;;  %s2035_s1 = inlined_call_operand.vmem [shape: bf16[64,16], index: 1, kind: input, shape index: {}]   ;;  %s2036_s0 = inlined_call_operand.vmem [shape: bf16[512,64], index: 0, kind: input, shape index: {}]   ;;  %s2037_s2 = inlined_call_operand.vmem [shape: f32[512,16], index: 2, kind: output, shape index: {0}]   ;;  %s2038_s3 = inlined_call_operand.vmem [shape: f32[1,8,16], index: 3, kind: output, shape index: {1}]   ;;  %s2039_s4 = inlined_call_operand.vmem [shape: f32[1,8,16], index: 4, kind: output, shape index: {2}]  }
   0x1   :  { %v1250_v0 = vld [vmem:[%s2035_s1] sm:$0xff]   ;;  %v1251_v1 = vld [vmem:[%s2035_s1 + $0x8] sm:$0xff]   ;;  %v1252_v2 = vld [vmem:[%s2035_s1 + $0x10] sm:$0xff]  }
   0x2   :  { %1170 = vmatprep.subr.bf16.mxu0 %v1250_v0  ;;  %1242 = vmatprep.subr.bf16.mxu1 %v1250_v0  ;;  %v1254_v3 = vld [vmem:[%s2036_s0] sm:$0xff]   ;;  %v1253_v4 = vld [vmem:[%s2035_s1 + $0x18] sm:$0xff]   ;;  %v1255_v5 = vld [vmem:[%s2036_s0 + $0x8] sm:$0xff]  }
   0x3   :  { %1171 = vmatpush3.bf16.msra.mxu0 %v1250_v0  ;;  %1246 = vmatpush3.bf16.msra.mxu1 %v1250_v0  ;;  %v1256_v6 = vld [vmem:[%s2036_s0 + $0x10] sm:$0xff]   ;;  %v1257_v7 = vld [vmem:[%s2036_s0 + $0x18] sm:$0xff]   ;;  %v1270_v8 = vld [vmem:[%s2036_s0 + $0x80] sm:$0xff]  }
   0x4   :  { %1172 = vmatprep.subr.bf16.mxu0 %v1251_v1  ;;  %1243 = vmatprep.subr.bf16.mxu1 %v1251_v1  ;;  %v1271_v9 = vld [vmem:[%s2036_s0 + $0x88] sm:$0xff]   ;;  %v1272_v10 = vld [vmem:[%s2036_s0 + $0x90] sm:$0xff]   ;;  %v1258_v11 = vld [vmem:[%s2036_s0 + $0x20] sm:$0xff]  }
   0x5   :  { %1178 = vmatprep.mubr.msk.bf16.mxu0 %vm271_vm0, %v1254_v3  ;;  %1210 = vmatprep.mubr.msk.bf16.mxu1 %vm271_vm0, %v1270_v8  ;;  %v1273_v12 = vld [vmem:[%s2036_s0 + $0x98] sm:$0xff]   ;;  %v1274_v13 = vld [vmem:[%s2036_s0 + $0xa0] sm:$0xff]   ;;  %v1259_v14 = vld [vmem:[%s2036_s0 + $0x28] sm:$0xff]  }
   0x6   :  { %v1260_v15 = vld [vmem:[%s2036_s0 + $0x30] sm:$0xff]   ;;  %v1275_v16 = vld [vmem:[%s2036_s0 + $0xa8] sm:$0xff]   ;;  %v1261_v18 = vld [vmem:[%s2036_s0 + $0x38] sm:$0xff]  }
   0x7   :  { %1173 = vmatpush3.bf16.msra.mxu0 %v1251_v1  ;;  %1247 = vmatpush3.bf16.msra.mxu1 %v1251_v1  ;;  %v1276_v17 = vld [vmem:[%s2036_s0 + $0xb0] sm:$0xff]   ;;  %v1262_v19 = vld [vmem:[%s2036_s0 + $0x40] sm:$0xff]   ;;  %v1277_v20 = vld [vmem:[%s2036_s0 + $0xb8] sm:$0xff]  }
   0x8   :  { %1174 = vmatprep.subr.bf16.mxu0 %v1252_v2  ;;  %1244 = vmatprep.subr.bf16.mxu1 %v1252_v2  ;;  %v1278_v21 = vld [vmem:[%s2036_s0 + $0xc0] sm:$0xff]   ;;  %v1263_v22 = vld [vmem:[%s2036_s0 + $0x48] sm:$0xff]   ;;  %v1264_v23 = vld [vmem:[%s2036_s0 + $0x50] sm:$0xff]  }
   0x9   :  { %v1279_v24 = vld [vmem:[%s2036_s0 + $0xc8] sm:$0xff]   ;;  %v1280_v25 = vld [vmem:[%s2036_s0 + $0xd0] sm:$0xff]   ;;  %v1265_v26 = vld [vmem:[%s2036_s0 + $0x58] sm:$0xff]  }
   0xa   :  { %v1266_v27 = vld [vmem:[%s2036_s0 + $0x60] sm:$0xff]   ;;  %v1281_v28 = vld [vmem:[%s2036_s0 + $0xd8] sm:$0xff]   ;;  %v1267_v30 = vld [vmem:[%s2036_s0 + $0x68] sm:$0xff]  }
   0xb   :  { %1175 = vmatpush3.bf16.msra.mxu0 %v1252_v2  ;;  %1248 = vmatpush3.bf16.msra.mxu1 %v1252_v2  ;;  %v1282_v29 = vld [vmem:[%s2036_s0 + $0xe0] sm:$0xff]   ;;  %v1268_v31 = vld [vmem:[%s2036_s0 + $0x70] sm:$0xff]   ;;  %v1283_v32 = vld [vmem:[%s2036_s0 + $0xe8] sm:$0xff]  }
   0xc   :  { %1176 = vmatprep.subr.bf16.mxu0 %v1253_v4  ;;  %1245 = vmatprep.subr.bf16.mxu1 %v1253_v4  ;;  %v1284_v33 = vld [vmem:[%s2036_s0 + $0xf0] sm:$0xff]   ;;  %v1269_v34 = vld [vmem:[%s2036_s0 + $0x78] sm:$0xff]  }
   0xd   :  { %v1285_v35 = vld [vmem:[%s2036_s0 + $0xf8] sm:$0xff]  }
   0xf   :  { %1177 = vmatpush3.bf16.msra.mxu0 %v1253_v4  ;;  %1249 = vmatpush3.bf16.msra.mxu1 %v1253_v4 }
  0x12   :  { %1179 = vmatmul.mubr.msk.bf16.vlgmr.msra.gmra.mrb[0].mxu0 %vm271_vm0, %v1255_v5  ;;  %1211 = vmatmul.mubr.msk.bf16.vlgmr.msra.gmra.mrb[0].mxu1 %vm271_vm0, %v1271_v9 }
  0x13   :  { %1182 = vmatprep.mubr.msk.bf16.mxu0 %vm271_vm0, %v1256_v6  ;;  %1214 = vmatprep.mubr.msk.bf16.mxu1 %vm271_vm0, %v1272_v10 }
  0x1a   :  { %1183 = vmatmul.mubr.msk.bf16.gmra.mrb[4].mxu0 %vm271_vm0, %v1257_v7  ;;  %1215 = vmatmul.mubr.msk.bf16.gmra.mrb[4].mxu1 %vm271_vm0, %v1273_v12 }
  0x1b   :  { %1186 = vmatprep.mubr.msk.bf16.mxu0 %vm271_vm0, %v1258_v11  ;;  %1218 = vmatprep.mubr.msk.bf16.mxu1 %vm271_vm0, %v1274_v13 }
  0x22   :  { %1187 = vmatmul.mubr.msk.bf16.gmra.mrb[8].mxu0 %vm271_vm0, %v1259_v14  ;;  %1219 = vmatmul.mubr.msk.bf16.gmra.mrb[8].mxu1 %vm271_vm0, %v1275_v16 }
  0x23   :  { %1190 = vmatprep.mubr.msk.bf16.mxu0 %vm271_vm0, %v1260_v15  ;;  %1222 = vmatprep.mubr.msk.bf16.mxu1 %vm271_vm0, %v1276_v17 }
  0x2a   :  { %1191 = vmatmul.mubr.msk.bf16.gmra.mrb[12].mxu0 %vm271_vm0, %v1261_v18  ;;  %1223 = vmatmul.mubr.msk.bf16.gmra.mrb[12].mxu1 %vm271_vm0, %v1277_v20 }
  0x2b   :  { %1194 = vmatprep.mubr.msk.bf16.mxu0 %vm271_vm0, %v1262_v19  ;;  %1226 = vmatprep.mubr.msk.bf16.mxu1 %vm271_vm0, %v1278_v21 }
  0x32   :  { %1195 = vmatmul.mubr.msk.bf16.gmra.mrb[16].mxu0 %vm271_vm0, %v1263_v22  ;;  %1227 = vmatmul.mubr.msk.bf16.gmra.mrb[16].mxu1 %vm271_vm0, %v1279_v24 }
  0x33   :  { %1198 = vmatprep.mubr.msk.bf16.mxu0 %vm271_vm0, %v1264_v23  ;;  %1230 = vmatprep.mubr.msk.bf16.mxu1 %vm271_vm0, %v1280_v25 }
  0x3a   :  { %1199 = vmatmul.mubr.msk.bf16.gmra.mrb[20].mxu0 %vm271_vm0, %v1265_v26  ;;  %1231 = vmatmul.mubr.msk.bf16.gmra.mrb[20].mxu1 %vm271_vm0, %v1281_v28 }
  0x3b   :  { %1202 = vmatprep.mubr.msk.bf16.mxu0 %vm271_vm0, %v1266_v27  ;;  %1234 = vmatprep.mubr.msk.bf16.mxu1 %vm271_vm0, %v1282_v29 }
  0x42   :  { %1203 = vmatmul.mubr.msk.bf16.gmra.mrb[24].mxu0 %vm271_vm0, %v1267_v30  ;;  %1235 = vmatmul.mubr.msk.bf16.gmra.mrb[24].mxu1 %vm271_vm0, %v1283_v32 }
  0x43   :  { %1206 = vmatprep.mubr.msk.bf16.mxu0 %vm271_vm0, %v1268_v31  ;;  %1238 = vmatprep.mubr.msk.bf16.mxu1 %vm271_vm0, %v1284_v33 }
  0x4a   :  { %1207 = vmatmul.mubr.msk.bf16.gmra.mrb[28].mxu0 %vm271_vm0, %v1269_v34  ;;  %1239 = vmatmul.mubr.msk.bf16.gmra.mrb[28].mxu1 %vm271_vm0, %v1285_v35 }
  0xe5   :  { %v1180_v36 = vpop.f32.mrb[0].mxu0  ;;  %v1469_v46 = vpop.f32.mrb[0].mxu1 }
  0xe6   :  { %660 = vst.msk [vmem:[%s2037_s2 + $0x10] sm:$0xff] %vm657_vm1, %v1180_v36  ;;  %v402_v37 = vpop.f32.mrb[1].mxu0  ;;  %v857_v41 = vmul.f32 %v1180_v36, %v1180_v36  ;;  %v725_v47 = vsel %vm657_vm1, %v1180_v36, 0.0  ;;  %692 = vst.msk [vmem:[%s2037_s2 + $0x110] sm:$0xff] %vm657_vm1, %v1469_v46  ;;  %v1479_v51 = vpop.f32.mrb[1].mxu1 }
  0xe7   :  { %658 = vst.msk [vmem:[%s2037_s2] sm:$0xff] %vm657_vm1, %v402_v37  ;;  %v855_v38 = vmul.f32 %v402_v37, %v402_v37  ;;  %v1181_v39 = vpop.f32.mrb[2].mxu0  ;;  %v722_v42 = vsel %vm657_vm1, %v402_v37, 0.0  ;;  %690 = vst.msk [vmem:[%s2037_s2 + $0x100] sm:$0xff] %vm657_vm1, %v1479_v51  ;;  %v1486_v54 = vpop.f32.mrb[2].mxu1 }
  0xe8   :  { %661 = vst.msk [vmem:[%s2037_s2 + $0x18] sm:$0xff] %vm657_vm1, %v1181_v39  ;;  %v405_v40 = vpop.f32.mrb[3].mxu0  ;;  %v858_v49 = vmul.f32 %v1181_v39, %v1181_v39  ;;  %v922_v55 = vsel %vm657_vm1, %v857_v41, 0.0  ;;  %v727_v56 = vsel %vm657_vm1, %v1181_v39, 0.0  ;;  %693 = vst.msk [vmem:[%s2037_s2 + $0x118] sm:$0xff] %vm657_vm1, %v1486_v54  ;;  %v1495_v58 = vpop.f32.mrb[3].mxu1 }
  0xe9   :  { %659 = vst.msk [vmem:[%s2037_s2 + $0x8] sm:$0xff] %vm657_vm1, %v405_v40  ;;  %v723_v43 = vsel %vm657_vm1, %v405_v40, 0.0  ;;  %v856_v44 = vmul.f32 %v405_v40, %v405_v40  ;;  %v919_v48 = vsel %vm657_vm1, %v855_v38, 0.0  ;;  %691 = vst.msk [vmem:[%s2037_s2 + $0x108] sm:$0xff] %vm657_vm1, %v1495_v58 }
  0xea   :  { %v724_v45 = vadd.f32 %v723_v43, %v722_v42  ;;  %v924_v62 = vsel %vm657_vm1, %v858_v49, 0.0 }
  0xeb   :  { %v920_v50 = vsel %vm657_vm1, %v856_v44, 0.0 }
  0xec   :  { %v726_v52 = vadd.f32 %v725_v47, %v724_v45  ;;  %v921_v53 = vadd.f32 %v920_v50, %v919_v48 }
  0xed   :  { %v1184_v57 = vpop.f32.mrb[4].mxu0  ;;  %v1522_v11 = vpop.f32.mrb[4].mxu1 }
  0xee   :  { %v923_v59 = vadd.f32 %v922_v55, %v921_v53  ;;  %664 = vst.msk [vmem:[%s2037_s2 + $0x30] sm:$0xff] %vm657_vm1, %v1184_v57  ;;  %v418_v60 = vpop.f32.mrb[5].mxu0  ;;  %v728_v61 = vadd.f32 %v727_v56, %v726_v52  ;;  %v861_v5 = vmul.f32 %v1184_v57, %v1184_v57  ;;  %v733_v12 = vsel %vm657_vm1, %v1184_v57, 0.0  ;;  %696 = vst.msk [vmem:[%s2037_s2 + $0x130] sm:$0xff] %vm657_vm1, %v1522_v11  ;;  %v1531_v15 = vpop.f32.mrb[5].mxu1 }
  0xef   :  { %662 = vst.msk [vmem:[%s2037_s2 + $0x20] sm:$0xff] %vm657_vm1, %v418_v60  ;;  %v729_v63 = vsel %vm657_vm1, %v418_v60, 0.0  ;;  %v859_v0 = vmul.f32 %v418_v60, %v418_v60  ;;  %v1185_v1 = vpop.f32.mrb[6].mxu0  ;;  %694 = vst.msk [vmem:[%s2037_s2 + $0x120] sm:$0xff] %vm657_vm1, %v1531_v15  ;;  %v1538_v18 = vpop.f32.mrb[6].mxu1 }
  0xf0   :  { %v730_v2 = vadd.f32 %v729_v63, %v728_v61  ;;  %v925_v3 = vadd.f32 %v924_v62, %v923_v59  ;;  %665 = vst.msk [vmem:[%s2037_s2 + $0x38] sm:$0xff] %vm657_vm1, %v1185_v1  ;;  %v421_v4 = vpop.f32.mrb[7].mxu0  ;;  %v862_v13 = vmul.f32 %v1185_v1, %v1185_v1  ;;  %v930_v19 = vsel %vm657_vm1, %v861_v5, 0.0  ;;  %697 = vst.msk [vmem:[%s2037_s2 + $0x138] sm:$0xff] %vm657_vm1, %v1538_v18  ;;  %v1547_v22 = vpop.f32.mrb[7].mxu1 }
  0xf1   :  { %v926_v6 = vsel %vm657_vm1, %v859_v0, 0.0  ;;  %663 = vst.msk [vmem:[%s2037_s2 + $0x28] sm:$0xff] %vm657_vm1, %v421_v4  ;;  %v731_v7 = vsel %vm657_vm1, %v421_v4, 0.0  ;;  %v860_v8 = vmul.f32 %v421_v4, %v421_v4  ;;  %v735_v20 = vsel %vm657_vm1, %v1185_v1, 0.0  ;;  %695 = vst.msk [vmem:[%s2037_s2 + $0x128] sm:$0xff] %vm657_vm1, %v1547_v22 }
  0xf2   :  { %v927_v9 = vadd.f32 %v926_v6, %v925_v3  ;;  %v732_v10 = vadd.f32 %v731_v7, %v730_v2  ;;  %v932_v26 = vsel %vm657_vm1, %v862_v13, 0.0 }
  0xf3   :  { %v928_v14 = vsel %vm657_vm1, %v860_v8, 0.0 }
  0xf4   :  { %v734_v16 = vadd.f32 %v733_v12, %v732_v10  ;;  %v929_v17 = vadd.f32 %v928_v14, %v927_v9 }
  0xf5   :  { %v1188_v21 = vpop.f32.mrb[8].mxu0  ;;  %v1574_v39 = vpop.f32.mrb[8].mxu1 }
  0xf6   :  { %v931_v23 = vadd.f32 %v930_v19, %v929_v17  ;;  %668 = vst.msk [vmem:[%s2037_s2 + $0x50] sm:$0xff] %vm657_vm1, %v1188_v21  ;;  %v434_v24 = vpop.f32.mrb[9].mxu0  ;;  %v736_v25 = vadd.f32 %v735_v20, %v734_v16  ;;  %v865_v33 = vmul.f32 %v1188_v21, %v1188_v21  ;;  %v741_v40 = vsel %vm657_vm1, %v1188_v21, 0.0  ;;  %700 = vst.msk [vmem:[%s2037_s2 + $0x150] sm:$0xff] %vm657_vm1, %v1574_v39  ;;  %v1583_v43 = vpop.f32.mrb[9].mxu1 }
  0xf7   :  { %666 = vst.msk [vmem:[%s2037_s2 + $0x40] sm:$0xff] %vm657_vm1, %v434_v24  ;;  %v737_v27 = vsel %vm657_vm1, %v434_v24, 0.0  ;;  %v863_v28 = vmul.f32 %v434_v24, %v434_v24  ;;  %v1189_v29 = vpop.f32.mrb[10].mxu0  ;;  %698 = vst.msk [vmem:[%s2037_s2 + $0x140] sm:$0xff] %vm657_vm1, %v1583_v43  ;;  %v1590_v47 = vpop.f32.mrb[10].mxu1 }
  0xf8   :  { %v738_v30 = vadd.f32 %v737_v27, %v736_v25  ;;  %v933_v31 = vadd.f32 %v932_v26, %v931_v23  ;;  %669 = vst.msk [vmem:[%s2037_s2 + $0x58] sm:$0xff] %vm657_vm1, %v1189_v29  ;;  %v437_v32 = vpop.f32.mrb[11].mxu0  ;;  %v866_v41 = vmul.f32 %v1189_v29, %v1189_v29  ;;  %v938_v48 = vsel %vm657_vm1, %v865_v33, 0.0  ;;  %701 = vst.msk [vmem:[%s2037_s2 + $0x158] sm:$0xff] %vm657_vm1, %v1590_v47  ;;  %v1599_v52 = vpop.f32.mrb[11].mxu1 }
  0xf9   :  { %v934_v34 = vsel %vm657_vm1, %v863_v28, 0.0  ;;  %667 = vst.msk [vmem:[%s2037_s2 + $0x48] sm:$0xff] %vm657_vm1, %v437_v32  ;;  %v739_v35 = vsel %vm657_vm1, %v437_v32, 0.0  ;;  %v864_v36 = vmul.f32 %v437_v32, %v437_v32  ;;  %v743_v49 = vsel %vm657_vm1, %v1189_v29, 0.0  ;;  %699 = vst.msk [vmem:[%s2037_s2 + $0x148] sm:$0xff] %vm657_vm1, %v1599_v52 }
  0xfa   :  { %v935_v37 = vadd.f32 %v934_v34, %v933_v31  ;;  %v740_v38 = vadd.f32 %v739_v35, %v738_v30  ;;  %v940_v57 = vsel %vm657_vm1, %v866_v41, 0.0 }
  0xfb   :  { %v936_v42 = vsel %vm657_vm1, %v864_v36, 0.0 }
  0xfc   :  { %v742_v44 = vadd.f32 %v741_v40, %v740_v38  ;;  %v937_v45 = vadd.f32 %v936_v42, %v935_v37 }
  0xfd   :  { %v1192_v50 = vpop.f32.mrb[12].mxu0  ;;  %v1626_v7 = vpop.f32.mrb[12].mxu1 }
  0xfe   :  { %v939_v53 = vadd.f32 %v938_v48, %v937_v45  ;;  %672 = vst.msk [vmem:[%s2037_s2 + $0x70] sm:$0xff] %vm657_vm1, %v1192_v50  ;;  %v450_v55 = vpop.f32.mrb[13].mxu0  ;;  %v744_v56 = vadd.f32 %v743_v49, %v742_v44  ;;  %v869_v1 = vmul.f32 %v1192_v50, %v1192_v50  ;;  %v749_v8 = vsel %vm657_vm1, %v1192_v50, 0.0  ;;  %704 = vst.msk [vmem:[%s2037_s2 + $0x170] sm:$0xff] %vm657_vm1, %v1626_v7  ;;  %v1635_v12 = vpop.f32.mrb[13].mxu1 }
  0xff   :  { %670 = vst.msk [vmem:[%s2037_s2 + $0x60] sm:$0xff] %vm657_vm1, %v450_v55  ;;  %v745_v59 = vsel %vm657_vm1, %v450_v55, 0.0  ;;  %v867_v60 = vmul.f32 %v450_v55, %v450_v55  ;;  %v1193_v61 = vpop.f32.mrb[14].mxu0  ;;  %702 = vst.msk [vmem:[%s2037_s2 + $0x160] sm:$0xff] %vm657_vm1, %v1635_v12  ;;  %v1642_v16 = vpop.f32.mrb[14].mxu1 }
 0x100   :  { %v746_v62 = vadd.f32 %v745_v59, %v744_v56  ;;  %v941_v63 = vadd.f32 %v940_v57, %v939_v53  ;;  %673 = vst.msk [vmem:[%s2037_s2 + $0x78] sm:$0xff] %vm657_vm1, %v1193_v61  ;;  %v453_v0 = vpop.f32.mrb[15].mxu0  ;;  %v870_v9 = vmul.f32 %v1193_v61, %v1193_v61  ;;  %v946_v17 = vsel %vm657_vm1, %v869_v1, 0.0  ;;  %705 = vst.msk [vmem:[%s2037_s2 + $0x178] sm:$0xff] %vm657_vm1, %v1642_v16  ;;  %v1651_v21 = vpop.f32.mrb[15].mxu1 }
 0x101   :  { %v942_v2 = vsel %vm657_vm1, %v867_v60, 0.0  ;;  %671 = vst.msk [vmem:[%s2037_s2 + $0x68] sm:$0xff] %vm657_vm1, %v453_v0  ;;  %v747_v3 = vsel %vm657_vm1, %v453_v0, 0.0  ;;  %v868_v4 = vmul.f32 %v453_v0, %v453_v0  ;;  %v751_v19 = vsel %vm657_vm1, %v1193_v61, 0.0  ;;  %703 = vst.msk [vmem:[%s2037_s2 + $0x168] sm:$0xff] %vm657_vm1, %v1651_v21 }
 0x102   :  { %v943_v5 = vadd.f32 %v942_v2, %v941_v63  ;;  %v748_v6 = vadd.f32 %v747_v3, %v746_v62  ;;  %v948_v26 = vsel %vm657_vm1, %v870_v9, 0.0 }
 0x103   :  { %v944_v10 = vsel %vm657_vm1, %v868_v4, 0.0 }
 0x104   :  { %v750_v13 = vadd.f32 %v749_v8, %v748_v6  ;;  %v945_v14 = vadd.f32 %v944_v10, %v943_v5 }
 0x105   :  { %v1196_v20 = vpop.f32.mrb[16].mxu0  ;;  %v1678_v40 = vpop.f32.mrb[16].mxu1 }
 0x106   :  { %v947_v23 = vadd.f32 %v946_v17, %v945_v14  ;;  %676 = vst.msk [vmem:[%s2037_s2 + $0x90] sm:$0xff] %vm657_vm1, %v1196_v20  ;;  %v466_v24 = vpop.f32.mrb[17].mxu0  ;;  %v752_v25 = vadd.f32 %v751_v19, %v750_v13  ;;  %v873_v33 = vmul.f32 %v1196_v20, %v1196_v20  ;;  %v757_v41 = vsel %vm657_vm1, %v1196_v20, 0.0  ;;  %708 = vst.msk [vmem:[%s2037_s2 + $0x190] sm:$0xff] %vm657_vm1, %v1678_v40  ;;  %v1687_v45 = vpop.f32.mrb[17].mxu1 }
 0x107   :  { %674 = vst.msk [vmem:[%s2037_s2 + $0x80] sm:$0xff] %vm657_vm1, %v466_v24  ;;  %v753_v27 = vsel %vm657_vm1, %v466_v24, 0.0  ;;  %v871_v28 = vmul.f32 %v466_v24, %v466_v24  ;;  %v1197_v29 = vpop.f32.mrb[18].mxu0  ;;  %706 = vst.msk [vmem:[%s2037_s2 + $0x180] sm:$0xff] %vm657_vm1, %v1687_v45  ;;  %v1694_v50 = vpop.f32.mrb[18].mxu1 }
 0x108   :  { %v754_v30 = vadd.f32 %v753_v27, %v752_v25  ;;  %v949_v31 = vadd.f32 %v948_v26, %v947_v23  ;;  %677 = vst.msk [vmem:[%s2037_s2 + $0x98] sm:$0xff] %vm657_vm1, %v1197_v29  ;;  %v469_v32 = vpop.f32.mrb[19].mxu0  ;;  %v874_v42 = vmul.f32 %v1197_v29, %v1197_v29  ;;  %v954_v53 = vsel %vm657_vm1, %v873_v33, 0.0  ;;  %709 = vst.msk [vmem:[%s2037_s2 + $0x198] sm:$0xff] %vm657_vm1, %v1694_v50  ;;  %v1703_v57 = vpop.f32.mrb[19].mxu1 }
 0x109   :  { %v950_v34 = vsel %vm657_vm1, %v871_v28, 0.0  ;;  %675 = vst.msk [vmem:[%s2037_s2 + $0x88] sm:$0xff] %vm657_vm1, %v469_v32  ;;  %v755_v35 = vsel %vm657_vm1, %v469_v32, 0.0  ;;  %v872_v36 = vmul.f32 %v469_v32, %v469_v32  ;;  %v759_v55 = vsel %vm657_vm1, %v1197_v29, 0.0  ;;  %707 = vst.msk [vmem:[%s2037_s2 + $0x188] sm:$0xff] %vm657_vm1, %v1703_v57 }
 0x10a   :  { %v951_v37 = vadd.f32 %v950_v34, %v949_v31  ;;  %v756_v38 = vadd.f32 %v755_v35, %v754_v30  ;;  %v956_v62 = vsel %vm657_vm1, %v874_v42, 0.0 }
 0x10b   :  { %v952_v44 = vsel %vm657_vm1, %v872_v36, 0.0 }
 0x10c   :  { %v758_v48 = vadd.f32 %v757_v41, %v756_v38  ;;  %v953_v49 = vadd.f32 %v952_v44, %v951_v37 }
 0x10d   :  { %v1200_v56 = vpop.f32.mrb[20].mxu0  ;;  %v1730_v14 = vpop.f32.mrb[20].mxu1 }
 0x10e   :  { %v955_v59 = vadd.f32 %v954_v53, %v953_v49  ;;  %680 = vst.msk [vmem:[%s2037_s2 + $0xb0] sm:$0xff] %vm657_vm1, %v1200_v56  ;;  %v482_v60 = vpop.f32.mrb[21].mxu0  ;;  %v760_v61 = vadd.f32 %v759_v55, %v758_v48  ;;  %v877_v5 = vmul.f32 %v1200_v56, %v1200_v56  ;;  %v765_v17 = vsel %vm657_vm1, %v1200_v56, 0.0  ;;  %712 = vst.msk [vmem:[%s2037_s2 + $0x1b0] sm:$0xff] %vm657_vm1, %v1730_v14  ;;  %v1739_v23 = vpop.f32.mrb[21].mxu1 }
 0x10f   :  { %678 = vst.msk [vmem:[%s2037_s2 + $0xa0] sm:$0xff] %vm657_vm1, %v482_v60  ;;  %v761_v63 = vsel %vm657_vm1, %v482_v60, 0.0  ;;  %v875_v0 = vmul.f32 %v482_v60, %v482_v60  ;;  %v1201_v1 = vpop.f32.mrb[22].mxu0  ;;  %710 = vst.msk [vmem:[%s2037_s2 + $0x1a0] sm:$0xff] %vm657_vm1, %v1739_v23  ;;  %v1746_v26 = vpop.f32.mrb[22].mxu1 }
 0x110   :  { %v762_v2 = vadd.f32 %v761_v63, %v760_v61  ;;  %v957_v3 = vadd.f32 %v956_v62, %v955_v59  ;;  %681 = vst.msk [vmem:[%s2037_s2 + $0xb8] sm:$0xff] %vm657_vm1, %v1201_v1  ;;  %v485_v4 = vpop.f32.mrb[23].mxu0  ;;  %v878_v19 = vmul.f32 %v1201_v1, %v1201_v1  ;;  %v962_v27 = vsel %vm657_vm1, %v877_v5, 0.0  ;;  %713 = vst.msk [vmem:[%s2037_s2 + $0x1b8] sm:$0xff] %vm657_vm1, %v1746_v26  ;;  %v1755_v30 = vpop.f32.mrb[23].mxu1 }
 0x111   :  { %v958_v6 = vsel %vm657_vm1, %v875_v0, 0.0  ;;  %679 = vst.msk [vmem:[%s2037_s2 + $0xa8] sm:$0xff] %vm657_vm1, %v485_v4  ;;  %v763_v8 = vsel %vm657_vm1, %v485_v4, 0.0  ;;  %v876_v9 = vmul.f32 %v485_v4, %v485_v4  ;;  %v767_v28 = vsel %vm657_vm1, %v1201_v1, 0.0  ;;  %711 = vst.msk [vmem:[%s2037_s2 + $0x1a8] sm:$0xff] %vm657_vm1, %v1755_v30 }
 0x112   :  { %v959_v10 = vadd.f32 %v958_v6, %v957_v3  ;;  %v764_v13 = vadd.f32 %v763_v8, %v762_v2  ;;  %v964_v34 = vsel %vm657_vm1, %v878_v19, 0.0 }
 0x113   :  { %v960_v20 = vsel %vm657_vm1, %v876_v9, 0.0 }
 0x114   :  { %v766_v24 = vadd.f32 %v765_v17, %v764_v13  ;;  %v961_v25 = vadd.f32 %v960_v20, %v959_v10 }
 0x115   :  { %v1204_v29 = vpop.f32.mrb[24].mxu0  ;;  %v1782_v59 = vpop.f32.mrb[24].mxu1 }
 0x116   :  { %v963_v31 = vadd.f32 %v962_v27, %v961_v25  ;;  %684 = vst.msk [vmem:[%s2037_s2 + $0xd0] sm:$0xff] %vm657_vm1, %v1204_v29  ;;  %v498_v32 = vpop.f32.mrb[25].mxu0  ;;  %v768_v33 = vadd.f32 %v767_v28, %v766_v24  ;;  %v881_v44 = vmul.f32 %v1204_v29, %v1204_v29  ;;  %v773_v60 = vsel %vm657_vm1, %v1204_v29, 0.0  ;;  %716 = vst.msk [vmem:[%s2037_s2 + $0x1d0] sm:$0xff] %vm657_vm1, %v1782_v59  ;;  %v1791_v63 = vpop.f32.mrb[25].mxu1 }
 0x117   :  { %682 = vst.msk [vmem:[%s2037_s2 + $0xc0] sm:$0xff] %vm657_vm1, %v498_v32  ;;  %v769_v35 = vsel %vm657_vm1, %v498_v32, 0.0  ;;  %v879_v36 = vmul.f32 %v498_v32, %v498_v32  ;;  %v1205_v37 = vpop.f32.mrb[26].mxu0  ;;  %714 = vst.msk [vmem:[%s2037_s2 + $0x1c0] sm:$0xff] %vm657_vm1, %v1791_v63  ;;  %v1798_v2 = vpop.f32.mrb[26].mxu1 }
 0x118   :  { %v770_v38 = vadd.f32 %v769_v35, %v768_v33  ;;  %v965_v41 = vadd.f32 %v964_v34, %v963_v31  ;;  %685 = vst.msk [vmem:[%s2037_s2 + $0xd8] sm:$0xff] %vm657_vm1, %v1205_v37  ;;  %v501_v42 = vpop.f32.mrb[27].mxu0  ;;  %v882_v61 = vmul.f32 %v1205_v37, %v1205_v37  ;;  %v970_v3 = vsel %vm657_vm1, %v881_v44, 0.0  ;;  %717 = vst.msk [vmem:[%s2037_s2 + $0x1d8] sm:$0xff] %vm657_vm1, %v1798_v2  ;;  %v1807_v6 = vpop.f32.mrb[27].mxu1 }
 0x119   :  { %v966_v48 = vsel %vm657_vm1, %v879_v36, 0.0  ;;  %683 = vst.msk [vmem:[%s2037_s2 + $0xc8] sm:$0xff] %vm657_vm1, %v501_v42  ;;  %v771_v49 = vsel %vm657_vm1, %v501_v42, 0.0  ;;  %v880_v53 = vmul.f32 %v501_v42, %v501_v42  ;;  %v775_v4 = vsel %vm657_vm1, %v1205_v37, 0.0  ;;  %715 = vst.msk [vmem:[%s2037_s2 + $0x1c8] sm:$0xff] %vm657_vm1, %v1807_v6 }
 0x11a   :  { %v967_v55 = vadd.f32 %v966_v48, %v965_v41  ;;  %v772_v56 = vadd.f32 %v771_v49, %v770_v38  ;;  %v972_v13 = vsel %vm657_vm1, %v882_v61, 0.0  ;;  %v887_v41 = vmul.f32 %v1479_v51, %v1479_v51 }
 0x11b   :  { %v968_v62 = vsel %vm657_vm1, %v880_v53, 0.0 }
 0x11c   :  { %v774_v0 = vadd.f32 %v773_v60, %v772_v56  ;;  %v969_v1 = vadd.f32 %v968_v62, %v967_v55  ;;  %v785_v56 = vsel %vm657_vm1, %v1479_v51, 0.0  ;;  %v982_v51 = vsel %vm657_vm1, %v887_v41, 0.0 }
 0x11d   :  { %v1208_v5 = vpop.f32.mrb[28].mxu0  ;;  %v1834_v35 = vpop.f32.mrb[28].mxu1 }
 0x11e   :  { %v971_v8 = vadd.f32 %v970_v3, %v969_v1  ;;  %688 = vst.msk [vmem:[%s2037_s2 + $0xf0] sm:$0xff] %vm657_vm1, %v1208_v5  ;;  %v514_v9 = vpop.f32.mrb[29].mxu0  ;;  %v776_v10 = vadd.f32 %v775_v4, %v774_v0  ;;  %v885_v28 = vmul.f32 %v1208_v5, %v1208_v5  ;;  %v781_v36 = vsel %vm657_vm1, %v1208_v5, 0.0  ;;  %720 = vst.msk [vmem:[%s2037_s2 + $0x1f0] sm:$0xff] %vm657_vm1, %v1834_v35  ;;  %v1845_v42 = vpop.f32.mrb[29].mxu1 }
 0x11f   :  { %686 = vst.msk [vmem:[%s2037_s2 + $0xe0] sm:$0xff] %vm657_vm1, %v514_v9  ;;  %v777_v17 = vsel %vm657_vm1, %v514_v9, 0.0  ;;  %v883_v19 = vmul.f32 %v514_v9, %v514_v9  ;;  %v1209_v20 = vpop.f32.mrb[30].mxu0  ;;  %718 = vst.msk [vmem:[%s2037_s2 + $0x1e0] sm:$0xff] %vm657_vm1, %v1845_v42  ;;  %v1852_v49 = vpop.f32.mrb[30].mxu1  ;;  %v888_v1 = vmul.f32 %v1495_v58, %v1495_v58  ;;  %v889_v5 = vmul.f32 %v1469_v46, %v1469_v46 }
 0x120   :  { %v778_v24 = vadd.f32 %v777_v17, %v776_v10  ;;  %v973_v25 = vadd.f32 %v972_v13, %v971_v8  ;;  %689 = vst.msk [vmem:[%s2037_s2 + $0xf8] sm:$0xff] %vm657_vm1, %v1209_v20  ;;  %v517_v27 = vpop.f32.mrb[31].mxu0  ;;  %v886_v37 = vmul.f32 %v1209_v20, %v1209_v20  ;;  %v978_v53 = vsel %vm657_vm1, %v885_v28, 0.0  ;;  %721 = vst.msk [vmem:[%s2037_s2 + $0x1f8] sm:$0xff] %vm657_vm1, %v1852_v49  ;;  %v1863_v60 = vpop.f32.mrb[31].mxu1 }
 0x121   :  { %v974_v29 = vsel %vm657_vm1, %v883_v19, 0.0  ;;  %687 = vst.msk [vmem:[%s2037_s2 + $0xe8] sm:$0xff] %vm657_vm1, %v517_v27  ;;  %v779_v31 = vsel %vm657_vm1, %v517_v27, 0.0  ;;  %v884_v32 = vmul.f32 %v517_v27, %v517_v27  ;;  %v783_v55 = vsel %vm657_vm1, %v1209_v20, 0.0  ;;  %719 = vst.msk [vmem:[%s2037_s2 + $0x1e8] sm:$0xff] %vm657_vm1, %v1863_v60 }
 0x122   :  { %v975_v33 = vadd.f32 %v974_v29, %v973_v25  ;;  %v780_v34 = vadd.f32 %v779_v31, %v778_v24  ;;  %v980_v0 = vsel %vm657_vm1, %v886_v37, 0.0  ;;  %v787_v8 = vsel %vm657_vm1, %v1495_v58, 0.0 }
 0x123   :  { %v976_v38 = vsel %vm657_vm1, %v884_v32, 0.0  ;;  %v789_v13 = vsel %vm657_vm1, %v1469_v46, 0.0  ;;  %v890_v17 = vmul.f32 %v1486_v54, %v1486_v54  ;;  %v984_v19 = vsel %vm657_vm1, %v888_v1, 0.0 }
 0x124   :  { %v782_v44 = vadd.f32 %v781_v36, %v780_v34  ;;  %v977_v48 = vadd.f32 %v976_v38, %v975_v33  ;;  %v891_v20 = vmul.f32 %v1531_v15, %v1531_v15  ;;  %v986_v27 = vsel %vm657_vm1, %v889_v5, 0.0 }
 0x125   :  { %v791_v58 = vsel %vm657_vm1, %v1486_v54, 0.0  ;;  %v793_v28 = vsel %vm657_vm1, %v1531_v15, 0.0  ;;  %v988_v31 = vsel %vm657_vm1, %v890_v17, 0.0  ;;  %v892_v33 = vmul.f32 %v1547_v22, %v1547_v22 }
 0x126   :  { %v979_v61 = vadd.f32 %v978_v53, %v977_v48  ;;  %v784_v62 = vadd.f32 %v783_v55, %v782_v44  ;;  %v990_v32 = vsel %vm657_vm1, %v891_v20, 0.0  ;;  %v893_v37 = vmul.f32 %v1522_v11, %v1522_v11 }
 0x127   :  { %v795_v54 = vsel %vm657_vm1, %v1547_v22, 0.0  ;;  %v797_v15 = vsel %vm657_vm1, %v1522_v11, 0.0  ;;  %v894_v44 = vmul.f32 %v1538_v18, %v1538_v18  ;;  %v992_v48 = vsel %vm657_vm1, %v892_v33, 0.0 }
 0x128   :  { %v786_v3 = vadd.f32 %v785_v56, %v784_v62  ;;  %v981_v4 = vadd.f32 %v980_v0, %v979_v61  ;;  %v895_v53 = vmul.f32 %v1583_v43, %v1583_v43  ;;  %v994_v61 = vsel %vm657_vm1, %v893_v37, 0.0 }
 0x129   :  { %v799_v22 = vsel %vm657_vm1, %v1538_v18, 0.0  ;;  %v801_v62 = vsel %vm657_vm1, %v1583_v43, 0.0  ;;  %v803_v18 = vsel %vm657_vm1, %v1599_v52, 0.0  ;;  %v805_v43 = vsel %vm657_vm1, %v1574_v39, 0.0 }
 0x12a   :  { %v983_v9 = vadd.f32 %v982_v51, %v981_v4  ;;  %v788_v10 = vadd.f32 %v787_v8, %v786_v3  ;;  %v996_v51 = vsel %vm657_vm1, %v894_v44, 0.0  ;;  %v998_v1 = vsel %vm657_vm1, %v895_v53, 0.0 }
 0x12b   :  { %v896_v3 = vmul.f32 %v1599_v52, %v1599_v52  ;;  %v897_v8 = vmul.f32 %v1574_v39, %v1574_v39  ;;  %v807_v52 = vsel %vm657_vm1, %v1590_v47, 0.0  ;;  %v901_v33 = vmul.f32 %v1626_v7, %v1626_v7 }
 0x12c   :  { %v790_v24 = vadd.f32 %v789_v13, %v788_v10  ;;  %v985_v25 = vadd.f32 %v984_v19, %v983_v9  ;;  %v898_v13 = vmul.f32 %v1590_v47, %v1590_v47  ;;  %v899_v19 = vmul.f32 %v1635_v12, %v1635_v12 }
 0x12d   :  { %v1000_v17 = vsel %vm657_vm1, %v896_v3, 0.0  ;;  %v811_v47 = vsel %vm657_vm1, %v1651_v21, 0.0  ;;  %v902_v37 = vmul.f32 %v1642_v16, %v1642_v16  ;;  %v1010_v44 = vsel %vm657_vm1, %v901_v33, 0.0 }
 0x12e   :  { %v987_v29 = vadd.f32 %v986_v27, %v985_v25  ;;  %v792_v46 = vadd.f32 %v791_v58, %v790_v24  ;;  %v1002_v25 = vsel %vm657_vm1, %v897_v8, 0.0  ;;  %v809_v27 = vsel %vm657_vm1, %v1635_v12, 0.0 }
 0x12f   :  { %v813_v12 = vsel %vm657_vm1, %v1626_v7, 0.0 }
 0x130   :  { %v794_v34 = vadd.f32 %v793_v28, %v792_v46  ;;  %v989_v36 = vadd.f32 %v988_v31, %v987_v29  ;;  %v1004_v28 = vsel %vm657_vm1, %v898_v13, 0.0  ;;  %v1006_v29 = vsel %vm657_vm1, %v899_v19, 0.0 }
 0x131   :  { %v900_v46 = vmul.f32 %v1651_v21, %v1651_v21  ;;  %v815_v21 = vsel %vm657_vm1, %v1642_v16, 0.0  ;;  %v819_v16 = vsel %vm657_vm1, %v1703_v57, 0.0 }
 0x132   :  { %v991_v38 = vadd.f32 %v990_v32, %v989_v36  ;;  %v796_v41 = vadd.f32 %v795_v54, %v794_v34 }
 0x133   :  { %v1008_v54 = vsel %vm657_vm1, %v900_v46, 0.0 }
 0x134   :  { %v798_v55 = vadd.f32 %v797_v15, %v796_v41  ;;  %v993_v56 = vadd.f32 %v992_v48, %v991_v38  ;;  %v903_v38 = vmul.f32 %v1687_v45, %v1687_v45  ;;  %v817_v48 = vsel %vm657_vm1, %v1687_v45, 0.0 }
 0x135   :  { %v821_v45 = vsel %vm657_vm1, %v1678_v40, 0.0 }
 0x136   :  { %v995_v0 = vadd.f32 %v994_v61, %v993_v56  ;;  %v800_v11 = vadd.f32 %v799_v22, %v798_v55  ;;  %v1012_v55 = vsel %vm657_vm1, %v902_v37, 0.0  ;;  %v1014_v56 = vsel %vm657_vm1, %v903_v38, 0.0 }
 0x137   :  { %v904_v61 = vmul.f32 %v1703_v57, %v1703_v57  ;;  %v823_v57 = vsel %vm657_vm1, %v1694_v50, 0.0  ;;  %v913_v37 = vmul.f32 %v1782_v59, %v1782_v59 }
 0x138   :  { %v802_v4 = vadd.f32 %v801_v62, %v800_v11  ;;  %v997_v5 = vadd.f32 %v996_v51, %v995_v0  ;;  %v905_v0 = vmul.f32 %v1678_v40, %v1678_v40 }
 0x139   :  { %v1016_v3 = vsel %vm657_vm1, %v904_v61, 0.0 }
 0x13a   :  { %v999_v9 = vadd.f32 %v998_v1, %v997_v5  ;;  %v804_v10 = vadd.f32 %v803_v18, %v802_v4  ;;  %v906_v1 = vmul.f32 %v1694_v50, %v1694_v50  ;;  %v907_v4 = vmul.f32 %v1739_v23, %v1739_v23 }
 0x13b   :  { %v1018_v18 = vsel %vm657_vm1, %v905_v0, 0.0  ;;  %v827_v50 = vsel %vm657_vm1, %v1755_v30, 0.0 }
 0x13c   :  { %v806_v20 = vadd.f32 %v805_v43, %v804_v10  ;;  %v1001_v24 = vadd.f32 %v1000_v17, %v999_v9  ;;  %v825_v9 = vsel %vm657_vm1, %v1739_v23, 0.0  ;;  %v1020_v43 = vsel %vm657_vm1, %v906_v1, 0.0 }
 0x13d   :  { %v1022_v13 = vsel %vm657_vm1, %v907_v4, 0.0  ;;  %v908_v17 = vmul.f32 %v1755_v30, %v1755_v30  ;;  %v829_v23 = vsel %vm657_vm1, %v1730_v14, 0.0  ;;  %v831_v30 = vsel %vm657_vm1, %v1746_v26, 0.0 }
 0x13e   :  { %v1003_v58 = vadd.f32 %v1002_v25, %v1001_v24  ;;  %v808_v39 = vadd.f32 %v807_v52, %v806_v20  ;;  %v909_v24 = vmul.f32 %v1730_v14, %v1730_v14 }
 0x140   :  { %v810_v31 = vadd.f32 %v809_v27, %v808_v39  ;;  %v1005_v32 = vadd.f32 %v1004_v28, %v1003_v58  ;;  %v910_v27 = vmul.f32 %v1746_v26, %v1746_v26  ;;  %v1024_v58 = vsel %vm657_vm1, %v908_v17, 0.0 }
 0x141   :  { %v911_v39 = vmul.f32 %v1791_v63, %v1791_v63  ;;  %v1026_v46 = vsel %vm657_vm1, %v909_v24, 0.0  ;;  %v835_v26 = vsel %vm657_vm1, %v1807_v6, 0.0 }
 0x142   :  { %v1007_v34 = vadd.f32 %v1006_v29, %v1005_v32  ;;  %v812_v36 = vadd.f32 %v811_v47, %v810_v31  ;;  %v833_v31 = vsel %vm657_vm1, %v1791_v63, 0.0  ;;  %v1028_v33 = vsel %vm657_vm1, %v910_v27, 0.0 }
 0x143   :  { %v1030_v47 = vsel %vm657_vm1, %v911_v39, 0.0  ;;  %v837_v63 = vsel %vm657_vm1, %v1782_v59, 0.0 }
 0x144   :  { %v814_v41 = vadd.f32 %v813_v12, %v812_v36  ;;  %v1009_v15 = vadd.f32 %v1008_v54, %v1007_v34  ;;  %v912_v34 = vmul.f32 %v1807_v6, %v1807_v6  ;;  %v839_v6 = vsel %vm657_vm1, %v1798_v2, 0.0 }
 0x146   :  { %v1011_v53 = vadd.f32 %v1010_v44, %v1009_v15  ;;  %v816_v7 = vadd.f32 %v815_v21, %v814_v41  ;;  %v914_v41 = vmul.f32 %v1798_v2, %v1798_v2  ;;  %v1032_v15 = vsel %vm657_vm1, %v912_v34, 0.0 }
 0x147   :  { %v915_v44 = vmul.f32 %v1845_v42, %v1845_v42  ;;  %v843_v2 = vsel %vm657_vm1, %v1863_v60, 0.0 }
 0x148   :  { %v818_v22 = vadd.f32 %v817_v48, %v816_v7  ;;  %v1013_v62 = vadd.f32 %v1012_v55, %v1011_v53  ;;  %v1034_v53 = vsel %vm657_vm1, %v913_v37, 0.0  ;;  %v841_v7 = vsel %vm657_vm1, %v1845_v42, 0.0 }
 0x149   :  { %v1038_v61 = vsel %vm657_vm1, %v915_v44, 0.0  ;;  %v845_v42 = vsel %vm657_vm1, %v1834_v35, 0.0 }
 0x14a   :  { %v1015_v11 = vadd.f32 %v1014_v56, %v1013_v62  ;;  %v820_v51 = vadd.f32 %v819_v16, %v818_v22  ;;  %v1036_v56 = vsel %vm657_vm1, %v914_v41, 0.0  ;;  %v916_v22 = vmul.f32 %v1863_v60, %v1863_v60 }
 0x14b   :  { %v917_v16 = vmul.f32 %v1834_v35, %v1834_v35 }
 0x14c   :  { %v822_v5 = vadd.f32 %v821_v45, %v820_v51  ;;  %v1017_v8 = vadd.f32 %v1016_v3, %v1015_v11  ;;  %v918_v45 = vmul.f32 %v1852_v49, %v1852_v49  ;;  %v1040_v1 = vsel %vm657_vm1, %v916_v22, 0.0 }
 0x14e   :  { %v1019_v10 = vadd.f32 %v1018_v18, %v1017_v8  ;;  %v824_v40 = vadd.f32 %v823_v57, %v822_v5  ;;  %v1042_v5 = vsel %vm657_vm1, %v917_v16, 0.0  ;;  %v847_v8 = vsel %vm657_vm1, %v1852_v49, 0.0 }
 0x14f   :  { %v1044_v60 = vsel %vm657_vm1, %v918_v45, 0.0 }
 0x150   :  { %v826_v19 = vadd.f32 %v825_v9, %v824_v40  ;;  %v1021_v20 = vadd.f32 %v1020_v43, %v1019_v10 }
 0x152   :  { %v1023_v25 = vadd.f32 %v1022_v13, %v1021_v20  ;;  %v828_v52 = vadd.f32 %v827_v50, %v826_v19 }
 0x154   :  { %v830_v28 = vadd.f32 %v829_v23, %v828_v52  ;;  %v1025_v29 = vadd.f32 %v1024_v58, %v1023_v25 }
 0x156   :  { %v1027_v32 = vadd.f32 %v1026_v46, %v1025_v29  ;;  %v832_v14 = vadd.f32 %v831_v30, %v830_v28 }
 0x158   :  { %v834_v36 = vadd.f32 %v833_v31, %v832_v14  ;;  %v1029_v12 = vadd.f32 %v1028_v33, %v1027_v32 }
 0x15a   :  { %v1031_v54 = vadd.f32 %v1030_v47, %v1029_v12  ;;  %v836_v38 = vadd.f32 %v835_v26, %v834_v36 }
 0x15c   :  { %v838_v21 = vadd.f32 %v837_v63, %v836_v38  ;;  %v1033_v48 = vadd.f32 %v1032_v15, %v1031_v54 }
 0x15e   :  { %v1035_v55 = vadd.f32 %v1034_v53, %v1033_v48  ;;  %v840_v59 = vadd.f32 %v839_v6, %v838_v21 }
 0x160   :  { %v842_v62 = vadd.f32 %v841_v7, %v840_v59  ;;  %v1037_v0 = vadd.f32 %v1036_v56, %v1035_v55 }
 0x162   :  { %v1039_v11 = vadd.f32 %v1038_v61, %v1037_v0  ;;  %v844_v51 = vadd.f32 %v843_v2, %v842_v62 }
 0x164   :  { %v846_v3 = vadd.f32 %v845_v42, %v844_v51  ;;  %v1041_v4 = vadd.f32 %v1040_v1, %v1039_v11 }
 0x166   :  { %v848_v18 = vadd.f32 %v847_v8, %v846_v3  ;;  %v1043_v57 = vadd.f32 %v1042_v5, %v1041_v4 }
 0x168   :  { %v849_v9 = vrot.slane %v848_v18, 4  ;;  %v1045_v10 = vadd.f32 %v1044_v60, %v1043_v57 }
 0x16a   :  { %v850_v40 = vadd.f32 %v849_v9, %v848_v18  ;;  %v1046_v35 = vrot.slane %v1045_v10, 4 }
 0x16c   :  { %v851_v43 = vrot.slane %v850_v40, 2  ;;  %v1047_v13 = vadd.f32 %v1046_v35, %v1045_v10 }
 0x16e   :  { %v852_v17 = vadd.f32 %v851_v43, %v850_v40  ;;  %v1048_v19 = vrot.slane %v1047_v13, 2 }
 0x170   :  { %v853_v20 = vrot.slane %v852_v17, 1  ;;  %v1049_v24 = vadd.f32 %v1048_v19, %v1047_v13 }
 0x172   :  { %v854_v50 = vadd.f32 %v853_v20, %v852_v17  ;;  %v1050_v25 = vrot.slane %v1049_v24, 1 }
 0x174   :  { %v1051_v52 = vadd.f32 %v1050_v25, %v1049_v24  ;;  %1052 = vst.msk [vmem:[%s2038_s3] sm:$0xff] %vm657_vm1, %v854_v50 }
 0x176   :  { %1053 = vst.msk [vmem:[%s2039_s4] sm:$0xff] %vm657_vm1, %v1051_v52 }

// kernel: decoder_block.6
= control target key start
LH: loop header
LB: loop body
LE: loop exit
PB: predicated region body
PF: predicated region fallthrough
CT: control target
= control target key end

     0   :  { %vm540_vm0 = vcmask 125952   ;;  %s1345_s0 = inlined_call_operand.vmem [shape: f32[512,16], index: 0, kind: input, shape index: {}]   ;;  %s1346_s1 = inlined_call_operand.vmem [shape: f32[1,16], index: 1, kind: input, shape index: {}]   ;;  %s1347_s2 = inlined_call_operand.vmem [shape: f32[1,16], index: 2, kind: input, shape index: {}]   ;;  %s1348_s3 = inlined_call_operand.vmem [shape: bf16[512,16], index: 3, kind: output, shape index: {}]  }
   0x1   :  { %v14_v0 = vld [vmem:[%s1345_s0] sm:$0xff]  ;;  %v15_v4 = vld [vmem:[%s1345_s0 + $0x8] sm:$0xff]  ;;  %v16_v5 = vld [vmem:[%s1345_s0 + $0x10] sm:$0xff] }
   0x2   :  { %v765_v1 = vld [vmem:[%s1346_s1] ss:$0 sm:$0xff]  ;;  %v17_v6 = vld [vmem:[%s1345_s0 + $0x18] sm:$0xff]  ;;  %v19_v11 = vld [vmem:[%s1345_s0 + $0x28] sm:$0xff] }
   0x3   :  { %v770_v2 = vld [vmem:[%s1347_s2] ss:$0 sm:$0xff]  ;;  %v85_v3 = vmul.f32 %v765_v1, %v14_v0  ;;  %v86_v7 = vmul.f32 %v765_v1, %v15_v4  ;;  %v87_v8 = vmul.f32 %v765_v1, %v16_v5  ;;  %v88_v9 = vmul.f32 %v765_v1, %v17_v6  ;;  %v20_v12 = vld [vmem:[%s1345_s0 + $0x30] sm:$0xff]  ;;  %v21_v17 = vld [vmem:[%s1345_s0 + $0x38] sm:$0xff] }
   0x4   :  { %v18_v10 = vld [vmem:[%s1345_s0 + $0x20] sm:$0xff]  ;;  %v90_v15 = vmul.f32 %v765_v1, %v19_v11  ;;  %v91_v16 = vmul.f32 %v765_v1, %v20_v12  ;;  %v92_v21 = vmul.f32 %v765_v1, %v21_v17  ;;  %v23_v35 = vld [vmem:[%s1345_s0 + $0x48] sm:$0xff]  ;;  %v24_v36 = vld [vmem:[%s1345_s0 + $0x50] sm:$0xff] }
   0x5   :  { %v156_v13 = vadd.f32 %v770_v2, %v85_v3  ;;  %v89_v14 = vmul.f32 %v765_v1, %v18_v10  ;;  %v157_v18 = vadd.f32 %v770_v2, %v86_v7  ;;  %v158_v19 = vadd.f32 %v770_v2, %v87_v8  ;;  %v22_v30 = vld [vmem:[%s1345_s0 + $0x40] sm:$0xff]  ;;  %v25_v37 = vld [vmem:[%s1345_s0 + $0x58] sm:$0xff]  ;;  %v27_v43 = vld [vmem:[%s1345_s0 + $0x68] sm:$0xff] }
   0x6   :  { %v159_v20 = vadd.f32 %v770_v2, %v88_v9  ;;  %v161_v24 = vadd.f32 %v770_v2, %v90_v15  ;;  %v162_v25 = vadd.f32 %v770_v2, %v91_v16  ;;  %v163_v29 = vadd.f32 %v770_v2, %v92_v21  ;;  %v26_v42 = vld [vmem:[%s1345_s0 + $0x60] sm:$0xff]  ;;  %v28_v44 = vld [vmem:[%s1345_s0 + $0x70] sm:$0xff]  ;;  %v29_v49 = vld [vmem:[%s1345_s0 + $0x78] sm:$0xff] }
   0x7   :  { %v220_v22 = vmax.f32 %v156_v13, 0.0  ;;  %v160_v23 = vadd.f32 %v770_v2, %v89_v14  ;;  %v221_v26 = vmax.f32 %v157_v18, 0.0  ;;  %v222_v27 = vmax.f32 %v158_v19, 0.0  ;;  %v30_v8 = vld [vmem:[%s1345_s0 + $0x80] sm:$0xff]  ;;  %v31_v13 = vld [vmem:[%s1345_s0 + $0x88] sm:$0xff]  ;;  %v32_v14 = vld [vmem:[%s1345_s0 + $0x90] sm:$0xff] }
   0x8   :  { %v223_v28 = vmax.f32 %v159_v20, 0.0  ;;  %v225_v33 = vmax.f32 %v161_v24, 0.0  ;;  %v226_v34 = vmax.f32 %v162_v25, 0.0  ;;  %v227_v41 = vmax.f32 %v163_v29, 0.0  ;;  %v33_v15 = vld [vmem:[%s1345_s0 + $0x98] sm:$0xff]  ;;  %v34_v20 = vld [vmem:[%s1345_s0 + $0xa0] sm:$0xff] }
   0x9   :  { %v675_v31 = vpack.c.bf16 %v220_v22, %v220_v22  ;;  %v224_v32 = vmax.f32 %v160_v23, 0.0  ;;  %v676_v38 = vpack.c.bf16 %v221_v26, %v221_v26  ;;  %v677_v39 = vpack.c.bf16 %v222_v27, %v222_v27  ;;  %v35_v21 = vld [vmem:[%s1345_s0 + $0xa8] sm:$0xff]  ;;  %v36_v22 = vld [vmem:[%s1345_s0 + $0xb0] sm:$0xff]  ;;  %v37_v27 = vld [vmem:[%s1345_s0 + $0xb8] sm:$0xff] }
   0xa   :  { %v678_v40 = vpack.c.bf16 %v223_v28, %v223_v28  ;;  %v680_v46 = vpack.c.bf16 %v225_v33, %v225_v33  ;;  %v681_v47 = vpack.c.bf16 %v226_v34, %v226_v34  ;;  %v93_v48 = vmul.f32 %v765_v1, %v22_v30 }
   0xb   :  { %541 = vst.msk [vmem:[%s1348_s3] sm:$0xf] %vm540_vm0, %v675_v31  ;;  %v679_v45 = vpack.c.bf16 %v224_v32, %v224_v32  ;;  %542 = vst.msk [vmem:[%s1348_s3 + $0x4] sm:$0xf] %vm540_vm0, %v676_v38  ;;  %v682_v50 = vpack.c.bf16 %v227_v41, %v227_v41  ;;  %v94_v51 = vmul.f32 %v765_v1, %v23_v35 }
   0xc   :  { %543 = vst.msk [vmem:[%s1348_s3 + $0x8] sm:$0xf] %vm540_vm0, %v677_v39  ;;  %544 = vst.msk [vmem:[%s1348_s3 + $0xc] sm:$0xf] %vm540_vm0, %v678_v40  ;;  %v95_v52 = vmul.f32 %v765_v1, %v24_v36  ;;  %v96_v53 = vmul.f32 %v765_v1, %v25_v37  ;;  %v164_v54 = vadd.f32 %v770_v2, %v93_v48  ;;  %v38_v48 = vld [vmem:[%s1345_s0 + $0xc0] sm:$0xff] }
   0xd   :  { %545 = vst.msk [vmem:[%s1348_s3 + $0x10] sm:$0xf] %vm540_vm0, %v679_v45  ;;  %546 = vst.msk [vmem:[%s1348_s3 + $0x14] sm:$0xf] %vm540_vm0, %v680_v46  ;;  %v97_v55 = vmul.f32 %v765_v1, %v26_v42  ;;  %v98_v56 = vmul.f32 %v765_v1, %v27_v43  ;;  %v99_v57 = vmul.f32 %v765_v1, %v28_v44 }
   0xe   :  { %547 = vst.msk [vmem:[%s1348_s3 + $0x18] sm:$0xf] %vm540_vm0, %v681_v47  ;;  %548 = vst.msk [vmem:[%s1348_s3 + $0x1c] sm:$0xf] %vm540_vm0, %v682_v50  ;;  %v165_v58 = vadd.f32 %v770_v2, %v94_v51  ;;  %v166_v59 = vadd.f32 %v770_v2, %v95_v52  ;;  %v167_v60 = vadd.f32 %v770_v2, %v96_v53  ;;  %v228_v62 = vmax.f32 %v164_v54, 0.0  ;;  %v39_v53 = vld [vmem:[%s1345_s0 + $0xc8] sm:$0xff] }
   0xf   :  { %v100_v61 = vmul.f32 %v765_v1, %v29_v49  ;;  %v168_v63 = vadd.f32 %v770_v2, %v97_v55  ;;  %v169_v0 = vadd.f32 %v770_v2, %v98_v56  ;;  %v170_v3 = vadd.f32 %v770_v2, %v99_v57  ;;  %v40_v54 = vld [vmem:[%s1345_s0 + $0xd0] sm:$0xff]  ;;  %v41_v55 = vld [vmem:[%s1345_s0 + $0xd8] sm:$0xff] }
  0x10   :  { %v229_v4 = vmax.f32 %v165_v58, 0.0  ;;  %v230_v5 = vmax.f32 %v166_v59, 0.0  ;;  %v231_v6 = vmax.f32 %v167_v60, 0.0  ;;  %v683_v9 = vpack.c.bf16 %v228_v62, %v228_v62  ;;  %v42_v60 = vld [vmem:[%s1345_s0 + $0xe0] sm:$0xff]  ;;  %v44_v62 = vld [vmem:[%s1345_s0 + $0xf0] sm:$0xff] }
  0x11   :  { %v171_v7 = vadd.f32 %v770_v2, %v100_v61  ;;  %v232_v10 = vmax.f32 %v168_v63, 0.0  ;;  %v233_v11 = vmax.f32 %v169_v0, 0.0  ;;  %v234_v12 = vmax.f32 %v170_v3, 0.0  ;;  %v43_v61 = vld [vmem:[%s1345_s0 + $0xe8] sm:$0xff] }
  0x12   :  { %v684_v16 = vpack.c.bf16 %v229_v4, %v229_v4  ;;  %v685_v17 = vpack.c.bf16 %v230_v5, %v230_v5  ;;  %v686_v18 = vpack.c.bf16 %v231_v6, %v231_v6  ;;  %549 = vst.msk [vmem:[%s1348_s3 + $0x20] sm:$0xf] %vm540_vm0, %v683_v9  ;;  %v101_v26 = vmul.f32 %v765_v1, %v30_v8  ;;  %v45_v5 = vld [vmem:[%s1345_s0 + $0xf8] sm:$0xff] }
  0x13   :  { %v235_v19 = vmax.f32 %v171_v7, 0.0  ;;  %v687_v23 = vpack.c.bf16 %v232_v10, %v232_v10  ;;  %v688_v24 = vpack.c.bf16 %v233_v11, %v233_v11  ;;  %v689_v25 = vpack.c.bf16 %v234_v12, %v234_v12 }
  0x14   :  { %550 = vst.msk [vmem:[%s1348_s3 + $0x24] sm:$0xf] %vm540_vm0, %v684_v16  ;;  %551 = vst.msk [vmem:[%s1348_s3 + $0x28] sm:$0xf] %vm540_vm0, %v685_v17  ;;  %v102_v29 = vmul.f32 %v765_v1, %v31_v13  ;;  %v103_v30 = vmul.f32 %v765_v1, %v32_v14  ;;  %v104_v31 = vmul.f32 %v765_v1, %v33_v15 }
  0x15   :  { %552 = vst.msk [vmem:[%s1348_s3 + $0x2c] sm:$0xf] %vm540_vm0, %v686_v18  ;;  %v690_v28 = vpack.c.bf16 %v235_v19, %v235_v19  ;;  %553 = vst.msk [vmem:[%s1348_s3 + $0x30] sm:$0xf] %vm540_vm0, %v687_v23  ;;  %v172_v32 = vadd.f32 %v770_v2, %v101_v26  ;;  %v105_v33 = vmul.f32 %v765_v1, %v34_v20  ;;  %v46_v26 = vld [vmem:[%s1345_s0 + $0x100] sm:$0xff] }
  0x16   :  { %554 = vst.msk [vmem:[%s1348_s3 + $0x34] sm:$0xf] %vm540_vm0, %v688_v24  ;;  %555 = vst.msk [vmem:[%s1348_s3 + $0x38] sm:$0xf] %vm540_vm0, %v689_v25  ;;  %v106_v34 = vmul.f32 %v765_v1, %v35_v21  ;;  %v107_v35 = vmul.f32 %v765_v1, %v36_v22  ;;  %v173_v36 = vadd.f32 %v770_v2, %v102_v29 }
  0x17   :  { %556 = vst.msk [vmem:[%s1348_s3 + $0x3c] sm:$0xf] %vm540_vm0, %v690_v28  ;;  %v174_v37 = vadd.f32 %v770_v2, %v103_v30  ;;  %v175_v38 = vadd.f32 %v770_v2, %v104_v31  ;;  %v108_v39 = vmul.f32 %v765_v1, %v37_v27  ;;  %v236_v40 = vmax.f32 %v172_v32, 0.0  ;;  %v47_v31 = vld [vmem:[%s1345_s0 + $0x108] sm:$0xff]  ;;  %v48_v32 = vld [vmem:[%s1345_s0 + $0x110] sm:$0xff] }
  0x18   :  { %v176_v41 = vadd.f32 %v770_v2, %v105_v33  ;;  %v177_v42 = vadd.f32 %v770_v2, %v106_v34  ;;  %v178_v43 = vadd.f32 %v770_v2, %v107_v35  ;;  %v237_v44 = vmax.f32 %v173_v36, 0.0  ;;  %v49_v33 = vld [vmem:[%s1345_s0 + $0x118] sm:$0xff] }
  0x19   :  { %v238_v45 = vmax.f32 %v174_v37, 0.0  ;;  %v239_v46 = vmax.f32 %v175_v38, 0.0  ;;  %v179_v47 = vadd.f32 %v770_v2, %v108_v39  ;;  %v691_v49 = vpack.c.bf16 %v236_v40, %v236_v40  ;;  %v50_v38 = vld [vmem:[%s1345_s0 + $0x120] sm:$0xff]  ;;  %v51_v39 = vld [vmem:[%s1345_s0 + $0x128] sm:$0xff]  ;;  %v52_v40 = vld [vmem:[%s1345_s0 + $0x130] sm:$0xff] }
  0x1a   :  { %v240_v50 = vmax.f32 %v176_v41, 0.0  ;;  %v241_v51 = vmax.f32 %v177_v42, 0.0  ;;  %v242_v52 = vmax.f32 %v178_v43, 0.0  ;;  %v692_v56 = vpack.c.bf16 %v237_v44, %v237_v44 }
  0x1b   :  { %v693_v57 = vpack.c.bf16 %v238_v45, %v238_v45  ;;  %v694_v58 = vpack.c.bf16 %v239_v46, %v239_v46  ;;  %v243_v59 = vmax.f32 %v179_v47, 0.0  ;;  %557 = vst.msk [vmem:[%s1348_s3 + $0x40] sm:$0xf] %vm540_vm0, %v691_v49  ;;  %v109_v4 = vmul.f32 %v765_v1, %v38_v48  ;;  %v53_v45 = vld [vmem:[%s1345_s0 + $0x138] sm:$0xff] }
  0x1c   :  { %v695_v63 = vpack.c.bf16 %v240_v50, %v240_v50  ;;  %v696_v0 = vpack.c.bf16 %v241_v51, %v241_v51  ;;  %v697_v3 = vpack.c.bf16 %v242_v52, %v242_v52  ;;  %558 = vst.msk [vmem:[%s1348_s3 + $0x44] sm:$0xf] %vm540_vm0, %v692_v56  ;;  %v110_v7 = vmul.f32 %v765_v1, %v39_v53 }
  0x1d   :  { %559 = vst.msk [vmem:[%s1348_s3 + $0x48] sm:$0xf] %vm540_vm0, %v693_v57  ;;  %560 = vst.msk [vmem:[%s1348_s3 + $0x4c] sm:$0xf] %vm540_vm0, %v694_v58  ;;  %v698_v6 = vpack.c.bf16 %v243_v59, %v243_v59  ;;  %v111_v8 = vmul.f32 %v765_v1, %v40_v54  ;;  %v112_v9 = vmul.f32 %v765_v1, %v41_v55 }
  0x1e   :  { %561 = vst.msk [vmem:[%s1348_s3 + $0x50] sm:$0xf] %vm540_vm0, %v695_v63  ;;  %562 = vst.msk [vmem:[%s1348_s3 + $0x54] sm:$0xf] %vm540_vm0, %v696_v0  ;;  %v180_v10 = vadd.f32 %v770_v2, %v109_v4  ;;  %v113_v11 = vmul.f32 %v765_v1, %v42_v60  ;;  %v114_v12 = vmul.f32 %v765_v1, %v43_v61  ;;  %v54_v4 = vld [vmem:[%s1345_s0 + $0x140] sm:$0xff] }
  0x1f   :  { %563 = vst.msk [vmem:[%s1348_s3 + $0x58] sm:$0xf] %vm540_vm0, %v697_v3  ;;  %v115_v13 = vmul.f32 %v765_v1, %v44_v62  ;;  %564 = vst.msk [vmem:[%s1348_s3 + $0x5c] sm:$0xf] %vm540_vm0, %v698_v6  ;;  %v181_v14 = vadd.f32 %v770_v2, %v110_v7  ;;  %v182_v15 = vadd.f32 %v770_v2, %v111_v8 }
  0x20   :  { %v183_v16 = vadd.f32 %v770_v2, %v112_v9  ;;  %v116_v17 = vmul.f32 %v765_v1, %v45_v5  ;;  %v244_v18 = vmax.f32 %v180_v10, 0.0  ;;  %v184_v19 = vadd.f32 %v770_v2, %v113_v11  ;;  %v55_v9 = vld [vmem:[%s1345_s0 + $0x148] sm:$0xff]  ;;  %v56_v10 = vld [vmem:[%s1345_s0 + $0x150] sm:$0xff]  ;;  %v57_v11 = vld [vmem:[%s1345_s0 + $0x158] sm:$0xff] }
  0x21   :  { %v185_v20 = vadd.f32 %v770_v2, %v114_v12  ;;  %v186_v21 = vadd.f32 %v770_v2, %v115_v13  ;;  %v245_v22 = vmax.f32 %v181_v14, 0.0  ;;  %v246_v23 = vmax.f32 %v182_v15, 0.0 }
  0x22   :  { %v247_v24 = vmax.f32 %v183_v16, 0.0  ;;  %v187_v25 = vadd.f32 %v770_v2, %v116_v17  ;;  %v699_v27 = vpack.c.bf16 %v244_v18, %v244_v18  ;;  %v248_v28 = vmax.f32 %v184_v19, 0.0  ;;  %v58_v16 = vld [vmem:[%s1345_s0 + $0x160] sm:$0xff]  ;;  %v59_v17 = vld [vmem:[%s1345_s0 + $0x168] sm:$0xff]  ;;  %v60_v18 = vld [vmem:[%s1345_s0 + $0x170] sm:$0xff] }
  0x23   :  { %v249_v29 = vmax.f32 %v185_v20, 0.0  ;;  %v250_v30 = vmax.f32 %v186_v21, 0.0  ;;  %v700_v34 = vpack.c.bf16 %v245_v22, %v245_v22  ;;  %v701_v35 = vpack.c.bf16 %v246_v23, %v246_v23  ;;  %v61_v23 = vld [vmem:[%s1345_s0 + $0x178] sm:$0xff] }
  0x24   :  { %v702_v36 = vpack.c.bf16 %v247_v24, %v247_v24  ;;  %v251_v37 = vmax.f32 %v187_v25, 0.0  ;;  %565 = vst.msk [vmem:[%s1348_s3 + $0x60] sm:$0xf] %vm540_vm0, %v699_v27  ;;  %v703_v41 = vpack.c.bf16 %v248_v28, %v248_v28  ;;  %v117_v44 = vmul.f32 %v765_v1, %v46_v26 }
  0x25   :  { %v704_v42 = vpack.c.bf16 %v249_v29, %v249_v29  ;;  %v705_v43 = vpack.c.bf16 %v250_v30, %v250_v30  ;;  %566 = vst.msk [vmem:[%s1348_s3 + $0x64] sm:$0xf] %vm540_vm0, %v700_v34  ;;  %567 = vst.msk [vmem:[%s1348_s3 + $0x68] sm:$0xf] %vm540_vm0, %v701_v35  ;;  %v118_v47 = vmul.f32 %v765_v1, %v47_v31 }
  0x26   :  { %568 = vst.msk [vmem:[%s1348_s3 + $0x6c] sm:$0xf] %vm540_vm0, %v702_v36  ;;  %v706_v46 = vpack.c.bf16 %v251_v37, %v251_v37  ;;  %v119_v48 = vmul.f32 %v765_v1, %v48_v32  ;;  %v120_v49 = vmul.f32 %v765_v1, %v49_v33  ;;  %569 = vst.msk [vmem:[%s1348_s3 + $0x70] sm:$0xf] %vm540_vm0, %v703_v41 }
  0x27   :  { %570 = vst.msk [vmem:[%s1348_s3 + $0x74] sm:$0xf] %vm540_vm0, %v704_v42  ;;  %571 = vst.msk [vmem:[%s1348_s3 + $0x78] sm:$0xf] %vm540_vm0, %v705_v43  ;;  %v188_v50 = vadd.f32 %v770_v2, %v117_v44  ;;  %v121_v51 = vmul.f32 %v765_v1, %v50_v38  ;;  %v122_v52 = vmul.f32 %v765_v1, %v51_v39  ;;  %v62_v44 = vld [vmem:[%s1345_s0 + $0x180] sm:$0xff] }
  0x28   :  { %v123_v53 = vmul.f32 %v765_v1, %v52_v40  ;;  %572 = vst.msk [vmem:[%s1348_s3 + $0x7c] sm:$0xf] %vm540_vm0, %v706_v46  ;;  %v189_v54 = vadd.f32 %v770_v2, %v118_v47  ;;  %v190_v55 = vadd.f32 %v770_v2, %v119_v48  ;;  %v191_v56 = vadd.f32 %v770_v2, %v120_v49  ;;  %v63_v49 = vld [vmem:[%s1345_s0 + $0x188] sm:$0xff] }
  0x29   :  { %v124_v57 = vmul.f32 %v765_v1, %v53_v45  ;;  %v252_v58 = vmax.f32 %v188_v50, 0.0  ;;  %v192_v59 = vadd.f32 %v770_v2, %v121_v51  ;;  %v193_v60 = vadd.f32 %v770_v2, %v122_v52  ;;  %v64_v50 = vld [vmem:[%s1345_s0 + $0x190] sm:$0xff]  ;;  %v65_v51 = vld [vmem:[%s1345_s0 + $0x198] sm:$0xff] }
  0x2a   :  { %v194_v61 = vadd.f32 %v770_v2, %v123_v53  ;;  %v253_v62 = vmax.f32 %v189_v54, 0.0  ;;  %v254_v63 = vmax.f32 %v190_v55, 0.0  ;;  %v255_v0 = vmax.f32 %v191_v56, 0.0  ;;  %v66_v56 = vld [vmem:[%s1345_s0 + $0x1a0] sm:$0xff] }
  0x2b   :  { %v195_v3 = vadd.f32 %v770_v2, %v124_v57  ;;  %v707_v5 = vpack.c.bf16 %v252_v58, %v252_v58  ;;  %v256_v6 = vmax.f32 %v192_v59, 0.0  ;;  %v257_v7 = vmax.f32 %v193_v60, 0.0  ;;  %v67_v57 = vld [vmem:[%s1345_s0 + $0x1a8] sm:$0xff]  ;;  %v68_v58 = vld [vmem:[%s1345_s0 + $0x1b0] sm:$0xff] }
  0x2c   :  { %v258_v8 = vmax.f32 %v194_v61, 0.0  ;;  %v708_v12 = vpack.c.bf16 %v253_v62, %v253_v62  ;;  %v709_v13 = vpack.c.bf16 %v254_v63, %v254_v63  ;;  %v710_v14 = vpack.c.bf16 %v255_v0, %v255_v0  ;;  %v69_v63 = vld [vmem:[%s1345_s0 + $0x1b8] sm:$0xff] }
  0x2d   :  { %v259_v15 = vmax.f32 %v195_v3, 0.0  ;;  %573 = vst.msk [vmem:[%s1348_s3 + $0x80] sm:$0xf] %vm540_vm0, %v707_v5  ;;  %v711_v19 = vpack.c.bf16 %v256_v6, %v256_v6  ;;  %v712_v20 = vpack.c.bf16 %v257_v7, %v257_v7  ;;  %v125_v22 = vmul.f32 %v765_v1, %v54_v4 }
  0x2e   :  { %v713_v21 = vpack.c.bf16 %v258_v8, %v258_v8  ;;  %574 = vst.msk [vmem:[%s1348_s3 + $0x84] sm:$0xf] %vm540_vm0, %v708_v12  ;;  %575 = vst.msk [vmem:[%s1348_s3 + $0x88] sm:$0xf] %vm540_vm0, %v709_v13  ;;  %v126_v25 = vmul.f32 %v765_v1, %v55_v9  ;;  %v127_v26 = vmul.f32 %v765_v1, %v56_v10 }
  0x2f   :  { %576 = vst.msk [vmem:[%s1348_s3 + $0x8c] sm:$0xf] %vm540_vm0, %v710_v14  ;;  %v714_v24 = vpack.c.bf16 %v259_v15, %v259_v15  ;;  %v128_v27 = vmul.f32 %v765_v1, %v57_v11  ;;  %577 = vst.msk [vmem:[%s1348_s3 + $0x90] sm:$0xf] %vm540_vm0, %v711_v19  ;;  %v196_v28 = vadd.f32 %v770_v2, %v125_v22  ;;  %v70_v22 = vld [vmem:[%s1345_s0 + $0x1c0] sm:$0xff] }
  0x30   :  { %578 = vst.msk [vmem:[%s1348_s3 + $0x94] sm:$0xf] %vm540_vm0, %v712_v20  ;;  %579 = vst.msk [vmem:[%s1348_s3 + $0x98] sm:$0xf] %vm540_vm0, %v713_v21  ;;  %v129_v29 = vmul.f32 %v765_v1, %v58_v16  ;;  %v130_v30 = vmul.f32 %v765_v1, %v59_v17  ;;  %v131_v31 = vmul.f32 %v765_v1, %v60_v18 }
  0x31   :  { %580 = vst.msk [vmem:[%s1348_s3 + $0x9c] sm:$0xf] %vm540_vm0, %v714_v24  ;;  %v197_v32 = vadd.f32 %v770_v2, %v126_v25  ;;  %v198_v33 = vadd.f32 %v770_v2, %v127_v26  ;;  %v199_v34 = vadd.f32 %v770_v2, %v128_v27  ;;  %v132_v35 = vmul.f32 %v765_v1, %v61_v23  ;;  %v71_v27 = vld [vmem:[%s1345_s0 + $0x1c8] sm:$0xff] }
  0x32   :  { %v260_v36 = vmax.f32 %v196_v28, 0.0  ;;  %v200_v37 = vadd.f32 %v770_v2, %v129_v29  ;;  %v201_v38 = vadd.f32 %v770_v2, %v130_v30  ;;  %v202_v39 = vadd.f32 %v770_v2, %v131_v31  ;;  %v72_v28 = vld [vmem:[%s1345_s0 + $0x1d0] sm:$0xff]  ;;  %v73_v29 = vld [vmem:[%s1345_s0 + $0x1d8] sm:$0xff] }
  0x33   :  { %v261_v40 = vmax.f32 %v197_v32, 0.0  ;;  %v262_v41 = vmax.f32 %v198_v33, 0.0  ;;  %v263_v42 = vmax.f32 %v199_v34, 0.0  ;;  %v203_v43 = vadd.f32 %v770_v2, %v132_v35  ;;  %v74_v34 = vld [vmem:[%s1345_s0 + $0x1e0] sm:$0xff]  ;;  %v75_v35 = vld [vmem:[%s1345_s0 + $0x1e8] sm:$0xff] }
  0x34   :  { %v715_v45 = vpack.c.bf16 %v260_v36, %v260_v36  ;;  %v264_v46 = vmax.f32 %v200_v37, 0.0  ;;  %v265_v47 = vmax.f32 %v201_v38, 0.0  ;;  %v266_v48 = vmax.f32 %v202_v39, 0.0  ;;  %v76_v36 = vld [vmem:[%s1345_s0 + $0x1f0] sm:$0xff] }
  0x35   :  { %v716_v52 = vpack.c.bf16 %v261_v40, %v261_v40  ;;  %v717_v53 = vpack.c.bf16 %v262_v41, %v262_v41  ;;  %v718_v54 = vpack.c.bf16 %v263_v42, %v263_v42  ;;  %v267_v55 = vmax.f32 %v203_v43, 0.0  ;;  %v77_v41 = vld [vmem:[%s1345_s0 + $0x1f8] sm:$0xff] }
  0x36   :  { %581 = vst.msk [vmem:[%s1348_s3 + $0xa0] sm:$0xf] %vm540_vm0, %v715_v45  ;;  %v719_v59 = vpack.c.bf16 %v264_v46, %v264_v46  ;;  %v720_v60 = vpack.c.bf16 %v265_v47, %v265_v47  ;;  %v721_v61 = vpack.c.bf16 %v266_v48, %v266_v48  ;;  %v133_v62 = vmul.f32 %v765_v1, %v62_v44 }
  0x37   :  { %582 = vst.msk [vmem:[%s1348_s3 + $0xa4] sm:$0xf] %vm540_vm0, %v716_v52  ;;  %583 = vst.msk [vmem:[%s1348_s3 + $0xa8] sm:$0xf] %vm540_vm0, %v717_v53  ;;  %v722_v0 = vpack.c.bf16 %v267_v55, %v267_v55  ;;  %v134_v3 = vmul.f32 %v765_v1, %v63_v49  ;;  %v135_v4 = vmul.f32 %v765_v1, %v64_v50 }
  0x38   :  { %584 = vst.msk [vmem:[%s1348_s3 + $0xac] sm:$0xf] %vm540_vm0, %v718_v54  ;;  %v136_v5 = vmul.f32 %v765_v1, %v65_v51  ;;  %585 = vst.msk [vmem:[%s1348_s3 + $0xb0] sm:$0xf] %vm540_vm0, %v719_v59  ;;  %v204_v6 = vadd.f32 %v770_v2, %v133_v62  ;;  %v137_v7 = vmul.f32 %v765_v1, %v66_v56 }
  0x39   :  { %586 = vst.msk [vmem:[%s1348_s3 + $0xb4] sm:$0xf] %vm540_vm0, %v720_v60  ;;  %587 = vst.msk [vmem:[%s1348_s3 + $0xb8] sm:$0xf] %vm540_vm0, %v721_v61  ;;  %v138_v8 = vmul.f32 %v765_v1, %v67_v57  ;;  %v139_v9 = vmul.f32 %v765_v1, %v68_v58  ;;  %v205_v10 = vadd.f32 %v770_v2, %v134_v3 }
  0x3a   :  { %588 = vst.msk [vmem:[%s1348_s3 + $0xbc] sm:$0xf] %vm540_vm0, %v722_v0  ;;  %v206_v11 = vadd.f32 %v770_v2, %v135_v4  ;;  %v207_v12 = vadd.f32 %v770_v2, %v136_v5  ;;  %v140_v13 = vmul.f32 %v765_v1, %v69_v63  ;;  %v268_v14 = vmax.f32 %v204_v6, 0.0 }
  0x3b   :  { %v208_v15 = vadd.f32 %v770_v2, %v137_v7  ;;  %v209_v16 = vadd.f32 %v770_v2, %v138_v8  ;;  %v210_v17 = vadd.f32 %v770_v2, %v139_v9  ;;  %v269_v18 = vmax.f32 %v205_v10, 0.0 }
  0x3c   :  { %v270_v19 = vmax.f32 %v206_v11, 0.0  ;;  %v271_v20 = vmax.f32 %v207_v12, 0.0  ;;  %v211_v21 = vadd.f32 %v770_v2, %v140_v13  ;;  %v723_v23 = vpack.c.bf16 %v268_v14, %v268_v14 }
  0x3d   :  { %v272_v24 = vmax.f32 %v208_v15, 0.0  ;;  %v273_v25 = vmax.f32 %v209_v16, 0.0  ;;  %v274_v26 = vmax.f32 %v210_v17, 0.0  ;;  %v724_v30 = vpack.c.bf16 %v269_v18, %v269_v18 }
  0x3e   :  { %v725_v31 = vpack.c.bf16 %v270_v19, %v270_v19  ;;  %v726_v32 = vpack.c.bf16 %v271_v20, %v271_v20  ;;  %v275_v33 = vmax.f32 %v211_v21, 0.0  ;;  %589 = vst.msk [vmem:[%s1348_s3 + $0xc0] sm:$0xf] %vm540_vm0, %v723_v23  ;;  %v141_v40 = vmul.f32 %v765_v1, %v70_v22 }
  0x3f   :  { %v727_v37 = vpack.c.bf16 %v272_v24, %v272_v24  ;;  %v728_v38 = vpack.c.bf16 %v273_v25, %v273_v25  ;;  %v729_v39 = vpack.c.bf16 %v274_v26, %v274_v26  ;;  %590 = vst.msk [vmem:[%s1348_s3 + $0xc4] sm:$0xf] %vm540_vm0, %v724_v30  ;;  %v142_v43 = vmul.f32 %v765_v1, %v71_v27 }
  0x40   :  { %591 = vst.msk [vmem:[%s1348_s3 + $0xc8] sm:$0xf] %vm540_vm0, %v725_v31  ;;  %592 = vst.msk [vmem:[%s1348_s3 + $0xcc] sm:$0xf] %vm540_vm0, %v726_v32  ;;  %v730_v42 = vpack.c.bf16 %v275_v33, %v275_v33  ;;  %v143_v44 = vmul.f32 %v765_v1, %v72_v28  ;;  %v144_v45 = vmul.f32 %v765_v1, %v73_v29 }
  0x41   :  { %593 = vst.msk [vmem:[%s1348_s3 + $0xd0] sm:$0xf] %vm540_vm0, %v727_v37  ;;  %594 = vst.msk [vmem:[%s1348_s3 + $0xd4] sm:$0xf] %vm540_vm0, %v728_v38  ;;  %v212_v46 = vadd.f32 %v770_v2, %v141_v40  ;;  %v145_v47 = vmul.f32 %v765_v1, %v74_v34  ;;  %v146_v48 = vmul.f32 %v765_v1, %v75_v35 }
  0x42   :  { %595 = vst.msk [vmem:[%s1348_s3 + $0xd8] sm:$0xf] %vm540_vm0, %v729_v39  ;;  %v147_v49 = vmul.f32 %v765_v1, %v76_v36  ;;  %596 = vst.msk [vmem:[%s1348_s3 + $0xdc] sm:$0xf] %vm540_vm0, %v730_v42  ;;  %v213_v50 = vadd.f32 %v770_v2, %v142_v43  ;;  %v214_v51 = vadd.f32 %v770_v2, %v143_v44 }
  0x43   :  { %v215_v52 = vadd.f32 %v770_v2, %v144_v45  ;;  %v148_v53 = vmul.f32 %v765_v1, %v77_v41  ;;  %v276_v54 = vmax.f32 %v212_v46, 0.0  ;;  %v216_v55 = vadd.f32 %v770_v2, %v145_v47 }
  0x44   :  { %v217_v56 = vadd.f32 %v770_v2, %v146_v48  ;;  %v218_v57 = vadd.f32 %v770_v2, %v147_v49  ;;  %v277_v58 = vmax.f32 %v213_v50, 0.0  ;;  %v278_v59 = vmax.f32 %v214_v51, 0.0 }
  0x45   :  { %v279_v60 = vmax.f32 %v215_v52, 0.0  ;;  %v219_v61 = vadd.f32 %v770_v2, %v148_v53  ;;  %v731_v62 = vpack.c.bf16 %v276_v54, %v276_v54  ;;  %v280_v63 = vmax.f32 %v216_v55, 0.0 }
  0x46   :  { %v281_v0 = vmax.f32 %v217_v56, 0.0  ;;  %v282_v3 = vmax.f32 %v218_v57, 0.0  ;;  %v732_v4 = vpack.c.bf16 %v277_v58, %v277_v58  ;;  %v733_v5 = vpack.c.bf16 %v278_v59, %v278_v59 }
  0x47   :  { %v734_v6 = vpack.c.bf16 %v279_v60, %v279_v60  ;;  %v283_v1 = vmax.f32 %v219_v61, 0.0  ;;  %597 = vst.msk [vmem:[%s1348_s3 + $0xe0] sm:$0xf] %vm540_vm0, %v731_v62  ;;  %v735_v7 = vpack.c.bf16 %v280_v63, %v280_v63 }
  0x48   :  { %v736_v8 = vpack.c.bf16 %v281_v0, %v281_v0  ;;  %v737_v9 = vpack.c.bf16 %v282_v3, %v282_v3  ;;  %598 = vst.msk [vmem:[%s1348_s3 + $0xe4] sm:$0xf] %vm540_vm0, %v732_v4  ;;  %599 = vst.msk [vmem:[%s1348_s3 + $0xe8] sm:$0xf] %vm540_vm0, %v733_v5 }
  0x49   :  { %600 = vst.msk [vmem:[%s1348_s3 + $0xec] sm:$0xf] %vm540_vm0, %v734_v6  ;;  %v738_v2 = vpack.c.bf16 %v283_v1, %v283_v1  ;;  %601 = vst.msk [vmem:[%s1348_s3 + $0xf0] sm:$0xf] %vm540_vm0, %v735_v7 }
  0x4a   :  { %602 = vst.msk [vmem:[%s1348_s3 + $0xf4] sm:$0xf] %vm540_vm0, %v736_v8  ;;  %603 = vst.msk [vmem:[%s1348_s3 + $0xf8] sm:$0xf] %vm540_vm0, %v737_v9 }
  0x4b   :  { %604 = vst.msk [vmem:[%s1348_s3 + $0xfc] sm:$0xf] %vm540_vm0, %v738_v2 }

// kernel: tile.27
= control target key start
LH: loop header
LB: loop body
LE: loop exit
PB: predicated region body
PF: predicated region fallthrough
CT: control target
= control target key end

     0   :  { %s22_s0 = inlined_call_operand.vmem [shape: f32[16], index: 0, kind: input, shape index: {}]   ;;  %s23_s1 = inlined_call_operand.vmem [shape: f32[4,16], index: 1, kind: output, shape index: {}]  }
   0x1   :  { %v4_v0 = vld [vmem:[%s22_s0] ss:$0 sm:$0xff] }
   0x2   :  { %5 = vst [vmem:[%s23_s1] sm:$0xf] %v4_v0 }

// kernel: tile.29
= control target key start
LH: loop header
LB: loop body
LE: loop exit
PB: predicated region body
PF: predicated region fallthrough
CT: control target
= control target key end

     0   :  { %vm7_vm0 = vcmask 130048   ;;  %s37_s8 = smov 16   ;;  %s38_s9 = smov 32   ;;  %vm13_vm1 = vcmask 523648   ;;  %vm19_vm2 = vcmask 392448   ;;  %vm25_vm3 = vcmask 261248   ;;  %s55_s0 = inlined_call_operand.vmem [shape: f32[4,16], index: 0, kind: input, shape index: {}]   ;;  %s56_s1 = inlined_call_operand.vmem [shape: f32[1,64], index: 1, kind: output, shape index: {}]  }
   0x1   :  { %v4_v0 = vld [vmem:[%s55_s0] sm:$0xf]  ;;  %s36_s0 = smov 48  }
   0x2   :  { %5 = vst [vmem:[#allocation1] sm:$0xf] %v4_v0 }
   0x9   :  { %v10_v1 = vld [vmem:[#allocation1 + $0x3] sm:$0x1]   ;;  %v22_v2 = vld [vmem:[#allocation1 + $0x1] sm:$0x1]   ;;  %v6_v3 = vld [vmem:[#allocation1] sm:$0x1]  }
   0xa   :  { %11 = vrot.lane.b32.xlu0 %v10_v1, %s36_s0  ;;  %23 = vrot.lane.b32.xlu1 %v22_v2, %s37_s8  ;;  %v16_v4 = vld [vmem:[#allocation1 + $0x2] sm:$0x1]   ;;  %8 = vst.msk [vmem:[#allocation0] sm:$0x1] %vm7_vm0, %v6_v3  }
   0xe   :  { %17 = vrot.lane.b32.xlu0 %v16_v4, %s38_s9 }
  0x7c   :  { %v12_v5 = vpop.permute.xlu0 %11   ;;  %v24_v6 = vpop.permute.xlu1 %23  }
  0x7d   :  { %14 = vst.msk [vmem:[#allocation0] sm:$0x1] %vm13_vm1, %v12_v5  }
  0x80   :  { %v18_v7 = vpop.permute.xlu0 %17  }
  0x81   :  { %20 = vst.msk [vmem:[#allocation0] sm:$0x1] %vm19_vm2, %v18_v7  }
  0x82   :  { %26 = vst.msk [vmem:[#allocation0] sm:$0x1] %vm25_vm3, %v24_v6  }
  0x89   :  { %v30_v8 = vld [vmem:[#allocation0] sm:$0x1] }
  0x8a   :  { %32 = vst [vmem:[%s56_s1] sm:$0x1] %v30_v8 }

// kernel: tile.37
= control target key start
LH: loop header
LB: loop body
LE: loop exit
PB: predicated region body
PF: predicated region fallthrough
CT: control target
= control target key end

     0   :  { %s22_s0 = inlined_call_operand.vmem [shape: f32[32], index: 0, kind: input, shape index: {}]   ;;  %s23_s1 = inlined_call_operand.vmem [shape: f32[4,32], index: 1, kind: output, shape index: {}]  }
   0x1   :  { %v4_v0 = vld [vmem:[%s22_s0] ss:$0 sm:$0xff] }
   0x2   :  { %5 = vst [vmem:[%s23_s1] sm:$0xf] %v4_v0 }

// kernel: tile.39
= control target key start
LH: loop header
LB: loop body
LE: loop exit
PB: predicated region body
PF: predicated region fallthrough
CT: control target
= control target key end

     0   :  { %vm7_vm0 = vcmask 261120   ;;  %s37_s8 = smov 32   ;;  %s38_s9 = smov 64   ;;  %vm13_vm1 = vcmask 1048320   ;;  %vm19_vm2 = vcmask 785920   ;;  %vm25_vm3 = vcmask 523520   ;;  %s55_s0 = inlined_call_operand.vmem [shape: f32[4,32], index: 0, kind: input, shape index: {}]   ;;  %s56_s1 = inlined_call_operand.vmem [shape: f32[1,128], index: 1, kind: output, shape index: {}]  }
   0x1   :  { %v4_v0 = vld [vmem:[%s55_s0] sm:$0xf]  ;;  %s36_s0 = smov 96  }
   0x2   :  { %5 = vst [vmem:[#allocation1] sm:$0xf] %v4_v0 }
   0x9   :  { %v10_v1 = vld [vmem:[#allocation1 + $0x3] sm:$0x1]   ;;  %v22_v2 = vld [vmem:[#allocation1 + $0x1] sm:$0x1]   ;;  %v6_v3 = vld [vmem:[#allocation1] sm:$0x1]  }
   0xa   :  { %11 = vrot.lane.b32.xlu0 %v10_v1, %s36_s0  ;;  %23 = vrot.lane.b32.xlu1 %v22_v2, %s37_s8  ;;  %v16_v4 = vld [vmem:[#allocation1 + $0x2] sm:$0x1]   ;;  %8 = vst.msk [vmem:[#allocation0] sm:$0x1] %vm7_vm0, %v6_v3  }
   0xe   :  { %17 = vrot.lane.b32.xlu0 %v16_v4, %s38_s9 }
  0x7c   :  { %v12_v5 = vpop.permute.xlu0 %11   ;;  %v24_v6 = vpop.permute.xlu1 %23  }
  0x7d   :  { %14 = vst.msk [vmem:[#allocation0] sm:$0x1] %vm13_vm1, %v12_v5  }
  0x80   :  { %v18_v7 = vpop.permute.xlu0 %17  }
  0x81   :  { %20 = vst.msk [vmem:[#allocation0] sm:$0x1] %vm19_vm2, %v18_v7  }
  0x82   :  { %26 = vst.msk [vmem:[#allocation0] sm:$0x1] %vm25_vm3, %v24_v6  }
  0x89   :  { %v30_v8 = vld [vmem:[#allocation0] sm:$0x1] }
  0x8a   :  { %32 = vst [vmem:[%s56_s1] sm:$0x1] %v30_v8 }

// kernel: decoder_block.7
= control target key start
LH: loop header
LB: loop body
LE: loop exit
PB: predicated region body
PF: predicated region fallthrough
CT: control target
= control target key end

     0   :  { %vm271_vm0 = vcmask 523264   ;;  %s2034_s1 = inlined_call_operand.vmem [shape: bf16[64,64], index: 1, kind: input, shape index: {}]   ;;  %s2035_s0 = inlined_call_operand.vmem [shape: bf16[512,64], index: 0, kind: input, shape index: {}]   ;;  %s2036_s2 = inlined_call_operand.vmem [shape: f32[512,64], index: 2, kind: output, shape index: {0}]   ;;  %s2037_s3 = inlined_call_operand.vmem [shape: f32[1,8,64], index: 3, kind: output, shape index: {1}]   ;;  %s2038_s4 = inlined_call_operand.vmem [shape: f32[1,8,64], index: 4, kind: output, shape index: {2}]  }
   0x1   :  { %v1249_v0 = vld [vmem:[%s2034_s1] sm:$0xff]   ;;  %v1250_v1 = vld [vmem:[%s2034_s1 + $0x8] sm:$0xff]   ;;  %v1251_v2 = vld [vmem:[%s2034_s1 + $0x10] sm:$0xff]  }
   0x2   :  { %1169 = vmatprep.subr.bf16.mxu0 %v1249_v0  ;;  %1241 = vmatprep.subr.bf16.mxu1 %v1249_v0  ;;  %v1253_v3 = vld [vmem:[%s2035_s0] sm:$0xff]   ;;  %v1252_v4 = vld [vmem:[%s2034_s1 + $0x18] sm:$0xff]   ;;  %v1254_v5 = vld [vmem:[%s2035_s0 + $0x8] sm:$0xff]  }
   0x3   :  { %1170 = vmatpush3.bf16.msra.mxu0 %v1249_v0  ;;  %1245 = vmatpush3.bf16.msra.mxu1 %v1249_v0  ;;  %v1255_v6 = vld [vmem:[%s2035_s0 + $0x10] sm:$0xff]   ;;  %v1256_v7 = vld [vmem:[%s2035_s0 + $0x18] sm:$0xff]   ;;  %v1269_v8 = vld [vmem:[%s2035_s0 + $0x80] sm:$0xff]  }
   0x4   :  { %1171 = vmatprep.subr.bf16.mxu0 %v1250_v1  ;;  %1242 = vmatprep.subr.bf16.mxu1 %v1250_v1  ;;  %v1270_v9 = vld [vmem:[%s2035_s0 + $0x88] sm:$0xff]   ;;  %v1271_v10 = vld [vmem:[%s2035_s0 + $0x90] sm:$0xff]   ;;  %v1257_v11 = vld [vmem:[%s2035_s0 + $0x20] sm:$0xff]  }
   0x5   :  { %1177 = vmatprep.mubr.msk.bf16.mxu0 %vm271_vm0, %v1253_v3  ;;  %1209 = vmatprep.mubr.msk.bf16.mxu1 %vm271_vm0, %v1269_v8  ;;  %v1272_v12 = vld [vmem:[%s2035_s0 + $0x98] sm:$0xff]   ;;  %v1273_v13 = vld [vmem:[%s2035_s0 + $0xa0] sm:$0xff]   ;;  %v1258_v14 = vld [vmem:[%s2035_s0 + $0x28] sm:$0xff]  }
   0x6   :  { %v1259_v15 = vld [vmem:[%s2035_s0 + $0x30] sm:$0xff]   ;;  %v1274_v16 = vld [vmem:[%s2035_s0 + $0xa8] sm:$0xff]   ;;  %v1260_v18 = vld [vmem:[%s2035_s0 + $0x38] sm:$0xff]  }
   0x7   :  { %1172 = vmatpush3.bf16.msra.mxu0 %v1250_v1  ;;  %1246 = vmatpush3.bf16.msra.mxu1 %v1250_v1  ;;  %v1275_v17 = vld [vmem:[%s2035_s0 + $0xb0] sm:$0xff]   ;;  %v1261_v19 = vld [vmem:[%s2035_s0 + $0x40] sm:$0xff]   ;;  %v1276_v20 = vld [vmem:[%s2035_s0 + $0xb8] sm:$0xff]  }
   0x8   :  { %1173 = vmatprep.subr.bf16.mxu0 %v1251_v2  ;;  %1243 = vmatprep.subr.bf16.mxu1 %v1251_v2  ;;  %v1277_v21 = vld [vmem:[%s2035_s0 + $0xc0] sm:$0xff]   ;;  %v1262_v22 = vld [vmem:[%s2035_s0 + $0x48] sm:$0xff]   ;;  %v1263_v23 = vld [vmem:[%s2035_s0 + $0x50] sm:$0xff]  }
   0x9   :  { %v1278_v24 = vld [vmem:[%s2035_s0 + $0xc8] sm:$0xff]   ;;  %v1279_v25 = vld [vmem:[%s2035_s0 + $0xd0] sm:$0xff]   ;;  %v1264_v26 = vld [vmem:[%s2035_s0 + $0x58] sm:$0xff]  }
   0xa   :  { %v1265_v27 = vld [vmem:[%s2035_s0 + $0x60] sm:$0xff]   ;;  %v1280_v28 = vld [vmem:[%s2035_s0 + $0xd8] sm:$0xff]   ;;  %v1266_v30 = vld [vmem:[%s2035_s0 + $0x68] sm:$0xff]  }
   0xb   :  { %1174 = vmatpush3.bf16.msra.mxu0 %v1251_v2  ;;  %1247 = vmatpush3.bf16.msra.mxu1 %v1251_v2  ;;  %v1281_v29 = vld [vmem:[%s2035_s0 + $0xe0] sm:$0xff]   ;;  %v1267_v31 = vld [vmem:[%s2035_s0 + $0x70] sm:$0xff]   ;;  %v1282_v32 = vld [vmem:[%s2035_s0 + $0xe8] sm:$0xff]  }
   0xc   :  { %1175 = vmatprep.subr.bf16.mxu0 %v1252_v4  ;;  %1244 = vmatprep.subr.bf16.mxu1 %v1252_v4  ;;  %v1283_v33 = vld [vmem:[%s2035_s0 + $0xf0] sm:$0xff]   ;;  %v1268_v34 = vld [vmem:[%s2035_s0 + $0x78] sm:$0xff]  }
   0xd   :  { %v1284_v35 = vld [vmem:[%s2035_s0 + $0xf8] sm:$0xff]  }
   0xf   :  { %1176 = vmatpush3.bf16.msra.mxu0 %v1252_v4  ;;  %1248 = vmatpush3.bf16.msra.mxu1 %v1252_v4 }
  0x12   :  { %1178 = vmatmul.mubr.msk.bf16.vlgmr.msra.gmra.mrb[0].mxu0 %vm271_vm0, %v1254_v5  ;;  %1210 = vmatmul.mubr.msk.bf16.vlgmr.msra.gmra.mrb[0].mxu1 %vm271_vm0, %v1270_v9 }
  0x13   :  { %1181 = vmatprep.mubr.msk.bf16.mxu0 %vm271_vm0, %v1255_v6  ;;  %1213 = vmatprep.mubr.msk.bf16.mxu1 %vm271_vm0, %v1271_v10 }
  0x1a   :  { %1182 = vmatmul.mubr.msk.bf16.gmra.mrb[4].mxu0 %vm271_vm0, %v1256_v7  ;;  %1214 = vmatmul.mubr.msk.bf16.gmra.mrb[4].mxu1 %vm271_vm0, %v1272_v12 }
  0x1b   :  { %1185 = vmatprep.mubr.msk.bf16.mxu0 %vm271_vm0, %v1257_v11  ;;  %1217 = vmatprep.mubr.msk.bf16.mxu1 %vm271_vm0, %v1273_v13 }
  0x22   :  { %1186 = vmatmul.mubr.msk.bf16.gmra.mrb[8].mxu0 %vm271_vm0, %v1258_v14  ;;  %1218 = vmatmul.mubr.msk.bf16.gmra.mrb[8].mxu1 %vm271_vm0, %v1274_v16 }
  0x23   :  { %1189 = vmatprep.mubr.msk.bf16.mxu0 %vm271_vm0, %v1259_v15  ;;  %1221 = vmatprep.mubr.msk.bf16.mxu1 %vm271_vm0, %v1275_v17 }
  0x2a   :  { %1190 = vmatmul.mubr.msk.bf16.gmra.mrb[12].mxu0 %vm271_vm0, %v1260_v18  ;;  %1222 = vmatmul.mubr.msk.bf16.gmra.mrb[12].mxu1 %vm271_vm0, %v1276_v20 }
  0x2b   :  { %1193 = vmatprep.mubr.msk.bf16.mxu0 %vm271_vm0, %v1261_v19  ;;  %1225 = vmatprep.mubr.msk.bf16.mxu1 %vm271_vm0, %v1277_v21 }
  0x32   :  { %1194 = vmatmul.mubr.msk.bf16.gmra.mrb[16].mxu0 %vm271_vm0, %v1262_v22  ;;  %1226 = vmatmul.mubr.msk.bf16.gmra.mrb[16].mxu1 %vm271_vm0, %v1278_v24 }
  0x33   :  { %1197 = vmatprep.mubr.msk.bf16.mxu0 %vm271_vm0, %v1263_v23  ;;  %1229 = vmatprep.mubr.msk.bf16.mxu1 %vm271_vm0, %v1279_v25 }
  0x3a   :  { %1198 = vmatmul.mubr.msk.bf16.gmra.mrb[20].mxu0 %vm271_vm0, %v1264_v26  ;;  %1230 = vmatmul.mubr.msk.bf16.gmra.mrb[20].mxu1 %vm271_vm0, %v1280_v28 }
  0x3b   :  { %1201 = vmatprep.mubr.msk.bf16.mxu0 %vm271_vm0, %v1265_v27  ;;  %1233 = vmatprep.mubr.msk.bf16.mxu1 %vm271_vm0, %v1281_v29 }
  0x42   :  { %1202 = vmatmul.mubr.msk.bf16.gmra.mrb[24].mxu0 %vm271_vm0, %v1266_v30  ;;  %1234 = vmatmul.mubr.msk.bf16.gmra.mrb[24].mxu1 %vm271_vm0, %v1282_v32 }
  0x43   :  { %1205 = vmatprep.mubr.msk.bf16.mxu0 %vm271_vm0, %v1267_v31  ;;  %1237 = vmatprep.mubr.msk.bf16.mxu1 %vm271_vm0, %v1283_v33 }
  0x4a   :  { %1206 = vmatmul.mubr.msk.bf16.gmra.mrb[28].mxu0 %vm271_vm0, %v1268_v34  ;;  %1238 = vmatmul.mubr.msk.bf16.gmra.mrb[28].mxu1 %vm271_vm0, %v1284_v35 }
  0xe5   :  { %v1179_v36 = vpop.f32.mrb[0].mxu0  ;;  %v1468_v46 = vpop.f32.mrb[0].mxu1 }
  0xe6   :  { %659 = vst.msk [vmem:[%s2036_s2 + $0x10] sm:$0xff] %vm271_vm0, %v1179_v36  ;;  %v402_v37 = vpop.f32.mrb[1].mxu0  ;;  %v856_v41 = vmul.f32 %v1179_v36, %v1179_v36  ;;  %v724_v47 = vsel %vm271_vm0, %v1179_v36, 0.0  ;;  %691 = vst.msk [vmem:[%s2036_s2 + $0x110] sm:$0xff] %vm271_vm0, %v1468_v46  ;;  %v1478_v51 = vpop.f32.mrb[1].mxu1 }
  0xe7   :  { %657 = vst.msk [vmem:[%s2036_s2] sm:$0xff] %vm271_vm0, %v402_v37  ;;  %v854_v38 = vmul.f32 %v402_v37, %v402_v37  ;;  %v1180_v39 = vpop.f32.mrb[2].mxu0  ;;  %v721_v42 = vsel %vm271_vm0, %v402_v37, 0.0  ;;  %689 = vst.msk [vmem:[%s2036_s2 + $0x100] sm:$0xff] %vm271_vm0, %v1478_v51  ;;  %v1485_v54 = vpop.f32.mrb[2].mxu1 }
  0xe8   :  { %660 = vst.msk [vmem:[%s2036_s2 + $0x18] sm:$0xff] %vm271_vm0, %v1180_v39  ;;  %v405_v40 = vpop.f32.mrb[3].mxu0  ;;  %v857_v49 = vmul.f32 %v1180_v39, %v1180_v39  ;;  %v921_v55 = vsel %vm271_vm0, %v856_v41, 0.0  ;;  %v726_v56 = vsel %vm271_vm0, %v1180_v39, 0.0  ;;  %692 = vst.msk [vmem:[%s2036_s2 + $0x118] sm:$0xff] %vm271_vm0, %v1485_v54  ;;  %v1494_v58 = vpop.f32.mrb[3].mxu1 }
  0xe9   :  { %658 = vst.msk [vmem:[%s2036_s2 + $0x8] sm:$0xff] %vm271_vm0, %v405_v40  ;;  %v722_v43 = vsel %vm271_vm0, %v405_v40, 0.0  ;;  %v855_v44 = vmul.f32 %v405_v40, %v405_v40  ;;  %v918_v48 = vsel %vm271_vm0, %v854_v38, 0.0  ;;  %690 = vst.msk [vmem:[%s2036_s2 + $0x108] sm:$0xff] %vm271_vm0, %v1494_v58 }
  0xea   :  { %v723_v45 = vadd.f32 %v722_v43, %v721_v42  ;;  %v923_v62 = vsel %vm271_vm0, %v857_v49, 0.0 }
  0xeb   :  { %v919_v50 = vsel %vm271_vm0, %v855_v44, 0.0 }
  0xec   :  { %v725_v52 = vadd.f32 %v724_v47, %v723_v45  ;;  %v920_v53 = vadd.f32 %v919_v50, %v918_v48 }
  0xed   :  { %v1183_v57 = vpop.f32.mrb[4].mxu0  ;;  %v1521_v11 = vpop.f32.mrb[4].mxu1 }
  0xee   :  { %v922_v59 = vadd.f32 %v921_v55, %v920_v53  ;;  %663 = vst.msk [vmem:[%s2036_s2 + $0x30] sm:$0xff] %vm271_vm0, %v1183_v57  ;;  %v418_v60 = vpop.f32.mrb[5].mxu0  ;;  %v727_v61 = vadd.f32 %v726_v56, %v725_v52  ;;  %v860_v5 = vmul.f32 %v1183_v57, %v1183_v57  ;;  %v732_v12 = vsel %vm271_vm0, %v1183_v57, 0.0  ;;  %695 = vst.msk [vmem:[%s2036_s2 + $0x130] sm:$0xff] %vm271_vm0, %v1521_v11  ;;  %v1530_v15 = vpop.f32.mrb[5].mxu1 }
  0xef   :  { %661 = vst.msk [vmem:[%s2036_s2 + $0x20] sm:$0xff] %vm271_vm0, %v418_v60  ;;  %v728_v63 = vsel %vm271_vm0, %v418_v60, 0.0  ;;  %v858_v0 = vmul.f32 %v418_v60, %v418_v60  ;;  %v1184_v1 = vpop.f32.mrb[6].mxu0  ;;  %693 = vst.msk [vmem:[%s2036_s2 + $0x120] sm:$0xff] %vm271_vm0, %v1530_v15  ;;  %v1537_v18 = vpop.f32.mrb[6].mxu1 }
  0xf0   :  { %v729_v2 = vadd.f32 %v728_v63, %v727_v61  ;;  %v924_v3 = vadd.f32 %v923_v62, %v922_v59  ;;  %664 = vst.msk [vmem:[%s2036_s2 + $0x38] sm:$0xff] %vm271_vm0, %v1184_v1  ;;  %v421_v4 = vpop.f32.mrb[7].mxu0  ;;  %v861_v13 = vmul.f32 %v1184_v1, %v1184_v1  ;;  %v929_v19 = vsel %vm271_vm0, %v860_v5, 0.0  ;;  %696 = vst.msk [vmem:[%s2036_s2 + $0x138] sm:$0xff] %vm271_vm0, %v1537_v18  ;;  %v1546_v22 = vpop.f32.mrb[7].mxu1 }
  0xf1   :  { %v925_v6 = vsel %vm271_vm0, %v858_v0, 0.0  ;;  %662 = vst.msk [vmem:[%s2036_s2 + $0x28] sm:$0xff] %vm271_vm0, %v421_v4  ;;  %v730_v7 = vsel %vm271_vm0, %v421_v4, 0.0  ;;  %v859_v8 = vmul.f32 %v421_v4, %v421_v4  ;;  %v734_v20 = vsel %vm271_vm0, %v1184_v1, 0.0  ;;  %694 = vst.msk [vmem:[%s2036_s2 + $0x128] sm:$0xff] %vm271_vm0, %v1546_v22 }
  0xf2   :  { %v926_v9 = vadd.f32 %v925_v6, %v924_v3  ;;  %v731_v10 = vadd.f32 %v730_v7, %v729_v2  ;;  %v931_v26 = vsel %vm271_vm0, %v861_v13, 0.0 }
  0xf3   :  { %v927_v14 = vsel %vm271_vm0, %v859_v8, 0.0 }
  0xf4   :  { %v733_v16 = vadd.f32 %v732_v12, %v731_v10  ;;  %v928_v17 = vadd.f32 %v927_v14, %v926_v9 }
  0xf5   :  { %v1187_v21 = vpop.f32.mrb[8].mxu0  ;;  %v1573_v39 = vpop.f32.mrb[8].mxu1 }
  0xf6   :  { %v930_v23 = vadd.f32 %v929_v19, %v928_v17  ;;  %667 = vst.msk [vmem:[%s2036_s2 + $0x50] sm:$0xff] %vm271_vm0, %v1187_v21  ;;  %v434_v24 = vpop.f32.mrb[9].mxu0  ;;  %v735_v25 = vadd.f32 %v734_v20, %v733_v16  ;;  %v864_v33 = vmul.f32 %v1187_v21, %v1187_v21  ;;  %v740_v40 = vsel %vm271_vm0, %v1187_v21, 0.0  ;;  %699 = vst.msk [vmem:[%s2036_s2 + $0x150] sm:$0xff] %vm271_vm0, %v1573_v39  ;;  %v1582_v43 = vpop.f32.mrb[9].mxu1 }
  0xf7   :  { %665 = vst.msk [vmem:[%s2036_s2 + $0x40] sm:$0xff] %vm271_vm0, %v434_v24  ;;  %v736_v27 = vsel %vm271_vm0, %v434_v24, 0.0  ;;  %v862_v28 = vmul.f32 %v434_v24, %v434_v24  ;;  %v1188_v29 = vpop.f32.mrb[10].mxu0  ;;  %697 = vst.msk [vmem:[%s2036_s2 + $0x140] sm:$0xff] %vm271_vm0, %v1582_v43  ;;  %v1589_v47 = vpop.f32.mrb[10].mxu1 }
  0xf8   :  { %v737_v30 = vadd.f32 %v736_v27, %v735_v25  ;;  %v932_v31 = vadd.f32 %v931_v26, %v930_v23  ;;  %668 = vst.msk [vmem:[%s2036_s2 + $0x58] sm:$0xff] %vm271_vm0, %v1188_v29  ;;  %v437_v32 = vpop.f32.mrb[11].mxu0  ;;  %v865_v41 = vmul.f32 %v1188_v29, %v1188_v29  ;;  %v937_v48 = vsel %vm271_vm0, %v864_v33, 0.0  ;;  %700 = vst.msk [vmem:[%s2036_s2 + $0x158] sm:$0xff] %vm271_vm0, %v1589_v47  ;;  %v1598_v52 = vpop.f32.mrb[11].mxu1 }
  0xf9   :  { %v933_v34 = vsel %vm271_vm0, %v862_v28, 0.0  ;;  %666 = vst.msk [vmem:[%s2036_s2 + $0x48] sm:$0xff] %vm271_vm0, %v437_v32  ;;  %v738_v35 = vsel %vm271_vm0, %v437_v32, 0.0  ;;  %v863_v36 = vmul.f32 %v437_v32, %v437_v32  ;;  %v742_v49 = vsel %vm271_vm0, %v1188_v29, 0.0  ;;  %698 = vst.msk [vmem:[%s2036_s2 + $0x148] sm:$0xff] %vm271_vm0, %v1598_v52 }
  0xfa   :  { %v934_v37 = vadd.f32 %v933_v34, %v932_v31  ;;  %v739_v38 = vadd.f32 %v738_v35, %v737_v30  ;;  %v939_v57 = vsel %vm271_vm0, %v865_v41, 0.0 }
  0xfb   :  { %v935_v42 = vsel %vm271_vm0, %v863_v36, 0.0 }
  0xfc   :  { %v741_v44 = vadd.f32 %v740_v40, %v739_v38  ;;  %v936_v45 = vadd.f32 %v935_v42, %v934_v37 }
  0xfd   :  { %v1191_v50 = vpop.f32.mrb[12].mxu0  ;;  %v1625_v7 = vpop.f32.mrb[12].mxu1 }
  0xfe   :  { %v938_v53 = vadd.f32 %v937_v48, %v936_v45  ;;  %671 = vst.msk [vmem:[%s2036_s2 + $0x70] sm:$0xff] %vm271_vm0, %v1191_v50  ;;  %v450_v55 = vpop.f32.mrb[13].mxu0  ;;  %v743_v56 = vadd.f32 %v742_v49, %v741_v44  ;;  %v868_v1 = vmul.f32 %v1191_v50, %v1191_v50  ;;  %v748_v8 = vsel %vm271_vm0, %v1191_v50, 0.0  ;;  %703 = vst.msk [vmem:[%s2036_s2 + $0x170] sm:$0xff] %vm271_vm0, %v1625_v7  ;;  %v1634_v12 = vpop.f32.mrb[13].mxu1 }
  0xff   :  { %669 = vst.msk [vmem:[%s2036_s2 + $0x60] sm:$0xff] %vm271_vm0, %v450_v55  ;;  %v744_v59 = vsel %vm271_vm0, %v450_v55, 0.0  ;;  %v866_v60 = vmul.f32 %v450_v55, %v450_v55  ;;  %v1192_v61 = vpop.f32.mrb[14].mxu0  ;;  %701 = vst.msk [vmem:[%s2036_s2 + $0x160] sm:$0xff] %vm271_vm0, %v1634_v12  ;;  %v1641_v16 = vpop.f32.mrb[14].mxu1 }
 0x100   :  { %v745_v62 = vadd.f32 %v744_v59, %v743_v56  ;;  %v940_v63 = vadd.f32 %v939_v57, %v938_v53  ;;  %672 = vst.msk [vmem:[%s2036_s2 + $0x78] sm:$0xff] %vm271_vm0, %v1192_v61  ;;  %v453_v0 = vpop.f32.mrb[15].mxu0  ;;  %v869_v9 = vmul.f32 %v1192_v61, %v1192_v61  ;;  %v945_v17 = vsel %vm271_vm0, %v868_v1, 0.0  ;;  %704 = vst.msk [vmem:[%s2036_s2 + $0x178] sm:$0xff] %vm271_vm0, %v1641_v16  ;;  %v1650_v21 = vpop.f32.mrb[15].mxu1 }
 0x101   :  { %v941_v2 = vsel %vm271_vm0, %v866_v60, 0.0  ;;  %670 = vst.msk [vmem:[%s2036_s2 + $0x68] sm:$0xff] %vm271_vm0, %v453_v0  ;;  %v746_v3 = vsel %vm271_vm0, %v453_v0, 0.0  ;;  %v867_v4 = vmul.f32 %v453_v0, %v453_v0  ;;  %v750_v19 = vsel %vm271_vm0, %v1192_v61, 0.0  ;;  %702 = vst.msk [vmem:[%s2036_s2 + $0x168] sm:$0xff] %vm271_vm0, %v1650_v21 }
 0x102   :  { %v942_v5 = vadd.f32 %v941_v2, %v940_v63  ;;  %v747_v6 = vadd.f32 %v746_v3, %v745_v62  ;;  %v947_v26 = vsel %vm271_vm0, %v869_v9, 0.0 }
 0x103   :  { %v943_v10 = vsel %vm271_vm0, %v867_v4, 0.0 }
 0x104   :  { %v749_v13 = vadd.f32 %v748_v8, %v747_v6  ;;  %v944_v14 = vadd.f32 %v943_v10, %v942_v5 }
 0x105   :  { %v1195_v20 = vpop.f32.mrb[16].mxu0  ;;  %v1677_v40 = vpop.f32.mrb[16].mxu1 }
 0x106   :  { %v946_v23 = vadd.f32 %v945_v17, %v944_v14  ;;  %675 = vst.msk [vmem:[%s2036_s2 + $0x90] sm:$0xff] %vm271_vm0, %v1195_v20  ;;  %v466_v24 = vpop.f32.mrb[17].mxu0  ;;  %v751_v25 = vadd.f32 %v750_v19, %v749_v13  ;;  %v872_v33 = vmul.f32 %v1195_v20, %v1195_v20  ;;  %v756_v41 = vsel %vm271_vm0, %v1195_v20, 0.0  ;;  %707 = vst.msk [vmem:[%s2036_s2 + $0x190] sm:$0xff] %vm271_vm0, %v1677_v40  ;;  %v1686_v45 = vpop.f32.mrb[17].mxu1 }
 0x107   :  { %673 = vst.msk [vmem:[%s2036_s2 + $0x80] sm:$0xff] %vm271_vm0, %v466_v24  ;;  %v752_v27 = vsel %vm271_vm0, %v466_v24, 0.0  ;;  %v870_v28 = vmul.f32 %v466_v24, %v466_v24  ;;  %v1196_v29 = vpop.f32.mrb[18].mxu0  ;;  %705 = vst.msk [vmem:[%s2036_s2 + $0x180] sm:$0xff] %vm271_vm0, %v1686_v45  ;;  %v1693_v50 = vpop.f32.mrb[18].mxu1 }
 0x108   :  { %v753_v30 = vadd.f32 %v752_v27, %v751_v25  ;;  %v948_v31 = vadd.f32 %v947_v26, %v946_v23  ;;  %676 = vst.msk [vmem:[%s2036_s2 + $0x98] sm:$0xff] %vm271_vm0, %v1196_v29  ;;  %v469_v32 = vpop.f32.mrb[19].mxu0  ;;  %v873_v42 = vmul.f32 %v1196_v29, %v1196_v29  ;;  %v953_v53 = vsel %vm271_vm0, %v872_v33, 0.0  ;;  %708 = vst.msk [vmem:[%s2036_s2 + $0x198] sm:$0xff] %vm271_vm0, %v1693_v50  ;;  %v1702_v57 = vpop.f32.mrb[19].mxu1 }
 0x109   :  { %v949_v34 = vsel %vm271_vm0, %v870_v28, 0.0  ;;  %674 = vst.msk [vmem:[%s2036_s2 + $0x88] sm:$0xff] %vm271_vm0, %v469_v32  ;;  %v754_v35 = vsel %vm271_vm0, %v469_v32, 0.0  ;;  %v871_v36 = vmul.f32 %v469_v32, %v469_v32  ;;  %v758_v55 = vsel %vm271_vm0, %v1196_v29, 0.0  ;;  %706 = vst.msk [vmem:[%s2036_s2 + $0x188] sm:$0xff] %vm271_vm0, %v1702_v57 }
 0x10a   :  { %v950_v37 = vadd.f32 %v949_v34, %v948_v31  ;;  %v755_v38 = vadd.f32 %v754_v35, %v753_v30  ;;  %v955_v62 = vsel %vm271_vm0, %v873_v42, 0.0 }
 0x10b   :  { %v951_v44 = vsel %vm271_vm0, %v871_v36, 0.0 }
 0x10c   :  { %v757_v48 = vadd.f32 %v756_v41, %v755_v38  ;;  %v952_v49 = vadd.f32 %v951_v44, %v950_v37 }
 0x10d   :  { %v1199_v56 = vpop.f32.mrb[20].mxu0  ;;  %v1729_v14 = vpop.f32.mrb[20].mxu1 }
 0x10e   :  { %v954_v59 = vadd.f32 %v953_v53, %v952_v49  ;;  %679 = vst.msk [vmem:[%s2036_s2 + $0xb0] sm:$0xff] %vm271_vm0, %v1199_v56  ;;  %v482_v60 = vpop.f32.mrb[21].mxu0  ;;  %v759_v61 = vadd.f32 %v758_v55, %v757_v48  ;;  %v876_v5 = vmul.f32 %v1199_v56, %v1199_v56  ;;  %v764_v17 = vsel %vm271_vm0, %v1199_v56, 0.0  ;;  %711 = vst.msk [vmem:[%s2036_s2 + $0x1b0] sm:$0xff] %vm271_vm0, %v1729_v14  ;;  %v1738_v23 = vpop.f32.mrb[21].mxu1 }
 0x10f   :  { %677 = vst.msk [vmem:[%s2036_s2 + $0xa0] sm:$0xff] %vm271_vm0, %v482_v60  ;;  %v760_v63 = vsel %vm271_vm0, %v482_v60, 0.0  ;;  %v874_v0 = vmul.f32 %v482_v60, %v482_v60  ;;  %v1200_v1 = vpop.f32.mrb[22].mxu0  ;;  %709 = vst.msk [vmem:[%s2036_s2 + $0x1a0] sm:$0xff] %vm271_vm0, %v1738_v23  ;;  %v1745_v26 = vpop.f32.mrb[22].mxu1 }
 0x110   :  { %v761_v2 = vadd.f32 %v760_v63, %v759_v61  ;;  %v956_v3 = vadd.f32 %v955_v62, %v954_v59  ;;  %680 = vst.msk [vmem:[%s2036_s2 + $0xb8] sm:$0xff] %vm271_vm0, %v1200_v1  ;;  %v485_v4 = vpop.f32.mrb[23].mxu0  ;;  %v877_v19 = vmul.f32 %v1200_v1, %v1200_v1  ;;  %v961_v27 = vsel %vm271_vm0, %v876_v5, 0.0  ;;  %712 = vst.msk [vmem:[%s2036_s2 + $0x1b8] sm:$0xff] %vm271_vm0, %v1745_v26  ;;  %v1754_v30 = vpop.f32.mrb[23].mxu1 }
 0x111   :  { %v957_v6 = vsel %vm271_vm0, %v874_v0, 0.0  ;;  %678 = vst.msk [vmem:[%s2036_s2 + $0xa8] sm:$0xff] %vm271_vm0, %v485_v4  ;;  %v762_v8 = vsel %vm271_vm0, %v485_v4, 0.0  ;;  %v875_v9 = vmul.f32 %v485_v4, %v485_v4  ;;  %v766_v28 = vsel %vm271_vm0, %v1200_v1, 0.0  ;;  %710 = vst.msk [vmem:[%s2036_s2 + $0x1a8] sm:$0xff] %vm271_vm0, %v1754_v30 }
 0x112   :  { %v958_v10 = vadd.f32 %v957_v6, %v956_v3  ;;  %v763_v13 = vadd.f32 %v762_v8, %v761_v2  ;;  %v963_v34 = vsel %vm271_vm0, %v877_v19, 0.0 }
 0x113   :  { %v959_v20 = vsel %vm271_vm0, %v875_v9, 0.0 }
 0x114   :  { %v765_v24 = vadd.f32 %v764_v17, %v763_v13  ;;  %v960_v25 = vadd.f32 %v959_v20, %v958_v10 }
 0x115   :  { %v1203_v29 = vpop.f32.mrb[24].mxu0  ;;  %v1781_v59 = vpop.f32.mrb[24].mxu1 }
 0x116   :  { %v962_v31 = vadd.f32 %v961_v27, %v960_v25  ;;  %683 = vst.msk [vmem:[%s2036_s2 + $0xd0] sm:$0xff] %vm271_vm0, %v1203_v29  ;;  %v498_v32 = vpop.f32.mrb[25].mxu0  ;;  %v767_v33 = vadd.f32 %v766_v28, %v765_v24  ;;  %v880_v44 = vmul.f32 %v1203_v29, %v1203_v29  ;;  %v772_v60 = vsel %vm271_vm0, %v1203_v29, 0.0  ;;  %715 = vst.msk [vmem:[%s2036_s2 + $0x1d0] sm:$0xff] %vm271_vm0, %v1781_v59  ;;  %v1790_v63 = vpop.f32.mrb[25].mxu1 }
 0x117   :  { %681 = vst.msk [vmem:[%s2036_s2 + $0xc0] sm:$0xff] %vm271_vm0, %v498_v32  ;;  %v768_v35 = vsel %vm271_vm0, %v498_v32, 0.0  ;;  %v878_v36 = vmul.f32 %v498_v32, %v498_v32  ;;  %v1204_v37 = vpop.f32.mrb[26].mxu0  ;;  %713 = vst.msk [vmem:[%s2036_s2 + $0x1c0] sm:$0xff] %vm271_vm0, %v1790_v63  ;;  %v1797_v2 = vpop.f32.mrb[26].mxu1 }
 0x118   :  { %v769_v38 = vadd.f32 %v768_v35, %v767_v33  ;;  %v964_v41 = vadd.f32 %v963_v34, %v962_v31  ;;  %684 = vst.msk [vmem:[%s2036_s2 + $0xd8] sm:$0xff] %vm271_vm0, %v1204_v37  ;;  %v501_v42 = vpop.f32.mrb[27].mxu0  ;;  %v881_v61 = vmul.f32 %v1204_v37, %v1204_v37  ;;  %v969_v3 = vsel %vm271_vm0, %v880_v44, 0.0  ;;  %716 = vst.msk [vmem:[%s2036_s2 + $0x1d8] sm:$0xff] %vm271_vm0, %v1797_v2  ;;  %v1806_v6 = vpop.f32.mrb[27].mxu1 }
 0x119   :  { %v965_v48 = vsel %vm271_vm0, %v878_v36, 0.0  ;;  %682 = vst.msk [vmem:[%s2036_s2 + $0xc8] sm:$0xff] %vm271_vm0, %v501_v42  ;;  %v770_v49 = vsel %vm271_vm0, %v501_v42, 0.0  ;;  %v879_v53 = vmul.f32 %v501_v42, %v501_v42  ;;  %v774_v4 = vsel %vm271_vm0, %v1204_v37, 0.0  ;;  %714 = vst.msk [vmem:[%s2036_s2 + $0x1c8] sm:$0xff] %vm271_vm0, %v1806_v6 }
 0x11a   :  { %v966_v55 = vadd.f32 %v965_v48, %v964_v41  ;;  %v771_v56 = vadd.f32 %v770_v49, %v769_v38  ;;  %v971_v13 = vsel %vm271_vm0, %v881_v61, 0.0  ;;  %v886_v41 = vmul.f32 %v1478_v51, %v1478_v51 }
 0x11b   :  { %v967_v62 = vsel %vm271_vm0, %v879_v53, 0.0 }
 0x11c   :  { %v773_v0 = vadd.f32 %v772_v60, %v771_v56  ;;  %v968_v1 = vadd.f32 %v967_v62, %v966_v55  ;;  %v784_v56 = vsel %vm271_vm0, %v1478_v51, 0.0  ;;  %v981_v51 = vsel %vm271_vm0, %v886_v41, 0.0 }
 0x11d   :  { %v1207_v5 = vpop.f32.mrb[28].mxu0  ;;  %v1833_v35 = vpop.f32.mrb[28].mxu1 }
 0x11e   :  { %v970_v8 = vadd.f32 %v969_v3, %v968_v1  ;;  %687 = vst.msk [vmem:[%s2036_s2 + $0xf0] sm:$0xff] %vm271_vm0, %v1207_v5  ;;  %v514_v9 = vpop.f32.mrb[29].mxu0  ;;  %v775_v10 = vadd.f32 %v774_v4, %v773_v0  ;;  %v884_v28 = vmul.f32 %v1207_v5, %v1207_v5  ;;  %v780_v36 = vsel %vm271_vm0, %v1207_v5, 0.0  ;;  %719 = vst.msk [vmem:[%s2036_s2 + $0x1f0] sm:$0xff] %vm271_vm0, %v1833_v35  ;;  %v1844_v42 = vpop.f32.mrb[29].mxu1 }
 0x11f   :  { %685 = vst.msk [vmem:[%s2036_s2 + $0xe0] sm:$0xff] %vm271_vm0, %v514_v9  ;;  %v776_v17 = vsel %vm271_vm0, %v514_v9, 0.0  ;;  %v882_v19 = vmul.f32 %v514_v9, %v514_v9  ;;  %v1208_v20 = vpop.f32.mrb[30].mxu0  ;;  %717 = vst.msk [vmem:[%s2036_s2 + $0x1e0] sm:$0xff] %vm271_vm0, %v1844_v42  ;;  %v1851_v49 = vpop.f32.mrb[30].mxu1  ;;  %v887_v1 = vmul.f32 %v1494_v58, %v1494_v58  ;;  %v888_v5 = vmul.f32 %v1468_v46, %v1468_v46 }
 0x120   :  { %v777_v24 = vadd.f32 %v776_v17, %v775_v10  ;;  %v972_v25 = vadd.f32 %v971_v13, %v970_v8  ;;  %688 = vst.msk [vmem:[%s2036_s2 + $0xf8] sm:$0xff] %vm271_vm0, %v1208_v20  ;;  %v517_v27 = vpop.f32.mrb[31].mxu0  ;;  %v885_v37 = vmul.f32 %v1208_v20, %v1208_v20  ;;  %v977_v53 = vsel %vm271_vm0, %v884_v28, 0.0  ;;  %720 = vst.msk [vmem:[%s2036_s2 + $0x1f8] sm:$0xff] %vm271_vm0, %v1851_v49  ;;  %v1862_v60 = vpop.f32.mrb[31].mxu1 }
 0x121   :  { %v973_v29 = vsel %vm271_vm0, %v882_v19, 0.0  ;;  %686 = vst.msk [vmem:[%s2036_s2 + $0xe8] sm:$0xff] %vm271_vm0, %v517_v27  ;;  %v778_v31 = vsel %vm271_vm0, %v517_v27, 0.0  ;;  %v883_v32 = vmul.f32 %v517_v27, %v517_v27  ;;  %v782_v55 = vsel %vm271_vm0, %v1208_v20, 0.0  ;;  %718 = vst.msk [vmem:[%s2036_s2 + $0x1e8] sm:$0xff] %vm271_vm0, %v1862_v60 }
 0x122   :  { %v974_v33 = vadd.f32 %v973_v29, %v972_v25  ;;  %v779_v34 = vadd.f32 %v778_v31, %v777_v24  ;;  %v979_v0 = vsel %vm271_vm0, %v885_v37, 0.0  ;;  %v786_v8 = vsel %vm271_vm0, %v1494_v58, 0.0 }
 0x123   :  { %v975_v38 = vsel %vm271_vm0, %v883_v32, 0.0  ;;  %v788_v13 = vsel %vm271_vm0, %v1468_v46, 0.0  ;;  %v889_v17 = vmul.f32 %v1485_v54, %v1485_v54  ;;  %v983_v19 = vsel %vm271_vm0, %v887_v1, 0.0 }
 0x124   :  { %v781_v44 = vadd.f32 %v780_v36, %v779_v34  ;;  %v976_v48 = vadd.f32 %v975_v38, %v974_v33  ;;  %v890_v20 = vmul.f32 %v1530_v15, %v1530_v15  ;;  %v985_v27 = vsel %vm271_vm0, %v888_v5, 0.0 }
 0x125   :  { %v790_v58 = vsel %vm271_vm0, %v1485_v54, 0.0  ;;  %v792_v28 = vsel %vm271_vm0, %v1530_v15, 0.0  ;;  %v987_v31 = vsel %vm271_vm0, %v889_v17, 0.0  ;;  %v891_v33 = vmul.f32 %v1546_v22, %v1546_v22 }
 0x126   :  { %v978_v61 = vadd.f32 %v977_v53, %v976_v48  ;;  %v783_v62 = vadd.f32 %v782_v55, %v781_v44  ;;  %v989_v32 = vsel %vm271_vm0, %v890_v20, 0.0  ;;  %v892_v37 = vmul.f32 %v1521_v11, %v1521_v11 }
 0x127   :  { %v794_v54 = vsel %vm271_vm0, %v1546_v22, 0.0  ;;  %v796_v15 = vsel %vm271_vm0, %v1521_v11, 0.0  ;;  %v893_v44 = vmul.f32 %v1537_v18, %v1537_v18  ;;  %v991_v48 = vsel %vm271_vm0, %v891_v33, 0.0 }
 0x128   :  { %v785_v3 = vadd.f32 %v784_v56, %v783_v62  ;;  %v980_v4 = vadd.f32 %v979_v0, %v978_v61  ;;  %v894_v53 = vmul.f32 %v1582_v43, %v1582_v43  ;;  %v993_v61 = vsel %vm271_vm0, %v892_v37, 0.0 }
 0x129   :  { %v798_v22 = vsel %vm271_vm0, %v1537_v18, 0.0  ;;  %v800_v62 = vsel %vm271_vm0, %v1582_v43, 0.0  ;;  %v802_v18 = vsel %vm271_vm0, %v1598_v52, 0.0  ;;  %v804_v43 = vsel %vm271_vm0, %v1573_v39, 0.0 }
 0x12a   :  { %v982_v9 = vadd.f32 %v981_v51, %v980_v4  ;;  %v787_v10 = vadd.f32 %v786_v8, %v785_v3  ;;  %v995_v51 = vsel %vm271_vm0, %v893_v44, 0.0  ;;  %v997_v1 = vsel %vm271_vm0, %v894_v53, 0.0 }
 0x12b   :  { %v895_v3 = vmul.f32 %v1598_v52, %v1598_v52  ;;  %v896_v8 = vmul.f32 %v1573_v39, %v1573_v39  ;;  %v806_v52 = vsel %vm271_vm0, %v1589_v47, 0.0  ;;  %v900_v33 = vmul.f32 %v1625_v7, %v1625_v7 }
 0x12c   :  { %v789_v24 = vadd.f32 %v788_v13, %v787_v10  ;;  %v984_v25 = vadd.f32 %v983_v19, %v982_v9  ;;  %v897_v13 = vmul.f32 %v1589_v47, %v1589_v47  ;;  %v898_v19 = vmul.f32 %v1634_v12, %v1634_v12 }
 0x12d   :  { %v999_v17 = vsel %vm271_vm0, %v895_v3, 0.0  ;;  %v810_v47 = vsel %vm271_vm0, %v1650_v21, 0.0  ;;  %v901_v37 = vmul.f32 %v1641_v16, %v1641_v16  ;;  %v1009_v44 = vsel %vm271_vm0, %v900_v33, 0.0 }
 0x12e   :  { %v986_v29 = vadd.f32 %v985_v27, %v984_v25  ;;  %v791_v46 = vadd.f32 %v790_v58, %v789_v24  ;;  %v1001_v25 = vsel %vm271_vm0, %v896_v8, 0.0  ;;  %v808_v27 = vsel %vm271_vm0, %v1634_v12, 0.0 }
 0x12f   :  { %v812_v12 = vsel %vm271_vm0, %v1625_v7, 0.0 }
 0x130   :  { %v793_v34 = vadd.f32 %v792_v28, %v791_v46  ;;  %v988_v36 = vadd.f32 %v987_v31, %v986_v29  ;;  %v1003_v28 = vsel %vm271_vm0, %v897_v13, 0.0  ;;  %v1005_v29 = vsel %vm271_vm0, %v898_v19, 0.0 }
 0x131   :  { %v899_v46 = vmul.f32 %v1650_v21, %v1650_v21  ;;  %v814_v21 = vsel %vm271_vm0, %v1641_v16, 0.0  ;;  %v818_v16 = vsel %vm271_vm0, %v1702_v57, 0.0 }
 0x132   :  { %v990_v38 = vadd.f32 %v989_v32, %v988_v36  ;;  %v795_v41 = vadd.f32 %v794_v54, %v793_v34 }
 0x133   :  { %v1007_v54 = vsel %vm271_vm0, %v899_v46, 0.0 }
 0x134   :  { %v797_v55 = vadd.f32 %v796_v15, %v795_v41  ;;  %v992_v56 = vadd.f32 %v991_v48, %v990_v38  ;;  %v902_v38 = vmul.f32 %v1686_v45, %v1686_v45  ;;  %v816_v48 = vsel %vm271_vm0, %v1686_v45, 0.0 }
 0x135   :  { %v820_v45 = vsel %vm271_vm0, %v1677_v40, 0.0 }
 0x136   :  { %v994_v0 = vadd.f32 %v993_v61, %v992_v56  ;;  %v799_v11 = vadd.f32 %v798_v22, %v797_v55  ;;  %v1011_v55 = vsel %vm271_vm0, %v901_v37, 0.0  ;;  %v1013_v56 = vsel %vm271_vm0, %v902_v38, 0.0 }
 0x137   :  { %v903_v61 = vmul.f32 %v1702_v57, %v1702_v57  ;;  %v822_v57 = vsel %vm271_vm0, %v1693_v50, 0.0  ;;  %v912_v37 = vmul.f32 %v1781_v59, %v1781_v59 }
 0x138   :  { %v801_v4 = vadd.f32 %v800_v62, %v799_v11  ;;  %v996_v5 = vadd.f32 %v995_v51, %v994_v0  ;;  %v904_v0 = vmul.f32 %v1677_v40, %v1677_v40 }
 0x139   :  { %v1015_v3 = vsel %vm271_vm0, %v903_v61, 0.0 }
 0x13a   :  { %v998_v9 = vadd.f32 %v997_v1, %v996_v5  ;;  %v803_v10 = vadd.f32 %v802_v18, %v801_v4  ;;  %v905_v1 = vmul.f32 %v1693_v50, %v1693_v50  ;;  %v906_v4 = vmul.f32 %v1738_v23, %v1738_v23 }
 0x13b   :  { %v1017_v18 = vsel %vm271_vm0, %v904_v0, 0.0  ;;  %v826_v50 = vsel %vm271_vm0, %v1754_v30, 0.0 }
 0x13c   :  { %v805_v20 = vadd.f32 %v804_v43, %v803_v10  ;;  %v1000_v24 = vadd.f32 %v999_v17, %v998_v9  ;;  %v824_v9 = vsel %vm271_vm0, %v1738_v23, 0.0  ;;  %v1019_v43 = vsel %vm271_vm0, %v905_v1, 0.0 }
 0x13d   :  { %v1021_v13 = vsel %vm271_vm0, %v906_v4, 0.0  ;;  %v907_v17 = vmul.f32 %v1754_v30, %v1754_v30  ;;  %v828_v23 = vsel %vm271_vm0, %v1729_v14, 0.0  ;;  %v830_v30 = vsel %vm271_vm0, %v1745_v26, 0.0 }
 0x13e   :  { %v1002_v58 = vadd.f32 %v1001_v25, %v1000_v24  ;;  %v807_v39 = vadd.f32 %v806_v52, %v805_v20  ;;  %v908_v24 = vmul.f32 %v1729_v14, %v1729_v14 }
 0x140   :  { %v809_v31 = vadd.f32 %v808_v27, %v807_v39  ;;  %v1004_v32 = vadd.f32 %v1003_v28, %v1002_v58  ;;  %v909_v27 = vmul.f32 %v1745_v26, %v1745_v26  ;;  %v1023_v58 = vsel %vm271_vm0, %v907_v17, 0.0 }
 0x141   :  { %v910_v39 = vmul.f32 %v1790_v63, %v1790_v63  ;;  %v1025_v46 = vsel %vm271_vm0, %v908_v24, 0.0  ;;  %v834_v26 = vsel %vm271_vm0, %v1806_v6, 0.0 }
 0x142   :  { %v1006_v34 = vadd.f32 %v1005_v29, %v1004_v32  ;;  %v811_v36 = vadd.f32 %v810_v47, %v809_v31  ;;  %v832_v31 = vsel %vm271_vm0, %v1790_v63, 0.0  ;;  %v1027_v33 = vsel %vm271_vm0, %v909_v27, 0.0 }
 0x143   :  { %v1029_v47 = vsel %vm271_vm0, %v910_v39, 0.0  ;;  %v836_v63 = vsel %vm271_vm0, %v1781_v59, 0.0 }
 0x144   :  { %v813_v41 = vadd.f32 %v812_v12, %v811_v36  ;;  %v1008_v15 = vadd.f32 %v1007_v54, %v1006_v34  ;;  %v911_v34 = vmul.f32 %v1806_v6, %v1806_v6  ;;  %v838_v6 = vsel %vm271_vm0, %v1797_v2, 0.0 }
 0x146   :  { %v1010_v53 = vadd.f32 %v1009_v44, %v1008_v15  ;;  %v815_v7 = vadd.f32 %v814_v21, %v813_v41  ;;  %v913_v41 = vmul.f32 %v1797_v2, %v1797_v2  ;;  %v1031_v15 = vsel %vm271_vm0, %v911_v34, 0.0 }
 0x147   :  { %v914_v44 = vmul.f32 %v1844_v42, %v1844_v42  ;;  %v842_v2 = vsel %vm271_vm0, %v1862_v60, 0.0 }
 0x148   :  { %v817_v22 = vadd.f32 %v816_v48, %v815_v7  ;;  %v1012_v62 = vadd.f32 %v1011_v55, %v1010_v53  ;;  %v1033_v53 = vsel %vm271_vm0, %v912_v37, 0.0  ;;  %v840_v7 = vsel %vm271_vm0, %v1844_v42, 0.0 }
 0x149   :  { %v1037_v61 = vsel %vm271_vm0, %v914_v44, 0.0  ;;  %v844_v42 = vsel %vm271_vm0, %v1833_v35, 0.0 }
 0x14a   :  { %v1014_v11 = vadd.f32 %v1013_v56, %v1012_v62  ;;  %v819_v51 = vadd.f32 %v818_v16, %v817_v22  ;;  %v1035_v56 = vsel %vm271_vm0, %v913_v41, 0.0  ;;  %v915_v22 = vmul.f32 %v1862_v60, %v1862_v60 }
 0x14b   :  { %v916_v16 = vmul.f32 %v1833_v35, %v1833_v35 }
 0x14c   :  { %v821_v5 = vadd.f32 %v820_v45, %v819_v51  ;;  %v1016_v8 = vadd.f32 %v1015_v3, %v1014_v11  ;;  %v917_v45 = vmul.f32 %v1851_v49, %v1851_v49  ;;  %v1039_v1 = vsel %vm271_vm0, %v915_v22, 0.0 }
 0x14e   :  { %v1018_v10 = vadd.f32 %v1017_v18, %v1016_v8  ;;  %v823_v40 = vadd.f32 %v822_v57, %v821_v5  ;;  %v1041_v5 = vsel %vm271_vm0, %v916_v16, 0.0  ;;  %v846_v8 = vsel %vm271_vm0, %v1851_v49, 0.0 }
 0x14f   :  { %v1043_v60 = vsel %vm271_vm0, %v917_v45, 0.0 }
 0x150   :  { %v825_v19 = vadd.f32 %v824_v9, %v823_v40  ;;  %v1020_v20 = vadd.f32 %v1019_v43, %v1018_v10 }
 0x152   :  { %v1022_v25 = vadd.f32 %v1021_v13, %v1020_v20  ;;  %v827_v52 = vadd.f32 %v826_v50, %v825_v19 }
 0x154   :  { %v829_v28 = vadd.f32 %v828_v23, %v827_v52  ;;  %v1024_v29 = vadd.f32 %v1023_v58, %v1022_v25 }
 0x156   :  { %v1026_v32 = vadd.f32 %v1025_v46, %v1024_v29  ;;  %v831_v14 = vadd.f32 %v830_v30, %v829_v28 }
 0x158   :  { %v833_v36 = vadd.f32 %v832_v31, %v831_v14  ;;  %v1028_v12 = vadd.f32 %v1027_v33, %v1026_v32 }
 0x15a   :  { %v1030_v54 = vadd.f32 %v1029_v47, %v1028_v12  ;;  %v835_v38 = vadd.f32 %v834_v26, %v833_v36 }
 0x15c   :  { %v837_v21 = vadd.f32 %v836_v63, %v835_v38  ;;  %v1032_v48 = vadd.f32 %v1031_v15, %v1030_v54 }
 0x15e   :  { %v1034_v55 = vadd.f32 %v1033_v53, %v1032_v48  ;;  %v839_v59 = vadd.f32 %v838_v6, %v837_v21 }
 0x160   :  { %v841_v62 = vadd.f32 %v840_v7, %v839_v59  ;;  %v1036_v0 = vadd.f32 %v1035_v56, %v1034_v55 }
 0x162   :  { %v1038_v11 = vadd.f32 %v1037_v61, %v1036_v0  ;;  %v843_v51 = vadd.f32 %v842_v2, %v841_v62 }
 0x164   :  { %v845_v3 = vadd.f32 %v844_v42, %v843_v51  ;;  %v1040_v4 = vadd.f32 %v1039_v1, %v1038_v11 }
 0x166   :  { %v847_v18 = vadd.f32 %v846_v8, %v845_v3  ;;  %v1042_v57 = vadd.f32 %v1041_v5, %v1040_v4 }
 0x168   :  { %v848_v9 = vrot.slane %v847_v18, 4  ;;  %v1044_v10 = vadd.f32 %v1043_v60, %v1042_v57 }
 0x16a   :  { %v849_v40 = vadd.f32 %v848_v9, %v847_v18  ;;  %v1045_v35 = vrot.slane %v1044_v10, 4 }
 0x16c   :  { %v850_v43 = vrot.slane %v849_v40, 2  ;;  %v1046_v13 = vadd.f32 %v1045_v35, %v1044_v10 }
 0x16e   :  { %v851_v17 = vadd.f32 %v850_v43, %v849_v40  ;;  %v1047_v19 = vrot.slane %v1046_v13, 2 }
 0x170   :  { %v852_v20 = vrot.slane %v851_v17, 1  ;;  %v1048_v24 = vadd.f32 %v1047_v19, %v1046_v13 }
 0x172   :  { %v853_v50 = vadd.f32 %v852_v20, %v851_v17  ;;  %v1049_v25 = vrot.slane %v1048_v24, 1 }
 0x174   :  { %v1050_v52 = vadd.f32 %v1049_v25, %v1048_v24  ;;  %1051 = vst.msk [vmem:[%s2037_s3] sm:$0xff] %vm271_vm0, %v853_v50 }
 0x176   :  { %1052 = vst.msk [vmem:[%s2038_s4] sm:$0xff] %vm271_vm0, %v1050_v52 }

// kernel: decoder_block.9
= control target key start
LH: loop header
LB: loop body
LE: loop exit
PB: predicated region body
PF: predicated region fallthrough
CT: control target
= control target key end

     0   :  { %s896_s0 = inlined_call_operand.vmem [shape: f32[512,128], index: 0, kind: input, shape index: {}]   ;;  %s897_s1 = inlined_call_operand.vmem [shape: f32[1,128], index: 1, kind: input, shape index: {}]   ;;  %s898_s2 = inlined_call_operand.vmem [shape: f32[1,128], index: 2, kind: input, shape index: {}]   ;;  %s899_s3 = inlined_call_operand.vmem [shape: f32[512,128], index: 3, kind: output, shape index: {}]  }
   0x1   :  { %v14_v0 = vld [vmem:[%s896_s0] sm:$0xff]  ;;  %v15_v4 = vld [vmem:[%s896_s0 + $0x8] sm:$0xff]  ;;  %v16_v5 = vld [vmem:[%s896_s0 + $0x10] sm:$0xff] }
   0x2   :  { %v380_v1 = vld [vmem:[%s897_s1] ss:$0 sm:$0xff]  ;;  %v17_v6 = vld [vmem:[%s896_s0 + $0x18] sm:$0xff]  ;;  %v19_v11 = vld [vmem:[%s896_s0 + $0x28] sm:$0xff] }
   0x3   :  { %v385_v2 = vld [vmem:[%s898_s2] ss:$0 sm:$0xff]  ;;  %v85_v3 = vmul.f32 %v380_v1, %v14_v0  ;;  %v86_v7 = vmul.f32 %v380_v1, %v15_v4  ;;  %v87_v8 = vmul.f32 %v380_v1, %v16_v5  ;;  %v88_v9 = vmul.f32 %v380_v1, %v17_v6  ;;  %v20_v12 = vld [vmem:[%s896_s0 + $0x30] sm:$0xff]  ;;  %v21_v17 = vld [vmem:[%s896_s0 + $0x38] sm:$0xff] }
   0x4   :  { %v18_v10 = vld [vmem:[%s896_s0 + $0x20] sm:$0xff]  ;;  %v90_v15 = vmul.f32 %v380_v1, %v19_v11  ;;  %v91_v16 = vmul.f32 %v380_v1, %v20_v12  ;;  %v92_v21 = vmul.f32 %v380_v1, %v21_v17  ;;  %v23_v27 = vld [vmem:[%s896_s0 + $0x48] sm:$0xff]  ;;  %v24_v28 = vld [vmem:[%s896_s0 + $0x50] sm:$0xff] }
   0x5   :  { %v156_v13 = vadd.f32 %v385_v2, %v85_v3  ;;  %v89_v14 = vmul.f32 %v380_v1, %v18_v10  ;;  %v157_v18 = vadd.f32 %v385_v2, %v86_v7  ;;  %v158_v19 = vadd.f32 %v385_v2, %v87_v8  ;;  %v22_v22 = vld [vmem:[%s896_s0 + $0x40] sm:$0xff]  ;;  %v25_v29 = vld [vmem:[%s896_s0 + $0x58] sm:$0xff]  ;;  %v27_v35 = vld [vmem:[%s896_s0 + $0x68] sm:$0xff] }
   0x6   :  { %v159_v20 = vadd.f32 %v385_v2, %v88_v9  ;;  %v161_v25 = vadd.f32 %v385_v2, %v90_v15  ;;  %v162_v26 = vadd.f32 %v385_v2, %v91_v16  ;;  %v163_v33 = vadd.f32 %v385_v2, %v92_v21  ;;  %v26_v34 = vld [vmem:[%s896_s0 + $0x60] sm:$0xff]  ;;  %v28_v36 = vld [vmem:[%s896_s0 + $0x70] sm:$0xff]  ;;  %v29_v41 = vld [vmem:[%s896_s0 + $0x78] sm:$0xff] }
   0x7   :  { %v220_v23 = vmax.f32 %v156_v13, 0.0  ;;  %v160_v24 = vadd.f32 %v385_v2, %v89_v14  ;;  %v221_v30 = vmax.f32 %v157_v18, 0.0  ;;  %v222_v31 = vmax.f32 %v158_v19, 0.0  ;;  %v30_v54 = vld [vmem:[%s896_s0 + $0x80] sm:$0xff]  ;;  %v31_v59 = vld [vmem:[%s896_s0 + $0x88] sm:$0xff]  ;;  %v32_v60 = vld [vmem:[%s896_s0 + $0x90] sm:$0xff] }
   0x8   :  { %v223_v32 = vmax.f32 %v159_v20, 0.0  ;;  %v225_v38 = vmax.f32 %v161_v25, 0.0  ;;  %v226_v39 = vmax.f32 %v162_v26, 0.0  ;;  %v93_v40 = vmul.f32 %v380_v1, %v22_v22  ;;  %v33_v61 = vld [vmem:[%s896_s0 + $0x98] sm:$0xff]  ;;  %v34_v4 = vld [vmem:[%s896_s0 + $0xa0] sm:$0xff]  ;;  %v35_v5 = vld [vmem:[%s896_s0 + $0xa8] sm:$0xff] }
   0x9   :  { %284 = vst [vmem:[%s899_s3] sm:$0xff] %v220_v23  ;;  %v224_v37 = vmax.f32 %v160_v24, 0.0  ;;  %285 = vst [vmem:[%s899_s3 + $0x8] sm:$0xff] %v221_v30  ;;  %v227_v42 = vmax.f32 %v163_v33, 0.0  ;;  %v94_v43 = vmul.f32 %v380_v1, %v23_v27  ;;  %v95_v44 = vmul.f32 %v380_v1, %v24_v28  ;;  %v36_v6 = vld [vmem:[%s896_s0 + $0xb0] sm:$0xff]  ;;  %v37_v11 = vld [vmem:[%s896_s0 + $0xb8] sm:$0xff] }
   0xa   :  { %286 = vst [vmem:[%s899_s3 + $0x10] sm:$0xff] %v222_v31  ;;  %287 = vst [vmem:[%s899_s3 + $0x18] sm:$0xff] %v223_v32  ;;  %v96_v45 = vmul.f32 %v380_v1, %v25_v29  ;;  %v164_v46 = vadd.f32 %v385_v2, %v93_v40  ;;  %v97_v47 = vmul.f32 %v380_v1, %v26_v34  ;;  %v38_v24 = vld [vmem:[%s896_s0 + $0xc0] sm:$0xff]  ;;  %v39_v29 = vld [vmem:[%s896_s0 + $0xc8] sm:$0xff] }
   0xb   :  { %288 = vst [vmem:[%s899_s3 + $0x20] sm:$0xff] %v224_v37  ;;  %289 = vst [vmem:[%s899_s3 + $0x28] sm:$0xff] %v225_v38  ;;  %v98_v48 = vmul.f32 %v380_v1, %v27_v35  ;;  %v99_v49 = vmul.f32 %v380_v1, %v28_v36  ;;  %v165_v50 = vadd.f32 %v385_v2, %v94_v43  ;;  %v40_v30 = vld [vmem:[%s896_s0 + $0xd0] sm:$0xff]  ;;  %v41_v31 = vld [vmem:[%s896_s0 + $0xd8] sm:$0xff] }
   0xc   :  { %290 = vst [vmem:[%s899_s3 + $0x30] sm:$0xff] %v226_v39  ;;  %291 = vst [vmem:[%s899_s3 + $0x38] sm:$0xff] %v227_v42  ;;  %v166_v51 = vadd.f32 %v385_v2, %v95_v44  ;;  %v167_v52 = vadd.f32 %v385_v2, %v96_v45  ;;  %v100_v53 = vmul.f32 %v380_v1, %v29_v41  ;;  %v228_v55 = vmax.f32 %v164_v46, 0.0  ;;  %v42_v36 = vld [vmem:[%s896_s0 + $0xe0] sm:$0xff]  ;;  %v43_v37 = vld [vmem:[%s896_s0 + $0xe8] sm:$0xff] }
   0xd   :  { %v168_v56 = vadd.f32 %v385_v2, %v97_v47  ;;  %v169_v57 = vadd.f32 %v385_v2, %v98_v48  ;;  %v170_v58 = vadd.f32 %v385_v2, %v99_v49  ;;  %v229_v62 = vmax.f32 %v165_v50, 0.0  ;;  %v44_v38 = vld [vmem:[%s896_s0 + $0xf0] sm:$0xff]  ;;  %v45_v43 = vld [vmem:[%s896_s0 + $0xf8] sm:$0xff] }
   0xe   :  { %v230_v63 = vmax.f32 %v166_v51, 0.0  ;;  %v231_v0 = vmax.f32 %v167_v52, 0.0  ;;  %v171_v3 = vadd.f32 %v385_v2, %v100_v53  ;;  %292 = vst [vmem:[%s899_s3 + $0x40] sm:$0xff] %v228_v55  ;;  %v101_v10 = vmul.f32 %v380_v1, %v30_v54 }
   0xf   :  { %v232_v7 = vmax.f32 %v168_v56, 0.0  ;;  %v233_v8 = vmax.f32 %v169_v57, 0.0  ;;  %v234_v9 = vmax.f32 %v170_v58, 0.0  ;;  %293 = vst [vmem:[%s899_s3 + $0x48] sm:$0xff] %v229_v62  ;;  %v102_v13 = vmul.f32 %v380_v1, %v31_v59  ;;  %v46_v56 = vld [vmem:[%s896_s0 + $0x100] sm:$0xff]  ;;  %v48_v62 = vld [vmem:[%s896_s0 + $0x110] sm:$0xff] }
  0x10   :  { %294 = vst [vmem:[%s899_s3 + $0x50] sm:$0xff] %v230_v63  ;;  %295 = vst [vmem:[%s899_s3 + $0x58] sm:$0xff] %v231_v0  ;;  %v235_v12 = vmax.f32 %v171_v3, 0.0  ;;  %v103_v14 = vmul.f32 %v380_v1, %v32_v60  ;;  %v104_v15 = vmul.f32 %v380_v1, %v33_v61  ;;  %v172_v16 = vadd.f32 %v385_v2, %v101_v10  ;;  %v47_v61 = vld [vmem:[%s896_s0 + $0x108] sm:$0xff]  ;;  %v49_v63 = vld [vmem:[%s896_s0 + $0x118] sm:$0xff] }
  0x11   :  { %296 = vst [vmem:[%s899_s3 + $0x60] sm:$0xff] %v232_v7  ;;  %297 = vst [vmem:[%s899_s3 + $0x68] sm:$0xff] %v233_v8  ;;  %v105_v17 = vmul.f32 %v380_v1, %v34_v4  ;;  %v106_v18 = vmul.f32 %v380_v1, %v35_v5  ;;  %v107_v19 = vmul.f32 %v380_v1, %v36_v6  ;;  %v50_v6 = vld [vmem:[%s896_s0 + $0x120] sm:$0xff]  ;;  %v51_v7 = vld [vmem:[%s896_s0 + $0x128] sm:$0xff] }
  0x12   :  { %298 = vst [vmem:[%s899_s3 + $0x70] sm:$0xff] %v234_v9  ;;  %299 = vst [vmem:[%s899_s3 + $0x78] sm:$0xff] %v235_v12  ;;  %v173_v20 = vadd.f32 %v385_v2, %v102_v13  ;;  %v174_v21 = vadd.f32 %v385_v2, %v103_v14  ;;  %v175_v22 = vadd.f32 %v385_v2, %v104_v15  ;;  %v236_v25 = vmax.f32 %v172_v16, 0.0  ;;  %v52_v8 = vld [vmem:[%s896_s0 + $0x130] sm:$0xff]  ;;  %v53_v13 = vld [vmem:[%s896_s0 + $0x138] sm:$0xff] }
  0x13   :  { %v108_v23 = vmul.f32 %v380_v1, %v37_v11  ;;  %v176_v26 = vadd.f32 %v385_v2, %v105_v17  ;;  %v177_v27 = vadd.f32 %v385_v2, %v106_v18  ;;  %v178_v28 = vadd.f32 %v385_v2, %v107_v19 }
  0x14   :  { %v237_v32 = vmax.f32 %v173_v20, 0.0  ;;  %v238_v33 = vmax.f32 %v174_v21, 0.0  ;;  %v239_v34 = vmax.f32 %v175_v22, 0.0  ;;  %300 = vst [vmem:[%s899_s3 + $0x80] sm:$0xff] %v236_v25  ;;  %v109_v42 = vmul.f32 %v380_v1, %v38_v24 }
  0x15   :  { %v179_v35 = vadd.f32 %v385_v2, %v108_v23  ;;  %v240_v39 = vmax.f32 %v176_v26, 0.0  ;;  %v241_v40 = vmax.f32 %v177_v27, 0.0  ;;  %v242_v41 = vmax.f32 %v178_v28, 0.0  ;;  %v54_v26 = vld [vmem:[%s896_s0 + $0x140] sm:$0xff] }
  0x16   :  { %301 = vst [vmem:[%s899_s3 + $0x88] sm:$0xff] %v237_v32  ;;  %302 = vst [vmem:[%s899_s3 + $0x90] sm:$0xff] %v238_v33  ;;  %v110_v45 = vmul.f32 %v380_v1, %v39_v29  ;;  %v111_v46 = vmul.f32 %v380_v1, %v40_v30  ;;  %v112_v47 = vmul.f32 %v380_v1, %v41_v31  ;;  %v55_v31 = vld [vmem:[%s896_s0 + $0x148] sm:$0xff]  ;;  %v56_v32 = vld [vmem:[%s896_s0 + $0x150] sm:$0xff] }
  0x17   :  { %303 = vst [vmem:[%s899_s3 + $0x98] sm:$0xff] %v239_v34  ;;  %v243_v44 = vmax.f32 %v179_v35, 0.0  ;;  %304 = vst [vmem:[%s899_s3 + $0xa0] sm:$0xff] %v240_v39  ;;  %v180_v48 = vadd.f32 %v385_v2, %v109_v42  ;;  %v113_v49 = vmul.f32 %v380_v1, %v42_v36  ;;  %v114_v50 = vmul.f32 %v380_v1, %v43_v37  ;;  %v57_v33 = vld [vmem:[%s896_s0 + $0x158] sm:$0xff]  ;;  %v59_v39 = vld [vmem:[%s896_s0 + $0x168] sm:$0xff] }
  0x18   :  { %305 = vst [vmem:[%s899_s3 + $0xa8] sm:$0xff] %v241_v40  ;;  %306 = vst [vmem:[%s899_s3 + $0xb0] sm:$0xff] %v242_v41  ;;  %v115_v51 = vmul.f32 %v380_v1, %v44_v38  ;;  %v181_v52 = vadd.f32 %v385_v2, %v110_v45  ;;  %v182_v53 = vadd.f32 %v385_v2, %v111_v46  ;;  %v58_v38 = vld [vmem:[%s896_s0 + $0x160] sm:$0xff]  ;;  %v60_v40 = vld [vmem:[%s896_s0 + $0x170] sm:$0xff] }
  0x19   :  { %307 = vst [vmem:[%s899_s3 + $0xb8] sm:$0xff] %v243_v44  ;;  %v183_v54 = vadd.f32 %v385_v2, %v112_v47  ;;  %v116_v55 = vmul.f32 %v380_v1, %v45_v43  ;;  %v244_v57 = vmax.f32 %v180_v48, 0.0  ;;  %v184_v58 = vadd.f32 %v385_v2, %v113_v49  ;;  %v61_v45 = vld [vmem:[%s896_s0 + $0x178] sm:$0xff] }
  0x1a   :  { %v185_v59 = vadd.f32 %v385_v2, %v114_v50  ;;  %v186_v60 = vadd.f32 %v385_v2, %v115_v51  ;;  %v245_v0 = vmax.f32 %v181_v52, 0.0  ;;  %v246_v3 = vmax.f32 %v182_v53, 0.0 }
  0x1b   :  { %v247_v4 = vmax.f32 %v183_v54, 0.0  ;;  %v187_v5 = vadd.f32 %v385_v2, %v116_v55  ;;  %308 = vst [vmem:[%s899_s3 + $0xc0] sm:$0xff] %v244_v57  ;;  %v248_v9 = vmax.f32 %v184_v58, 0.0  ;;  %v117_v12 = vmul.f32 %v380_v1, %v46_v56  ;;  %v62_v58 = vld [vmem:[%s896_s0 + $0x180] sm:$0xff] }
  0x1c   :  { %v249_v10 = vmax.f32 %v185_v59, 0.0  ;;  %v250_v11 = vmax.f32 %v186_v60, 0.0  ;;  %309 = vst [vmem:[%s899_s3 + $0xc8] sm:$0xff] %v245_v0  ;;  %310 = vst [vmem:[%s899_s3 + $0xd0] sm:$0xff] %v246_v3  ;;  %v118_v15 = vmul.f32 %v380_v1, %v47_v61  ;;  %v119_v16 = vmul.f32 %v380_v1, %v48_v62  ;;  %v64_v0 = vld [vmem:[%s896_s0 + $0x190] sm:$0xff]  ;;  %v65_v3 = vld [vmem:[%s896_s0 + $0x198] sm:$0xff] }
  0x1d   :  { %311 = vst [vmem:[%s899_s3 + $0xd8] sm:$0xff] %v247_v4  ;;  %v251_v14 = vmax.f32 %v187_v5, 0.0  ;;  %v120_v17 = vmul.f32 %v380_v1, %v49_v63  ;;  %312 = vst [vmem:[%s899_s3 + $0xe0] sm:$0xff] %v248_v9  ;;  %v188_v18 = vadd.f32 %v385_v2, %v117_v12  ;;  %v121_v19 = vmul.f32 %v380_v1, %v50_v6  ;;  %v63_v63 = vld [vmem:[%s896_s0 + $0x188] sm:$0xff] }
  0x1e   :  { %313 = vst [vmem:[%s899_s3 + $0xe8] sm:$0xff] %v249_v10  ;;  %314 = vst [vmem:[%s899_s3 + $0xf0] sm:$0xff] %v250_v11  ;;  %v122_v20 = vmul.f32 %v380_v1, %v51_v7  ;;  %v123_v21 = vmul.f32 %v380_v1, %v52_v8  ;;  %v189_v22 = vadd.f32 %v385_v2, %v118_v15  ;;  %v66_v8 = vld [vmem:[%s896_s0 + $0x1a0] sm:$0xff]  ;;  %v67_v9 = vld [vmem:[%s896_s0 + $0x1a8] sm:$0xff] }
  0x1f   :  { %315 = vst [vmem:[%s899_s3 + $0xf8] sm:$0xff] %v251_v14  ;;  %v190_v23 = vadd.f32 %v385_v2, %v119_v16  ;;  %v191_v24 = vadd.f32 %v385_v2, %v120_v17  ;;  %v124_v25 = vmul.f32 %v380_v1, %v53_v13  ;;  %v252_v27 = vmax.f32 %v188_v18, 0.0  ;;  %v68_v10 = vld [vmem:[%s896_s0 + $0x1b0] sm:$0xff]  ;;  %v69_v15 = vld [vmem:[%s896_s0 + $0x1b8] sm:$0xff] }
  0x20   :  { %v192_v28 = vadd.f32 %v385_v2, %v121_v19  ;;  %v193_v29 = vadd.f32 %v385_v2, %v122_v20  ;;  %v194_v30 = vadd.f32 %v385_v2, %v123_v21  ;;  %v253_v34 = vmax.f32 %v189_v22, 0.0 }
  0x21   :  { %v254_v35 = vmax.f32 %v190_v23, 0.0  ;;  %v255_v36 = vmax.f32 %v191_v24, 0.0  ;;  %v195_v37 = vadd.f32 %v385_v2, %v124_v25  ;;  %316 = vst [vmem:[%s899_s3 + $0x100] sm:$0xff] %v252_v27  ;;  %v125_v44 = vmul.f32 %v380_v1, %v54_v26 }
  0x22   :  { %v256_v41 = vmax.f32 %v192_v28, 0.0  ;;  %v257_v42 = vmax.f32 %v193_v29, 0.0  ;;  %v258_v43 = vmax.f32 %v194_v30, 0.0  ;;  %317 = vst [vmem:[%s899_s3 + $0x108] sm:$0xff] %v253_v34  ;;  %v126_v47 = vmul.f32 %v380_v1, %v55_v31  ;;  %v70_v28 = vld [vmem:[%s896_s0 + $0x1c0] sm:$0xff]  ;;  %v72_v34 = vld [vmem:[%s896_s0 + $0x1d0] sm:$0xff] }
  0x23   :  { %318 = vst [vmem:[%s899_s3 + $0x110] sm:$0xff] %v254_v35  ;;  %319 = vst [vmem:[%s899_s3 + $0x118] sm:$0xff] %v255_v36  ;;  %v259_v46 = vmax.f32 %v195_v37, 0.0  ;;  %v127_v48 = vmul.f32 %v380_v1, %v56_v32  ;;  %v128_v49 = vmul.f32 %v380_v1, %v57_v33  ;;  %v196_v50 = vadd.f32 %v385_v2, %v125_v44  ;;  %v71_v33 = vld [vmem:[%s896_s0 + $0x1c8] sm:$0xff]  ;;  %v73_v35 = vld [vmem:[%s896_s0 + $0x1d8] sm:$0xff] }
  0x24   :  { %320 = vst [vmem:[%s899_s3 + $0x120] sm:$0xff] %v256_v41  ;;  %321 = vst [vmem:[%s899_s3 + $0x128] sm:$0xff] %v257_v42  ;;  %v129_v51 = vmul.f32 %v380_v1, %v58_v38  ;;  %v130_v52 = vmul.f32 %v380_v1, %v59_v39  ;;  %v131_v53 = vmul.f32 %v380_v1, %v60_v40  ;;  %v74_v40 = vld [vmem:[%s896_s0 + $0x1e0] sm:$0xff]  ;;  %v75_v41 = vld [vmem:[%s896_s0 + $0x1e8] sm:$0xff] }
  0x25   :  { %322 = vst [vmem:[%s899_s3 + $0x130] sm:$0xff] %v258_v43  ;;  %323 = vst [vmem:[%s899_s3 + $0x138] sm:$0xff] %v259_v46  ;;  %v197_v54 = vadd.f32 %v385_v2, %v126_v47  ;;  %v198_v55 = vadd.f32 %v385_v2, %v127_v48  ;;  %v199_v56 = vadd.f32 %v385_v2, %v128_v49  ;;  %v260_v59 = vmax.f32 %v196_v50, 0.0  ;;  %v76_v42 = vld [vmem:[%s896_s0 + $0x1f0] sm:$0xff]  ;;  %v77_v47 = vld [vmem:[%s896_s0 + $0x1f8] sm:$0xff] }
  0x26   :  { %v132_v57 = vmul.f32 %v380_v1, %v61_v45  ;;  %v200_v60 = vadd.f32 %v385_v2, %v129_v51  ;;  %v201_v61 = vadd.f32 %v385_v2, %v130_v52  ;;  %v202_v62 = vadd.f32 %v385_v2, %v131_v53 }
  0x27   :  { %v261_v4 = vmax.f32 %v197_v54, 0.0  ;;  %v262_v5 = vmax.f32 %v198_v55, 0.0  ;;  %v263_v6 = vmax.f32 %v199_v56, 0.0  ;;  %324 = vst [vmem:[%s899_s3 + $0x140] sm:$0xff] %v260_v59  ;;  %v133_v14 = vmul.f32 %v380_v1, %v62_v58 }
  0x28   :  { %v203_v7 = vadd.f32 %v385_v2, %v132_v57  ;;  %v264_v11 = vmax.f32 %v200_v60, 0.0  ;;  %v265_v12 = vmax.f32 %v201_v61, 0.0  ;;  %v266_v13 = vmax.f32 %v202_v62, 0.0 }
  0x29   :  { %325 = vst [vmem:[%s899_s3 + $0x148] sm:$0xff] %v261_v4  ;;  %326 = vst [vmem:[%s899_s3 + $0x150] sm:$0xff] %v262_v5  ;;  %v134_v17 = vmul.f32 %v380_v1, %v63_v63  ;;  %v135_v18 = vmul.f32 %v380_v1, %v64_v0  ;;  %v136_v19 = vmul.f32 %v380_v1, %v65_v3 }
  0x2a   :  { %327 = vst [vmem:[%s899_s3 + $0x158] sm:$0xff] %v263_v6  ;;  %v267_v16 = vmax.f32 %v203_v7, 0.0  ;;  %328 = vst [vmem:[%s899_s3 + $0x160] sm:$0xff] %v264_v11  ;;  %v204_v20 = vadd.f32 %v385_v2, %v133_v14  ;;  %v137_v21 = vmul.f32 %v380_v1, %v66_v8  ;;  %v138_v22 = vmul.f32 %v380_v1, %v67_v9 }
  0x2b   :  { %329 = vst [vmem:[%s899_s3 + $0x168] sm:$0xff] %v265_v12  ;;  %330 = vst [vmem:[%s899_s3 + $0x170] sm:$0xff] %v266_v13  ;;  %v139_v23 = vmul.f32 %v380_v1, %v68_v10  ;;  %v205_v24 = vadd.f32 %v385_v2, %v134_v17  ;;  %v206_v25 = vadd.f32 %v385_v2, %v135_v18 }
  0x2c   :  { %331 = vst [vmem:[%s899_s3 + $0x178] sm:$0xff] %v267_v16  ;;  %v207_v26 = vadd.f32 %v385_v2, %v136_v19  ;;  %v140_v27 = vmul.f32 %v380_v1, %v69_v15  ;;  %v268_v29 = vmax.f32 %v204_v20, 0.0  ;;  %v208_v30 = vadd.f32 %v385_v2, %v137_v21 }
  0x2d   :  { %v209_v31 = vadd.f32 %v385_v2, %v138_v22  ;;  %v210_v32 = vadd.f32 %v385_v2, %v139_v23  ;;  %v269_v36 = vmax.f32 %v205_v24, 0.0  ;;  %v270_v37 = vmax.f32 %v206_v25, 0.0 }
  0x2e   :  { %v271_v38 = vmax.f32 %v207_v26, 0.0  ;;  %v211_v39 = vadd.f32 %v385_v2, %v140_v27  ;;  %332 = vst [vmem:[%s899_s3 + $0x180] sm:$0xff] %v268_v29  ;;  %v272_v43 = vmax.f32 %v208_v30, 0.0  ;;  %v141_v46 = vmul.f32 %v380_v1, %v70_v28 }
  0x2f   :  { %v273_v44 = vmax.f32 %v209_v31, 0.0  ;;  %v274_v45 = vmax.f32 %v210_v32, 0.0  ;;  %333 = vst [vmem:[%s899_s3 + $0x188] sm:$0xff] %v269_v36  ;;  %334 = vst [vmem:[%s899_s3 + $0x190] sm:$0xff] %v270_v37  ;;  %v142_v49 = vmul.f32 %v380_v1, %v71_v33  ;;  %v143_v50 = vmul.f32 %v380_v1, %v72_v34 }
  0x30   :  { %335 = vst [vmem:[%s899_s3 + $0x198] sm:$0xff] %v271_v38  ;;  %v275_v48 = vmax.f32 %v211_v39, 0.0  ;;  %v144_v51 = vmul.f32 %v380_v1, %v73_v35  ;;  %336 = vst [vmem:[%s899_s3 + $0x1a0] sm:$0xff] %v272_v43  ;;  %v212_v52 = vadd.f32 %v385_v2, %v141_v46  ;;  %v145_v53 = vmul.f32 %v380_v1, %v74_v40 }
  0x31   :  { %337 = vst [vmem:[%s899_s3 + $0x1a8] sm:$0xff] %v273_v44  ;;  %338 = vst [vmem:[%s899_s3 + $0x1b0] sm:$0xff] %v274_v45  ;;  %v146_v54 = vmul.f32 %v380_v1, %v75_v41  ;;  %v147_v55 = vmul.f32 %v380_v1, %v76_v42  ;;  %v213_v56 = vadd.f32 %v385_v2, %v142_v49 }
  0x32   :  { %339 = vst [vmem:[%s899_s3 + $0x1b8] sm:$0xff] %v275_v48  ;;  %v214_v57 = vadd.f32 %v385_v2, %v143_v50  ;;  %v215_v58 = vadd.f32 %v385_v2, %v144_v51  ;;  %v148_v59 = vmul.f32 %v380_v1, %v77_v47  ;;  %v276_v60 = vmax.f32 %v212_v52, 0.0 }
  0x33   :  { %v216_v61 = vadd.f32 %v385_v2, %v145_v53  ;;  %v217_v62 = vadd.f32 %v385_v2, %v146_v54  ;;  %v218_v63 = vadd.f32 %v385_v2, %v147_v55  ;;  %v277_v0 = vmax.f32 %v213_v56, 0.0 }
  0x34   :  { %v278_v3 = vmax.f32 %v214_v57, 0.0  ;;  %v279_v4 = vmax.f32 %v215_v58, 0.0  ;;  %v219_v5 = vadd.f32 %v385_v2, %v148_v59  ;;  %340 = vst [vmem:[%s899_s3 + $0x1c0] sm:$0xff] %v276_v60 }
  0x35   :  { %v280_v6 = vmax.f32 %v216_v61, 0.0  ;;  %v281_v7 = vmax.f32 %v217_v62, 0.0  ;;  %v282_v8 = vmax.f32 %v218_v63, 0.0  ;;  %341 = vst [vmem:[%s899_s3 + $0x1c8] sm:$0xff] %v277_v0 }
  0x36   :  { %342 = vst [vmem:[%s899_s3 + $0x1d0] sm:$0xff] %v278_v3  ;;  %343 = vst [vmem:[%s899_s3 + $0x1d8] sm:$0xff] %v279_v4  ;;  %v283_v1 = vmax.f32 %v219_v5, 0.0 }
  0x37   :  { %344 = vst [vmem:[%s899_s3 + $0x1e0] sm:$0xff] %v280_v6  ;;  %345 = vst [vmem:[%s899_s3 + $0x1e8] sm:$0xff] %v281_v7 }
  0x38   :  { %346 = vst [vmem:[%s899_s3 + $0x1f0] sm:$0xff] %v282_v8  ;;  %347 = vst [vmem:[%s899_s3 + $0x1f8] sm:$0xff] %v283_v1 }

// kernel: decoder_block.8
= control target key start
LH: loop header
LB: loop body
LE: loop exit
PB: predicated region body
PF: predicated region fallthrough
CT: control target
= control target key end

     0   :  { %vm355_vm0 = vcmask 523264   ;;  %s2043_s3 = inlined_call_operand.vmem [shape: bf16[64,128], index: 3, kind: input, shape index: {}]   ;;  %s2044_s0 = inlined_call_operand.vmem [shape: f32[512,64], index: 0, kind: input, shape index: {}]   ;;  %s2045_s1 = inlined_call_operand.vmem [shape: f32[1,64], index: 1, kind: input, shape index: {}]   ;;  %s2046_s2 = inlined_call_operand.vmem [shape: f32[1,64], index: 2, kind: input, shape index: {}]   ;;  %s2047_s4 = inlined_call_operand.vmem [shape: f32[512,128], index: 4, kind: output, shape index: {0}]   ;;  %s2048_s5 = inlined_call_operand.vmem [shape: f32[1,8,128], index: 5, kind: output, shape index: {1}]   ;;  %s2049_s6 = inlined_call_operand.vmem [shape: f32[1,8,128], index: 6, kind: output, shape index: {2}]  }
   0x1   :  { %v1175_v0 = vld [vmem:[%s2043_s3] sm:$0xff]   ;;  %v1176_v1 = vld [vmem:[%s2043_s3 + $0x8] sm:$0xff]   ;;  %v1177_v2 = vld [vmem:[%s2043_s3 + $0x10] sm:$0xff]  }
   0x2   :  { %1095 = vmatprep.subr.bf16.mxu0 %v1175_v0  ;;  %1167 = vmatprep.subr.bf16.mxu1 %v1175_v0  ;;  %v21_v3 = vld [vmem:[%s2044_s0] sm:$0xff]  ;;  %v22_v4 = vld [vmem:[%s2044_s0 + $0x8] sm:$0xff]  ;;  %v23_v9 = vld [vmem:[%s2044_s0 + $0x10] sm:$0xff] }
   0x3   :  { %1096 = vmatpush3.bf16.msra.mxu0 %v1175_v0  ;;  %1171 = vmatpush3.bf16.msra.mxu1 %v1175_v0  ;;  %v1232_v5 = vld [vmem:[%s2045_s1] ss:$0 sm:$0xff]  ;;  %v24_v10 = vld [vmem:[%s2044_s0 + $0x18] sm:$0xff]  ;;  %v26_v14 = vld [vmem:[%s2044_s0 + $0x28] sm:$0xff] }
   0x4   :  { %1097 = vmatprep.subr.bf16.mxu0 %v1176_v1  ;;  %1168 = vmatprep.subr.bf16.mxu1 %v1176_v1  ;;  %v92_v6 = vmul.f32 %v1232_v5, %v21_v3  ;;  %v93_v7 = vmul.f32 %v1232_v5, %v22_v4  ;;  %v1239_v8 = vld [vmem:[%s2046_s2] ss:$0 sm:$0xff]  ;;  %v94_v11 = vmul.f32 %v1232_v5, %v23_v9  ;;  %v27_v15 = vld [vmem:[%s2044_s0 + $0x30] sm:$0xff]  ;;  %v28_v20 = vld [vmem:[%s2044_s0 + $0x38] sm:$0xff] }
   0x5   :  { %v95_v12 = vmul.f32 %v1232_v5, %v24_v10  ;;  %v25_v13 = vld [vmem:[%s2044_s0 + $0x20] sm:$0xff]  ;;  %v97_v19 = vmul.f32 %v1232_v5, %v26_v14  ;;  %v1178_v21 = vld [vmem:[%s2043_s3 + $0x18] sm:$0xff]   ;;  %v98_v24 = vmul.f32 %v1232_v5, %v27_v15  ;;  %v99_v25 = vmul.f32 %v1232_v5, %v28_v20  ;;  %v30_v31 = vld [vmem:[%s2044_s0 + $0x48] sm:$0xff] }
   0x6   :  { %v163_v16 = vadd.f32 %v1239_v8, %v92_v6  ;;  %v164_v17 = vadd.f32 %v1239_v8, %v93_v7  ;;  %v96_v18 = vmul.f32 %v1232_v5, %v25_v13  ;;  %v165_v22 = vadd.f32 %v1239_v8, %v94_v11  ;;  %v29_v26 = vld [vmem:[%s2044_s0 + $0x40] sm:$0xff]  ;;  %v31_v41 = vld [vmem:[%s2044_s0 + $0x50] sm:$0xff]  ;;  %v32_v42 = vld [vmem:[%s2044_s0 + $0x58] sm:$0xff] }
   0x7   :  { %1098 = vmatpush3.bf16.msra.mxu0 %v1176_v1  ;;  %v166_v23 = vadd.f32 %v1239_v8, %v95_v12  ;;  %v168_v30 = vadd.f32 %v1239_v8, %v97_v19  ;;  %1172 = vmatpush3.bf16.msra.mxu1 %v1176_v1  ;;  %v169_v34 = vadd.f32 %v1239_v8, %v98_v24  ;;  %v33_v44 = vld [vmem:[%s2044_s0 + $0x60] sm:$0xff]  ;;  %v34_v45 = vld [vmem:[%s2044_s0 + $0x68] sm:$0xff]  ;;  %v35_v49 = vld [vmem:[%s2044_s0 + $0x70] sm:$0xff] }
   0x8   :  { %1099 = vmatprep.subr.bf16.mxu0 %v1177_v2  ;;  %v227_v27 = vmax.f32 %v163_v16, 0.0  ;;  %v228_v28 = vmax.f32 %v164_v17, 0.0  ;;  %v167_v29 = vadd.f32 %v1239_v8, %v96_v18  ;;  %v229_v32 = vmax.f32 %v165_v22, 0.0  ;;  %1169 = vmatprep.subr.bf16.mxu1 %v1177_v2  ;;  %v36_v54 = vld [vmem:[%s2044_s0 + $0x78] sm:$0xff]  ;;  %v37_v55 = vld [vmem:[%s2044_s0 + $0x80] sm:$0xff]  ;;  %v38_v58 = vld [vmem:[%s2044_s0 + $0x88] sm:$0xff] }
   0x9   :  { %v230_v33 = vmax.f32 %v166_v23, 0.0  ;;  %v170_v35 = vadd.f32 %v1239_v8, %v99_v25  ;;  %v232_v38 = vmax.f32 %v168_v30, 0.0  ;;  %v100_v39 = vmul.f32 %v1232_v5, %v29_v26  ;;  %v39_v62 = vld [vmem:[%s2044_s0 + $0x90] sm:$0xff]  ;;  %v40_v63 = vld [vmem:[%s2044_s0 + $0x98] sm:$0xff]  ;;  %v42_v3 = vld [vmem:[%s2044_s0 + $0xa8] sm:$0xff] }
   0xa   :  { %v291_v36 = vpack.c.bf16 %v228_v28, %v227_v27  ;;  %v231_v37 = vmax.f32 %v167_v29, 0.0  ;;  %v101_v40 = vmul.f32 %v1232_v5, %v30_v31  ;;  %v233_v47 = vmax.f32 %v169_v34, 0.0  ;;  %v43_v14 = vld [vmem:[%s2044_s0 + $0xb0] sm:$0xff]  ;;  %v44_v19 = vld [vmem:[%s2044_s0 + $0xb8] sm:$0xff]  ;;  %v45_v20 = vld [vmem:[%s2044_s0 + $0xc0] sm:$0xff] }
   0xb   :  { %1100 = vmatpush3.bf16.msra.mxu0 %v1177_v2  ;;  %v171_v43 = vadd.f32 %v1239_v8, %v100_v39  ;;  %v292_v46 = vpack.c.bf16 %v230_v33, %v229_v32  ;;  %1173 = vmatpush3.bf16.msra.mxu1 %v1177_v2  ;;  %v234_v51 = vmax.f32 %v170_v35, 0.0  ;;  %v102_v52 = vmul.f32 %v1232_v5, %v31_v41  ;;  %v41_v2 = vld [vmem:[%s2044_s0 + $0xa0] sm:$0xff]  ;;  %v47_v41 = vld [vmem:[%s2044_s0 + $0xd0] sm:$0xff] }
   0xc   :  { %1101 = vmatprep.subr.bf16.mxu0 %v1178_v21  ;;  %1103 = vmatprep.mubr.msk.bf16.mxu0 %vm355_vm0, %v291_v36  ;;  %v172_v48 = vadd.f32 %v1239_v8, %v101_v40  ;;  %v293_v50 = vpack.c.bf16 %v232_v38, %v231_v37  ;;  %v103_v53 = vmul.f32 %v1232_v5, %v32_v42  ;;  %v46_v36 = vld [vmem:[%s2044_s0 + $0xc8] sm:$0xff] }
   0xd   :  { %1170 = vmatprep.subr.bf16.mxu1 %v1178_v21  ;;  %v104_v56 = vmul.f32 %v1232_v5, %v33_v44  ;;  %v105_v57 = vmul.f32 %v1232_v5, %v34_v45  ;;  %v235_v59 = vmax.f32 %v171_v43, 0.0  ;;  %v106_v61 = vmul.f32 %v1232_v5, %v35_v49 }
   0xe   :  { %v236_v60 = vmax.f32 %v172_v48, 0.0  ;;  %v107_v0 = vmul.f32 %v1232_v5, %v36_v54  ;;  %v108_v1 = vmul.f32 %v1232_v5, %v37_v55  ;;  %v294_v4 = vpack.c.bf16 %v234_v51, %v233_v47 }
   0xf   :  { %1102 = vmatpush3.bf16.msra.mxu0 %v1178_v21  ;;  %1174 = vmatpush3.bf16.msra.mxu1 %v1178_v21  ;;  %v173_v6 = vadd.f32 %v1239_v8, %v102_v52  ;;  %v174_v7 = vadd.f32 %v1239_v8, %v103_v53  ;;  %v109_v9 = vmul.f32 %v1232_v5, %v38_v58  ;;  %v49_v53 = vld [vmem:[%s2044_s0 + $0xe0] sm:$0xff]  ;;  %v50_v58 = vld [vmem:[%s2044_s0 + $0xe8] sm:$0xff] }
  0x10   :  { %v175_v10 = vadd.f32 %v1239_v8, %v104_v56  ;;  %v176_v11 = vadd.f32 %v1239_v8, %v105_v57  ;;  %v110_v12 = vmul.f32 %v1232_v5, %v39_v62  ;;  %v111_v13 = vmul.f32 %v1232_v5, %v40_v63  ;;  %v51_v63 = vld [vmem:[%s2044_s0 + $0xf0] sm:$0xff] }
  0x11   :  { %v295_v15 = vpack.c.bf16 %v236_v60, %v235_v59  ;;  %v177_v16 = vadd.f32 %v1239_v8, %v106_v61  ;;  %v112_v17 = vmul.f32 %v1232_v5, %v41_v2  ;;  %v113_v18 = vmul.f32 %v1232_v5, %v42_v3  ;;  %v54_v59 = vld [vmem:[%s2044_s0 + $0x108] sm:$0xff]  ;;  %v56_v2 = vld [vmem:[%s2044_s0 + $0x118] sm:$0xff] }
  0x12   :  { %1104 = vmatmul.mubr.msk.bf16.vlgmr.msra.gmra.mrb[0].mxu0 %vm355_vm0, %v292_v46  ;;  %v178_v21 = vadd.f32 %v1239_v8, %v107_v0  ;;  %v179_v22 = vadd.f32 %v1239_v8, %v108_v1  ;;  %v180_v23 = vadd.f32 %v1239_v8, %v109_v9  ;;  %v181_v24 = vadd.f32 %v1239_v8, %v110_v12  ;;  %v48_v46 = vld [vmem:[%s2044_s0 + $0xd8] sm:$0xff]  ;;  %v55_v1 = vld [vmem:[%s2044_s0 + $0x110] sm:$0xff]  ;;  %v57_v9 = vld [vmem:[%s2044_s0 + $0x120] sm:$0xff] }
  0x13   :  { %1107 = vmatprep.mubr.msk.bf16.mxu0 %vm355_vm0, %v293_v50  ;;  %v182_v25 = vadd.f32 %v1239_v8, %v111_v13  ;;  %v183_v26 = vadd.f32 %v1239_v8, %v112_v17  ;;  %v184_v27 = vadd.f32 %v1239_v8, %v113_v18  ;;  %v114_v28 = vmul.f32 %v1232_v5, %v43_v14  ;;  %v53_v50 = vld [vmem:[%s2044_s0 + $0x100] sm:$0xff] }
  0x14   :  { %v237_v29 = vmax.f32 %v173_v6, 0.0  ;;  %v115_v30 = vmul.f32 %v1232_v5, %v44_v19  ;;  %v116_v31 = vmul.f32 %v1232_v5, %v45_v20  ;;  %v238_v32 = vmax.f32 %v174_v7, 0.0  ;;  %v60_v20 = vld [vmem:[%s2044_s0 + $0x138] sm:$0xff] }
  0x15   :  { %v239_v33 = vmax.f32 %v175_v10, 0.0  ;;  %v240_v34 = vmax.f32 %v176_v11, 0.0  ;;  %v241_v35 = vmax.f32 %v177_v16, 0.0  ;;  %v242_v37 = vmax.f32 %v178_v21, 0.0  ;;  %v58_v10 = vld [vmem:[%s2044_s0 + $0x128] sm:$0xff] }
  0x16   :  { %v243_v38 = vmax.f32 %v179_v22, 0.0  ;;  %v244_v39 = vmax.f32 %v180_v23, 0.0  ;;  %v245_v40 = vmax.f32 %v181_v24, 0.0  ;;  %v246_v42 = vmax.f32 %v182_v25, 0.0  ;;  %v61_v25 = vld [vmem:[%s2044_s0 + $0x140] sm:$0xff] }
  0x17   :  { %v247_v43 = vmax.f32 %v183_v26, 0.0  ;;  %v248_v44 = vmax.f32 %v184_v27, 0.0  ;;  %v1370_v45 = vadd.f32 %v1239_v8, %v114_v28  ;;  %v1376_v47 = vadd.f32 %v1239_v8, %v115_v30 }
  0x18   :  { %v117_v48 = vmul.f32 %v1232_v5, %v46_v36  ;;  %v1380_v49 = vadd.f32 %v1239_v8, %v116_v31  ;;  %v296_v51 = vpack.c.bf16 %v238_v32, %v237_v29  ;;  %v118_v52 = vmul.f32 %v1232_v5, %v47_v41 }
  0x19   :  { %v297_v54 = vpack.c.bf16 %v240_v34, %v239_v33  ;;  %v1389_v55 = vpack.c.bf16 %v242_v37, %v241_v35  ;;  %v1391_v56 = vpack.c.bf16 %v244_v39, %v243_v38  ;;  %v119_v57 = vmul.f32 %v1232_v5, %v48_v46  ;;  %v62_v34 = vld [vmem:[%s2044_s0 + $0x148] sm:$0xff]  ;;  %v63_v39 = vld [vmem:[%s2044_s0 + $0x150] sm:$0xff]  ;;  %v65_v46 = vld [vmem:[%s2044_s0 + $0x160] sm:$0xff] }
  0x1a   :  { %1108 = vmatmul.mubr.msk.bf16.gmra.mrb[4].mxu0 %vm355_vm0, %v294_v4  ;;  %v1400_v60 = vpack.c.bf16 %v246_v42, %v245_v40  ;;  %v1402_v61 = vpack.c.bf16 %v248_v44, %v247_v43  ;;  %v249_v62 = vmax.f32 %v1370_v45, 0.0  ;;  %v124_v0 = vmul.f32 %v1232_v5, %v53_v50  ;;  %v64_v40 = vld [vmem:[%s2044_s0 + $0x158] sm:$0xff] }
  0x1b   :  { %1111 = vmatprep.mubr.msk.bf16.mxu0 %vm355_vm0, %v295_v15  ;;  %v250_v3 = vmax.f32 %v1376_v47, 0.0  ;;  %v1417_v4 = vadd.f32 %v1239_v8, %v117_v48  ;;  %v251_v6 = vmax.f32 %v1380_v49, 0.0  ;;  %v120_v7 = vmul.f32 %v1232_v5, %v49_v53  ;;  %v59_v15 = vld [vmem:[%s2044_s0 + $0x130] sm:$0xff]  ;;  %v66_v48 = vld [vmem:[%s2044_s0 + $0x168] sm:$0xff]  ;;  %v72_v49 = vld [vmem:[%s2044_s0 + $0x198] sm:$0xff] }
  0x1c   :  { %v1428_v11 = vadd.f32 %v1239_v8, %v118_v52  ;;  %v121_v12 = vmul.f32 %v1232_v5, %v50_v58  ;;  %v125_v13 = vmul.f32 %v1232_v5, %v54_v59  ;;  %v195_v14 = vadd.f32 %v1239_v8, %v124_v0  ;;  %v52_v0 = vld [vmem:[%s2044_s0 + $0xf8] sm:$0xff] }
  0x1d   :  { %v1438_v16 = vadd.f32 %v1239_v8, %v119_v57  ;;  %v1441_v17 = vmul.f32 %v1232_v5, %v51_v63  ;;  %v126_v18 = vmul.f32 %v1232_v5, %v55_v1  ;;  %v127_v19 = vmul.f32 %v1232_v5, %v56_v2  ;;  %v67_v63 = vld [vmem:[%s2044_s0 + $0x170] sm:$0xff] }
  0x1e   :  { %v196_v21 = vadd.f32 %v1239_v8, %v125_v13  ;;  %v259_v22 = vmax.f32 %v195_v14, 0.0  ;;  %v128_v23 = vmul.f32 %v1232_v5, %v57_v9  ;;  %v129_v24 = vmul.f32 %v1232_v5, %v58_v10  ;;  %v68_v10 = vld [vmem:[%s2044_s0 + $0x178] sm:$0xff] }
  0x1f   :  { %v252_v26 = vmax.f32 %v1417_v4, 0.0  ;;  %v197_v27 = vadd.f32 %v1239_v8, %v126_v18  ;;  %v198_v28 = vadd.f32 %v1239_v8, %v127_v19  ;;  %v130_v29 = vmul.f32 %v1232_v5, %v59_v15 }
  0x20   :  { %v260_v30 = vmax.f32 %v196_v21, 0.0  ;;  %v199_v31 = vadd.f32 %v1239_v8, %v128_v23  ;;  %v200_v32 = vadd.f32 %v1239_v8, %v129_v24  ;;  %v131_v33 = vmul.f32 %v1232_v5, %v60_v20  ;;  %v70_v24 = vld [vmem:[%s2044_s0 + $0x188] sm:$0xff] }
  0x21   :  { %v261_v35 = vmax.f32 %v197_v27, 0.0  ;;  %v262_v36 = vmax.f32 %v198_v28, 0.0  ;;  %v201_v37 = vadd.f32 %v1239_v8, %v130_v29  ;;  %v132_v38 = vmul.f32 %v1232_v5, %v61_v25 }
  0x22   :  { %1112 = vmatmul.mubr.msk.bf16.gmra.mrb[8].mxu0 %vm355_vm0, %v296_v51  ;;  %v307_v41 = vpack.c.bf16 %v260_v30, %v259_v22  ;;  %v263_v42 = vmax.f32 %v199_v31, 0.0  ;;  %v264_v43 = vmax.f32 %v200_v32, 0.0  ;;  %v202_v44 = vadd.f32 %v1239_v8, %v131_v33 }
  0x23   :  { %1115 = vmatprep.mubr.msk.bf16.mxu0 %vm355_vm0, %v297_v54  ;;  %v1481_v50 = vadd.f32 %v1239_v8, %v120_v7  ;;  %v308_v51 = vpack.c.bf16 %v262_v36, %v261_v35  ;;  %v133_v52 = vmul.f32 %v1232_v5, %v62_v34  ;;  %v203_v53 = vadd.f32 %v1239_v8, %v132_v38  ;;  %v77_v38 = vld [vmem:[%s2044_s0 + $0x1c0] sm:$0xff] }
  0x24   :  { %1135 = vmatprep.mubr.msk.bf16.mxu1 %vm355_vm0, %v307_v41  ;;  %v309_v54 = vpack.c.bf16 %v264_v43, %v263_v42  ;;  %v265_v57 = vmax.f32 %v201_v37, 0.0  ;;  %v134_v58 = vmul.f32 %v1232_v5, %v63_v39  ;;  %v135_v59 = vmul.f32 %v1232_v5, %v64_v40  ;;  %v73_v41 = vld [vmem:[%s2044_s0 + $0x1a0] sm:$0xff]  ;;  %v74_v42 = vld [vmem:[%s2044_s0 + $0x1a8] sm:$0xff] }
  0x25   :  { %1136 = vmatmul.mubr.msk.bf16.vlgmr.msra.gmra.mrb[0].mxu1 %vm355_vm0, %v308_v51  ;;  %v266_v1 = vmax.f32 %v202_v44, 0.0  ;;  %v204_v2 = vadd.f32 %v1239_v8, %v133_v52  ;;  %v136_v7 = vmul.f32 %v1232_v5, %v65_v46  ;;  %v137_v9 = vmul.f32 %v1232_v5, %v66_v48  ;;  %v79_v51 = vld [vmem:[%s2044_s0 + $0x1d0] sm:$0xff]  ;;  %v80_v52 = vld [vmem:[%s2044_s0 + $0x1d8] sm:$0xff] }
  0x26   :  { %v1509_v13 = vadd.f32 %v1239_v8, %v121_v12  ;;  %1139 = vmatprep.mubr.msk.bf16.mxu1 %vm355_vm0, %v309_v54  ;;  %v267_v14 = vmax.f32 %v203_v53, 0.0  ;;  %v205_v15 = vadd.f32 %v1239_v8, %v134_v58  ;;  %v206_v18 = vadd.f32 %v1239_v8, %v135_v59  ;;  %v81_v59 = vld [vmem:[%s2044_s0 + $0x1e0] sm:$0xff] }
  0x27   :  { %v268_v19 = vmax.f32 %v204_v2, 0.0  ;;  %v207_v20 = vadd.f32 %v1239_v8, %v136_v7  ;;  %v208_v21 = vadd.f32 %v1239_v8, %v137_v9  ;;  %v138_v22 = vmul.f32 %v1232_v5, %v67_v63  ;;  %v82_v7 = vld [vmem:[%s2044_s0 + $0x1e8] sm:$0xff] }
  0x28   :  { %v253_v23 = vmax.f32 %v1428_v11, 0.0  ;;  %v139_v12 = vmul.f32 %v1232_v5, %v68_v10  ;;  %v254_v27 = vmax.f32 %v1438_v16, 0.0  ;;  %v310_v28 = vpack.c.bf16 %v266_v1, %v265_v57  ;;  %v75_v16 = vld [vmem:[%s2044_s0 + $0x1b0] sm:$0xff] }
  0x29   :  { %v269_v29 = vmax.f32 %v205_v15, 0.0  ;;  %v270_v30 = vmax.f32 %v206_v18, 0.0  ;;  %v311_v31 = vpack.c.bf16 %v268_v19, %v267_v14  ;;  %v271_v32 = vmax.f32 %v207_v20, 0.0  ;;  %v83_v14 = vld [vmem:[%s2044_s0 + $0x1f0] sm:$0xff] }
  0x2a   :  { %1116 = vmatmul.mubr.msk.bf16.gmra.mrb[12].mxu0 %vm355_vm0, %v1389_v55  ;;  %v69_v55 = vld [vmem:[%s2044_s0 + $0x180] sm:$0xff]  ;;  %v272_v33 = vmax.f32 %v208_v21, 0.0  ;;  %v1526_v11 = vadd.f32 %v1239_v8, %v138_v22  ;;  %v302_v34 = vpack.c.bf16 %v250_v3, %v249_v62  ;;  %v141_v35 = vmul.f32 %v1232_v5, %v70_v24  ;;  %v71_v62 = vld [vmem:[%s2044_s0 + $0x190] sm:$0xff]  ;;  %v76_v3 = vld [vmem:[%s2044_s0 + $0x1b8] sm:$0xff] }
  0x2b   :  { %1119 = vmatprep.mubr.msk.bf16.mxu0 %vm355_vm0, %v1391_v56  ;;  %v123_v56 = vmul.f32 %v1232_v5, %v52_v0  ;;  %v140_v25 = vmul.f32 %v1232_v5, %v69_v55  ;;  %v303_v36 = vpack.c.bf16 %v252_v26, %v251_v6  ;;  %v1542_v37 = vadd.f32 %v1239_v8, %v1441_v17  ;;  %v84_v21 = vld [vmem:[%s2044_s0 + $0x1f8] sm:$0xff] }
  0x2c   :  { %v1545_v45 = vadd.f32 %v1239_v8, %v139_v12  ;;  %v1561_v4 = vpack.c.bf16 %v254_v27, %v253_v23  ;;  %v255_v6 = vmax.f32 %v1481_v50, 0.0  ;;  %v256_v17 = vmax.f32 %v1509_v13, 0.0 }
  0x2d   :  { %v1548_v47 = vadd.f32 %v1239_v8, %v140_v25  ;;  %v1566_v26 = vadd.f32 %v1239_v8, %v123_v56  ;;  %1140 = vmatmul.mubr.msk.bf16.gmra.mrb[4].mxu1 %vm355_vm0, %v310_v28  ;;  %v313_v39 = vpack.c.bf16 %v272_v33, %v271_v32  ;;  %v273_v40 = vmax.f32 %v1526_v11, 0.0 }
  0x2e   :  { %1143 = vmatprep.mubr.msk.bf16.mxu1 %vm355_vm0, %v311_v31  ;;  %v146_v43 = vmul.f32 %v1232_v5, %v75_v16  ;;  %v212_v44 = vadd.f32 %v1239_v8, %v141_v35  ;;  %v142_v46 = vmul.f32 %v1232_v5, %v71_v62  ;;  %v143_v48 = vmul.f32 %v1232_v5, %v72_v49 }
  0x2f   :  { %v147_v50 = vmul.f32 %v1232_v5, %v76_v3  ;;  %v274_v53 = vmax.f32 %v1545_v45, 0.0  ;;  %v275_v54 = vmax.f32 %v1548_v47, 0.0  ;;  %v148_v58 = vmul.f32 %v1232_v5, %v77_v38 }
  0x30   :  { %v217_v57 = vadd.f32 %v1239_v8, %v146_v43  ;;  %v144_v63 = vmul.f32 %v1232_v5, %v73_v41  ;;  %v145_v0 = vmul.f32 %v1232_v5, %v74_v42  ;;  %v150_v55 = vmul.f32 %v1232_v5, %v79_v51 }
  0x31   :  { %v218_v1 = vadd.f32 %v1239_v8, %v147_v50  ;;  %v219_v10 = vadd.f32 %v1239_v8, %v148_v58  ;;  %v151_v13 = vmul.f32 %v1232_v5, %v80_v52  ;;  %v276_v15 = vmax.f32 %v212_v44, 0.0 }
  0x32   :  { %1120 = vmatmul.mubr.msk.bf16.gmra.mrb[16].mxu0 %vm355_vm0, %v1400_v60  ;;  %v312_v60 = vpack.c.bf16 %v270_v30, %v269_v29  ;;  %v281_v9 = vmax.f32 %v217_v57, 0.0  ;;  %v152_v20 = vmul.f32 %v1232_v5, %v81_v59  ;;  %v221_v23 = vadd.f32 %v1239_v8, %v150_v55 }
  0x33   :  { %1123 = vmatprep.mubr.msk.bf16.mxu0 %vm355_vm0, %v1402_v61  ;;  %v78_v61 = vld [vmem:[%s2044_s0 + $0x1c8] sm:$0xff]  ;;  %v282_v18 = vmax.f32 %v218_v1, 0.0  ;;  %v283_v22 = vmax.f32 %v219_v10, 0.0  ;;  %v222_v56 = vadd.f32 %v1239_v8, %v151_v13  ;;  %v153_v12 = vmul.f32 %v1232_v5, %v82_v7 }
  0x34   :  { %v149_v2 = vmul.f32 %v1232_v5, %v78_v61  ;;  %v223_v27 = vadd.f32 %v1239_v8, %v152_v20  ;;  %v154_v28 = vmul.f32 %v1232_v5, %v83_v14  ;;  %v285_v29 = vmax.f32 %v221_v23, 0.0 }
  0x35   :  { %1144 = vmatmul.mubr.msk.bf16.gmra.mrb[8].mxu1 %vm355_vm0, %v312_v60  ;;  %v318_v24 = vpack.c.bf16 %v282_v18, %v281_v9  ;;  %v286_v30 = vmax.f32 %v222_v56, 0.0  ;;  %v224_v31 = vadd.f32 %v1239_v8, %v153_v12  ;;  %v155_v32 = vmul.f32 %v1232_v5, %v84_v21 }
  0x36   :  { %v220_v19 = vadd.f32 %v1239_v8, %v149_v2  ;;  %1147 = vmatprep.mubr.msk.bf16.mxu1 %vm355_vm0, %v313_v39  ;;  %v305_v33 = vpack.c.bf16 %v256_v17, %v255_v6  ;;  %v225_v35 = vadd.f32 %v1239_v8, %v154_v28  ;;  %v213_v16 = vadd.f32 %v1239_v8, %v142_v46 }
  0x37   :  { %v320_v45 = vpack.c.bf16 %v286_v30, %v285_v29  ;;  %v288_v47 = vmax.f32 %v224_v31, 0.0  ;;  %v226_v62 = vadd.f32 %v1239_v8, %v155_v32  ;;  %v214_v49 = vadd.f32 %v1239_v8, %v143_v48 }
  0x38   :  { %v284_v25 = vmax.f32 %v220_v19, 0.0  ;;  %v215_v3 = vadd.f32 %v1239_v8, %v144_v63  ;;  %v289_v38 = vmax.f32 %v225_v35, 0.0  ;;  %v315_v60 = vpack.c.bf16 %v276_v15, %v275_v54 }
  0x39   :  { %v216_v5 = vadd.f32 %v1239_v8, %v145_v0  ;;  %v290_v17 = vmax.f32 %v226_v62, 0.0  ;;  %v257_v41 = vmax.f32 %v1542_v37, 0.0  ;;  %v258_v42 = vmax.f32 %v1566_v26, 0.0 }
  0x3a   :  { %1124 = vmatmul.mubr.msk.bf16.gmra.mrb[20].mxu0 %vm355_vm0, %v302_v34  ;;  %v319_v11 = vpack.c.bf16 %v284_v25, %v283_v22  ;;  %v287_v34 = vmax.f32 %v223_v27, 0.0  ;;  %v278_v43 = vmax.f32 %v214_v49, 0.0  ;;  %v279_v61 = vmax.f32 %v215_v3, 0.0 }
  0x3b   :  { %1127 = vmatprep.mubr.msk.bf16.mxu0 %vm355_vm0, %v303_v36  ;;  %v314_v36 = vpack.c.bf16 %v274_v53, %v273_v40  ;;  %v322_v39 = vpack.c.bf16 %v290_v17, %v289_v38  ;;  %v277_v40 = vmax.f32 %v213_v16, 0.0  ;;  %v280_v8 = vmax.f32 %v216_v5, 0.0 }
  0x3c   :  { %v321_v6 = vpack.c.bf16 %v288_v47, %v287_v34  ;;  %v306_v44 = vpack.c.bf16 %v258_v42, %v257_v41 }
  0x3d   :  { %1148 = vmatmul.mubr.msk.bf16.gmra.mrb[12].mxu1 %vm355_vm0, %v314_v36  ;;  %v316_v46 = vpack.c.bf16 %v278_v43, %v277_v40  ;;  %v317_v48 = vpack.c.bf16 %v280_v8, %v279_v61 }
  0x3e   :  { %1151 = vmatprep.mubr.msk.bf16.mxu1 %vm355_vm0, %v315_v60 }
  0x42   :  { %1128 = vmatmul.mubr.msk.bf16.gmra.mrb[24].mxu0 %vm355_vm0, %v1561_v4 }
  0x43   :  { %1131 = vmatprep.mubr.msk.bf16.mxu0 %vm355_vm0, %v305_v33 }
  0x45   :  { %1152 = vmatmul.mubr.msk.bf16.gmra.mrb[16].mxu1 %vm355_vm0, %v316_v46 }
  0x46   :  { %1155 = vmatprep.mubr.msk.bf16.mxu1 %vm355_vm0, %v317_v48 }
  0x4a   :  { %1132 = vmatmul.mubr.msk.bf16.gmra.mrb[28].mxu0 %vm355_vm0, %v306_v44 }
  0x4d   :  { %1156 = vmatmul.mubr.msk.bf16.gmra.mrb[20].mxu1 %vm355_vm0, %v318_v24 }
  0x4e   :  { %1159 = vmatprep.mubr.msk.bf16.mxu1 %vm355_vm0, %v319_v11 }
  0x55   :  { %1160 = vmatmul.mubr.msk.bf16.gmra.mrb[24].mxu1 %vm355_vm0, %v320_v45 }
  0x56   :  { %1163 = vmatprep.mubr.msk.bf16.mxu1 %vm355_vm0, %v321_v6 }
  0x5d   :  { %1164 = vmatmul.mubr.msk.bf16.gmra.mrb[28].mxu1 %vm355_vm0, %v322_v39 }
  0xe5   :  { %v1105_v37 = vpop.f32.mrb[0].mxu0 }
  0xe6   :  { %743 = vst [vmem:[%s2047_s4 + $0x10] sm:$0xff] %v1105_v37  ;;  %v486_v4 = vpop.f32.mrb[1].mxu0  ;;  %v876_v54 = vmul.f32 %v1105_v37, %v1105_v37 }
  0xe7   :  { %741 = vst [vmem:[%s2047_s4] sm:$0xff] %v486_v4  ;;  %v1106_v26 = vpop.f32.mrb[2].mxu0  ;;  %v874_v51 = vmul.f32 %v486_v4, %v486_v4 }
  0xe8   :  { %744 = vst [vmem:[%s2047_s4 + $0x18] sm:$0xff] %v1106_v26  ;;  %v489_v50 = vpop.f32.mrb[3].mxu0  ;;  %v877_v59 = vmul.f32 %v1106_v26, %v1106_v26 }
  0xe9   :  { %742 = vst [vmem:[%s2047_s4 + $0x8] sm:$0xff] %v489_v50  ;;  %v805_v52 = vadd.f32 %v489_v50, %v486_v4  ;;  %v875_v53 = vmul.f32 %v489_v50, %v489_v50 }
  0xeb   :  { %v806_v57 = vadd.f32 %v1105_v37, %v805_v52  ;;  %v938_v58 = vadd.f32 %v875_v53, %v874_v51 }
  0xed   :  { %v939_v63 = vadd.f32 %v938_v58, %v876_v54  ;;  %v1109_v0 = vpop.f32.mrb[4].mxu0  ;;  %v807_v1 = vadd.f32 %v1106_v26, %v806_v57 }
  0xee   :  { %747 = vst [vmem:[%s2047_s4 + $0x30] sm:$0xff] %v1109_v0  ;;  %v502_v2 = vpop.f32.mrb[5].mxu0  ;;  %v880_v19 = vmul.f32 %v1109_v0, %v1109_v0 }
  0xef   :  { %745 = vst [vmem:[%s2047_s4 + $0x20] sm:$0xff] %v502_v2  ;;  %v808_v7 = vadd.f32 %v807_v1, %v502_v2  ;;  %v878_v9 = vmul.f32 %v502_v2, %v502_v2  ;;  %v940_v10 = vadd.f32 %v939_v63, %v877_v59  ;;  %v1110_v55 = vpop.f32.mrb[6].mxu0 }
  0xf0   :  { %748 = vst [vmem:[%s2047_s4 + $0x38] sm:$0xff] %v1110_v55  ;;  %v505_v13 = vpop.f32.mrb[7].mxu0  ;;  %v881_v22 = vmul.f32 %v1110_v55, %v1110_v55 }
  0xf1   :  { %v941_v14 = vadd.f32 %v940_v10, %v878_v9  ;;  %746 = vst [vmem:[%s2047_s4 + $0x28] sm:$0xff] %v505_v13  ;;  %v809_v15 = vadd.f32 %v808_v7, %v505_v13  ;;  %v879_v18 = vmul.f32 %v505_v13, %v505_v13 }
  0xf3   :  { %v810_v20 = vadd.f32 %v1109_v0, %v809_v15  ;;  %v942_v21 = vadd.f32 %v941_v14, %v879_v18 }
  0xf5   :  { %v943_v23 = vadd.f32 %v942_v21, %v880_v19  ;;  %v1113_v56 = vpop.f32.mrb[8].mxu0  ;;  %v811_v12 = vadd.f32 %v1110_v55, %v810_v20 }
  0xf6   :  { %751 = vst [vmem:[%s2047_s4 + $0x50] sm:$0xff] %v1113_v56  ;;  %v518_v24 = vpop.f32.mrb[9].mxu0  ;;  %v884_v11 = vmul.f32 %v1113_v56, %v1113_v56 }
  0xf7   :  { %749 = vst [vmem:[%s2047_s4 + $0x40] sm:$0xff] %v518_v24  ;;  %v812_v25 = vadd.f32 %v811_v12, %v518_v24  ;;  %v882_v27 = vmul.f32 %v518_v24, %v518_v24  ;;  %v944_v28 = vadd.f32 %v943_v23, %v881_v22  ;;  %v1114_v29 = vpop.f32.mrb[10].mxu0 }
  0xf8   :  { %752 = vst [vmem:[%s2047_s4 + $0x58] sm:$0xff] %v1114_v29  ;;  %v521_v30 = vpop.f32.mrb[11].mxu0  ;;  %v885_v16 = vmul.f32 %v1114_v29, %v1114_v29  ;;  %v1689_v36 = vpop.f32.mrb[0].mxu1 }
  0xf9   :  { %v945_v31 = vadd.f32 %v944_v28, %v882_v27  ;;  %750 = vst [vmem:[%s2047_s4 + $0x48] sm:$0xff] %v521_v30  ;;  %v813_v32 = vadd.f32 %v812_v25, %v521_v30  ;;  %v883_v33 = vmul.f32 %v521_v30, %v521_v30  ;;  %775 = vst [vmem:[%s2047_s4 + $0x110] sm:$0xff] %v1689_v36  ;;  %v1698_v3 = vpop.f32.mrb[1].mxu1 }
  0xfa   :  { %773 = vst [vmem:[%s2047_s4 + $0x100] sm:$0xff] %v1698_v3  ;;  %v1707_v17 = vpop.f32.mrb[2].mxu1 }
  0xfb   :  { %v814_v34 = vadd.f32 %v1113_v56, %v813_v32  ;;  %v946_v35 = vadd.f32 %v945_v31, %v883_v33  ;;  %776 = vst [vmem:[%s2047_s4 + $0x118] sm:$0xff] %v1707_v17  ;;  %v1716_v41 = vpop.f32.mrb[3].mxu1 }
  0xfc   :  { %774 = vst [vmem:[%s2047_s4 + $0x108] sm:$0xff] %v1716_v41 }
  0xfd   :  { %v947_v45 = vadd.f32 %v946_v35, %v884_v11  ;;  %v1117_v47 = vpop.f32.mrb[12].mxu0  ;;  %v815_v62 = vadd.f32 %v1114_v29, %v814_v34 }
  0xfe   :  { %755 = vst [vmem:[%s2047_s4 + $0x70] sm:$0xff] %v1117_v47  ;;  %v534_v49 = vpop.f32.mrb[13].mxu0  ;;  %v888_v61 = vmul.f32 %v1117_v47, %v1117_v47 }
  0xff   :  { %753 = vst [vmem:[%s2047_s4 + $0x60] sm:$0xff] %v534_v49  ;;  %v816_v38 = vadd.f32 %v815_v62, %v534_v49  ;;  %v886_v60 = vmul.f32 %v534_v49, %v534_v49  ;;  %v948_v5 = vadd.f32 %v947_v45, %v885_v16  ;;  %v1118_v6 = vpop.f32.mrb[14].mxu0 }
 0x100   :  { %756 = vst [vmem:[%s2047_s4 + $0x78] sm:$0xff] %v1118_v6  ;;  %v537_v39 = vpop.f32.mrb[15].mxu0  ;;  %v889_v46 = vmul.f32 %v1118_v6, %v1118_v6  ;;  %v1725_v26 = vpop.f32.mrb[4].mxu1 }
 0x101   :  { %v949_v42 = vadd.f32 %v948_v5, %v886_v60  ;;  %754 = vst [vmem:[%s2047_s4 + $0x68] sm:$0xff] %v537_v39  ;;  %v817_v40 = vadd.f32 %v816_v38, %v537_v39  ;;  %v887_v43 = vmul.f32 %v537_v39, %v537_v39  ;;  %779 = vst [vmem:[%s2047_s4 + $0x130] sm:$0xff] %v1725_v26  ;;  %v1734_v51 = vpop.f32.mrb[5].mxu1 }
 0x102   :  { %777 = vst [vmem:[%s2047_s4 + $0x120] sm:$0xff] %v1734_v51  ;;  %v1743_v58 = vpop.f32.mrb[6].mxu1 }
 0x103   :  { %v818_v8 = vadd.f32 %v1117_v47, %v817_v40  ;;  %v950_v44 = vadd.f32 %v949_v42, %v887_v43  ;;  %780 = vst [vmem:[%s2047_s4 + $0x138] sm:$0xff] %v1743_v58  ;;  %v1752_v63 = vpop.f32.mrb[7].mxu1 }
 0x104   :  { %778 = vst [vmem:[%s2047_s4 + $0x128] sm:$0xff] %v1752_v63 }
 0x105   :  { %v951_v48 = vadd.f32 %v950_v44, %v888_v61  ;;  %v1121_v37 = vpop.f32.mrb[16].mxu0  ;;  %v819_v4 = vadd.f32 %v1118_v6, %v818_v8 }
 0x106   :  { %759 = vst [vmem:[%s2047_s4 + $0x90] sm:$0xff] %v1121_v37  ;;  %v550_v50 = vpop.f32.mrb[17].mxu0  ;;  %v892_v7 = vmul.f32 %v1121_v37, %v1121_v37 }
 0x107   :  { %757 = vst [vmem:[%s2047_s4 + $0x80] sm:$0xff] %v550_v50  ;;  %v820_v52 = vadd.f32 %v819_v4, %v550_v50  ;;  %v890_v53 = vmul.f32 %v550_v50, %v550_v50  ;;  %v952_v54 = vadd.f32 %v951_v48, %v889_v46  ;;  %v1122_v57 = vpop.f32.mrb[18].mxu0 }
 0x108   :  { %760 = vst [vmem:[%s2047_s4 + $0x98] sm:$0xff] %v1122_v57  ;;  %v553_v59 = vpop.f32.mrb[19].mxu0  ;;  %v893_v55 = vmul.f32 %v1122_v57, %v1122_v57  ;;  %v1761_v18 = vpop.f32.mrb[8].mxu1 }
 0x109   :  { %v953_v0 = vadd.f32 %v952_v54, %v890_v53  ;;  %758 = vst [vmem:[%s2047_s4 + $0x88] sm:$0xff] %v553_v59  ;;  %v821_v1 = vadd.f32 %v820_v52, %v553_v59  ;;  %v891_v2 = vmul.f32 %v553_v59, %v553_v59  ;;  %783 = vst [vmem:[%s2047_s4 + $0x150] sm:$0xff] %v1761_v18  ;;  %v1770_v20 = vpop.f32.mrb[9].mxu1 }
 0x10a   :  { %781 = vst [vmem:[%s2047_s4 + $0x140] sm:$0xff] %v1770_v20  ;;  %v1779_v12 = vpop.f32.mrb[10].mxu1 }
 0x10b   :  { %v822_v9 = vadd.f32 %v1121_v37, %v821_v1  ;;  %v954_v10 = vadd.f32 %v953_v0, %v891_v2  ;;  %784 = vst [vmem:[%s2047_s4 + $0x158] sm:$0xff] %v1779_v12  ;;  %v1788_v25 = vpop.f32.mrb[11].mxu1 }
 0x10c   :  { %782 = vst [vmem:[%s2047_s4 + $0x148] sm:$0xff] %v1788_v25 }
 0x10d   :  { %v955_v13 = vadd.f32 %v954_v10, %v892_v7  ;;  %v1125_v14 = vpop.f32.mrb[20].mxu0  ;;  %v823_v15 = vadd.f32 %v1122_v57, %v822_v9 }
 0x10e   :  { %763 = vst [vmem:[%s2047_s4 + $0xb0] sm:$0xff] %v1125_v14  ;;  %v566_v19 = vpop.f32.mrb[21].mxu0  ;;  %v896_v30 = vmul.f32 %v1125_v14, %v1125_v14 }
 0x10f   :  { %761 = vst [vmem:[%s2047_s4 + $0xa0] sm:$0xff] %v566_v19  ;;  %v824_v21 = vadd.f32 %v823_v15, %v566_v19  ;;  %v894_v22 = vmul.f32 %v566_v19, %v566_v19  ;;  %v956_v23 = vadd.f32 %v955_v13, %v893_v55  ;;  %v1126_v56 = vpop.f32.mrb[22].mxu0 }
 0x110   :  { %764 = vst [vmem:[%s2047_s4 + $0xb8] sm:$0xff] %v1126_v56  ;;  %v569_v24 = vpop.f32.mrb[23].mxu0  ;;  %v897_v33 = vmul.f32 %v1126_v56, %v1126_v56  ;;  %v1797_v16 = vpop.f32.mrb[12].mxu1 }
 0x111   :  { %v957_v27 = vadd.f32 %v956_v23, %v894_v22  ;;  %762 = vst [vmem:[%s2047_s4 + $0xa8] sm:$0xff] %v569_v24  ;;  %v825_v28 = vadd.f32 %v824_v21, %v569_v24  ;;  %v895_v29 = vmul.f32 %v569_v24, %v569_v24  ;;  %787 = vst [vmem:[%s2047_s4 + $0x170] sm:$0xff] %v1797_v16  ;;  %v1806_v47 = vpop.f32.mrb[13].mxu1 }
 0x112   :  { %785 = vst [vmem:[%s2047_s4 + $0x160] sm:$0xff] %v1806_v47  ;;  %v1815_v5 = vpop.f32.mrb[14].mxu1  ;;  %v906_v23 = vmul.f32 %v1698_v3, %v1698_v3 }
 0x113   :  { %v826_v31 = vadd.f32 %v1125_v14, %v825_v28  ;;  %v958_v32 = vadd.f32 %v957_v27, %v895_v29  ;;  %788 = vst [vmem:[%s2047_s4 + $0x178] sm:$0xff] %v1815_v5  ;;  %v1824_v39 = vpop.f32.mrb[15].mxu1 }
 0x114   :  { %786 = vst [vmem:[%s2047_s4 + $0x168] sm:$0xff] %v1824_v39 }
 0x115   :  { %v959_v11 = vadd.f32 %v958_v32, %v896_v30  ;;  %v1129_v34 = vpop.f32.mrb[24].mxu0  ;;  %v827_v35 = vadd.f32 %v1126_v56, %v826_v31 }
 0x116   :  { %767 = vst [vmem:[%s2047_s4 + $0xd0] sm:$0xff] %v1129_v34  ;;  %v582_v45 = vpop.f32.mrb[25].mxu0  ;;  %v900_v61 = vmul.f32 %v1129_v34, %v1129_v34 }
 0x117   :  { %765 = vst [vmem:[%s2047_s4 + $0xc0] sm:$0xff] %v582_v45  ;;  %v828_v62 = vadd.f32 %v827_v35, %v582_v45  ;;  %v898_v49 = vmul.f32 %v582_v45, %v582_v45  ;;  %v960_v38 = vadd.f32 %v959_v11, %v897_v33  ;;  %v1130_v60 = vpop.f32.mrb[26].mxu0  ;;  %v908_v33 = vmul.f32 %v1689_v36, %v1689_v36 }
 0x118   :  { %768 = vst [vmem:[%s2047_s4 + $0xd8] sm:$0xff] %v1130_v60  ;;  %v585_v6 = vpop.f32.mrb[27].mxu0  ;;  %v901_v46 = vmul.f32 %v1130_v60, %v1130_v60  ;;  %v1833_v50 = vpop.f32.mrb[16].mxu1  ;;  %v909_v35 = vmul.f32 %v1707_v17, %v1707_v17 }
 0x119   :  { %v961_v42 = vadd.f32 %v960_v38, %v898_v49  ;;  %766 = vst [vmem:[%s2047_s4 + $0xc8] sm:$0xff] %v585_v6  ;;  %v829_v40 = vadd.f32 %v828_v62, %v585_v6  ;;  %v899_v43 = vmul.f32 %v585_v6, %v585_v6  ;;  %791 = vst [vmem:[%s2047_s4 + $0x190] sm:$0xff] %v1833_v50  ;;  %v1842_v53 = vpop.f32.mrb[17].mxu1 }
 0x11a   :  { %789 = vst [vmem:[%s2047_s4 + $0x180] sm:$0xff] %v1842_v53  ;;  %v1851_v1 = vpop.f32.mrb[18].mxu1 }
 0x11b   :  { %v830_v8 = vadd.f32 %v1129_v34, %v829_v40  ;;  %v962_v44 = vadd.f32 %v961_v42, %v899_v43  ;;  %792 = vst [vmem:[%s2047_s4 + $0x198] sm:$0xff] %v1851_v1  ;;  %v1860_v7 = vpop.f32.mrb[19].mxu1  ;;  %v912_v43 = vmul.f32 %v1725_v26, %v1725_v26 }
 0x11c   :  { %790 = vst [vmem:[%s2047_s4 + $0x188] sm:$0xff] %v1860_v7 }
 0x11d   :  { %v963_v48 = vadd.f32 %v962_v44, %v900_v61  ;;  %v1133_v37 = vpop.f32.mrb[28].mxu0  ;;  %v831_v4 = vadd.f32 %v1130_v60, %v830_v8  ;;  %v913_v44 = vmul.f32 %v1743_v58, %v1743_v58 }
 0x11e   :  { %771 = vst [vmem:[%s2047_s4 + $0xf0] sm:$0xff] %v1133_v37  ;;  %v598_v52 = vpop.f32.mrb[29].mxu0  ;;  %v904_v13 = vmul.f32 %v1133_v37, %v1133_v37 }
 0x11f   :  { %769 = vst [vmem:[%s2047_s4 + $0xe0] sm:$0xff] %v598_v52  ;;  %v832_v54 = vadd.f32 %v831_v4, %v598_v52  ;;  %v902_v57 = vmul.f32 %v598_v52, %v598_v52  ;;  %v964_v59 = vadd.f32 %v963_v48, %v901_v46  ;;  %v1134_v0 = vpop.f32.mrb[30].mxu0 }
 0x120   :  { %772 = vst [vmem:[%s2047_s4 + $0xf8] sm:$0xff] %v1134_v0  ;;  %v601_v2 = vpop.f32.mrb[31].mxu0  ;;  %v905_v19 = vmul.f32 %v1134_v0, %v1134_v0  ;;  %v1871_v56 = vpop.f32.mrb[20].mxu1 }
 0x121   :  { %v965_v9 = vadd.f32 %v964_v59, %v902_v57  ;;  %770 = vst [vmem:[%s2047_s4 + $0xe8] sm:$0xff] %v601_v2  ;;  %v833_v10 = vadd.f32 %v832_v54, %v601_v2  ;;  %v903_v55 = vmul.f32 %v601_v2, %v601_v2  ;;  %795 = vst [vmem:[%s2047_s4 + $0x1b0] sm:$0xff] %v1871_v56  ;;  %v1877_v24 = vpop.f32.mrb[21].mxu1 }
 0x122   :  { %793 = vst [vmem:[%s2047_s4 + $0x1a0] sm:$0xff] %v1877_v24  ;;  %v1884_v29 = vpop.f32.mrb[22].mxu1 }
 0x123   :  { %v834_v14 = vadd.f32 %v1133_v37, %v833_v10  ;;  %v966_v15 = vadd.f32 %v965_v9, %v903_v55  ;;  %796 = vst [vmem:[%s2047_s4 + $0x1b8] sm:$0xff] %v1884_v29  ;;  %v1890_v30 = vpop.f32.mrb[23].mxu1  ;;  %v917_v10 = vmul.f32 %v1779_v12, %v1779_v12 }
 0x124   :  { %794 = vst [vmem:[%s2047_s4 + $0x1a8] sm:$0xff] %v1890_v30 }
 0x125   :  { %v967_v21 = vadd.f32 %v966_v15, %v904_v13  ;;  %v835_v22 = vadd.f32 %v1134_v0, %v834_v14  ;;  %v916_v0 = vmul.f32 %v1761_v18, %v1761_v18 }
 0x127   :  { %v836_v27 = vadd.f32 %v835_v22, %v1698_v3  ;;  %v968_v28 = vadd.f32 %v967_v21, %v905_v19  ;;  %v907_v3 = vmul.f32 %v1716_v41, %v1716_v41  ;;  %v919_v22 = vmul.f32 %v1824_v39, %v1824_v39 }
 0x128   :  { %v1907_v49 = vpop.f32.mrb[24].mxu1 }
 0x129   :  { %v969_v31 = vadd.f32 %v968_v28, %v906_v23  ;;  %v837_v32 = vadd.f32 %v836_v27, %v1716_v41  ;;  %v910_v41 = vmul.f32 %v1734_v51, %v1734_v51  ;;  %799 = vst [vmem:[%s2047_s4 + $0x1d0] sm:$0xff] %v1907_v49  ;;  %v1913_v38 = vpop.f32.mrb[25].mxu1 }
 0x12a   :  { %797 = vst [vmem:[%s2047_s4 + $0x1c0] sm:$0xff] %v1913_v38 }
 0x12b   :  { %v838_v11 = vadd.f32 %v1689_v36, %v837_v32  ;;  %v970_v34 = vadd.f32 %v969_v31, %v907_v3 }
 0x12d   :  { %v971_v45 = vadd.f32 %v970_v34, %v908_v33  ;;  %v839_v62 = vadd.f32 %v1707_v17, %v838_v11  ;;  %v1920_v17 = vpop.f32.mrb[26].mxu1  ;;  %v923_v11 = vmul.f32 %v1860_v7, %v1860_v7 }
 0x12e   :  { %800 = vst [vmem:[%s2047_s4 + $0x1d8] sm:$0xff] %v1920_v17  ;;  %v1926_v6 = vpop.f32.mrb[27].mxu1 }
 0x12f   :  { %v840_v36 = vadd.f32 %v839_v62, %v1734_v51  ;;  %v972_v60 = vadd.f32 %v971_v45, %v909_v35  ;;  %v911_v51 = vmul.f32 %v1752_v63, %v1752_v63  ;;  %798 = vst [vmem:[%s2047_s4 + $0x1c8] sm:$0xff] %v1926_v6 }
 0x130   :  { %v1943_v37 = vpop.f32.mrb[28].mxu1 }
 0x131   :  { %v973_v42 = vadd.f32 %v972_v60, %v910_v41  ;;  %v841_v40 = vadd.f32 %v840_v36, %v1752_v63  ;;  %v914_v63 = vmul.f32 %v1770_v20, %v1770_v20  ;;  %803 = vst [vmem:[%s2047_s4 + $0x1f0] sm:$0xff] %v1943_v37  ;;  %v1949_v4 = vpop.f32.mrb[29].mxu1 }
 0x132   :  { %801 = vst [vmem:[%s2047_s4 + $0x1e0] sm:$0xff] %v1949_v4 }
 0x133   :  { %v842_v61 = vadd.f32 %v1725_v26, %v841_v40  ;;  %v974_v8 = vadd.f32 %v973_v42, %v911_v51  ;;  %v927_v42 = vmul.f32 %v1890_v30, %v1890_v30 }
 0x135   :  { %v975_v46 = vadd.f32 %v974_v8, %v912_v43  ;;  %v843_v48 = vadd.f32 %v1743_v58, %v842_v61  ;;  %v1956_v58 = vpop.f32.mrb[30].mxu1 }
 0x136   :  { %804 = vst [vmem:[%s2047_s4 + $0x1f8] sm:$0xff] %v1956_v58  ;;  %v1962_v54 = vpop.f32.mrb[31].mxu1 }
 0x137   :  { %v844_v26 = vadd.f32 %v843_v48, %v1770_v20  ;;  %v976_v52 = vadd.f32 %v975_v46, %v913_v44  ;;  %v915_v20 = vmul.f32 %v1788_v25, %v1788_v25  ;;  %802 = vst [vmem:[%s2047_s4 + $0x1e8] sm:$0xff] %v1962_v54  ;;  %v931_v48 = vmul.f32 %v1926_v6, %v1926_v6 }
 0x139   :  { %v977_v57 = vadd.f32 %v976_v52, %v914_v63  ;;  %v845_v59 = vadd.f32 %v844_v26, %v1788_v25  ;;  %v918_v25 = vmul.f32 %v1806_v47, %v1806_v47 }
 0x13b   :  { %v846_v2 = vadd.f32 %v1761_v18, %v845_v59  ;;  %v978_v9 = vadd.f32 %v977_v57, %v915_v20  ;;  %v920_v18 = vmul.f32 %v1797_v16, %v1797_v16 }
 0x13d   :  { %v979_v55 = vadd.f32 %v978_v9, %v916_v0  ;;  %v847_v13 = vadd.f32 %v1779_v12, %v846_v2  ;;  %v921_v12 = vmul.f32 %v1815_v5, %v1815_v5  ;;  %v935_v2 = vmul.f32 %v1962_v54, %v1962_v54 }
 0x13f   :  { %v848_v14 = vadd.f32 %v847_v13, %v1806_v47  ;;  %v980_v15 = vadd.f32 %v979_v55, %v917_v10  ;;  %v922_v47 = vmul.f32 %v1842_v53, %v1842_v53 }
 0x141   :  { %v981_v19 = vadd.f32 %v980_v15, %v918_v25  ;;  %v849_v21 = vadd.f32 %v848_v14, %v1824_v39 }
 0x143   :  { %v850_v23 = vadd.f32 %v1797_v16, %v849_v21  ;;  %v982_v27 = vadd.f32 %v981_v19, %v919_v22  ;;  %v924_v16 = vmul.f32 %v1833_v50, %v1833_v50 }
 0x145   :  { %v983_v28 = vadd.f32 %v982_v27, %v920_v18  ;;  %v851_v31 = vadd.f32 %v1815_v5, %v850_v23  ;;  %v925_v5 = vmul.f32 %v1851_v1, %v1851_v1 }
 0x147   :  { %v852_v32 = vadd.f32 %v851_v31, %v1842_v53  ;;  %v984_v3 = vadd.f32 %v983_v28, %v921_v12  ;;  %v926_v53 = vmul.f32 %v1877_v24, %v1877_v24 }
 0x149   :  { %v985_v33 = vadd.f32 %v984_v3, %v922_v47  ;;  %v853_v39 = vadd.f32 %v852_v32, %v1860_v7 }
 0x14b   :  { %v854_v34 = vadd.f32 %v1833_v50, %v853_v39  ;;  %v986_v35 = vadd.f32 %v985_v33, %v923_v11  ;;  %v928_v50 = vmul.f32 %v1871_v56, %v1871_v56 }
 0x14d   :  { %v987_v45 = vadd.f32 %v986_v35, %v924_v16  ;;  %v855_v62 = vadd.f32 %v1851_v1, %v854_v34  ;;  %v929_v1 = vmul.f32 %v1884_v29, %v1884_v29 }
 0x14f   :  { %v856_v41 = vadd.f32 %v855_v62, %v1877_v24  ;;  %v988_v36 = vadd.f32 %v987_v45, %v925_v5  ;;  %v930_v24 = vmul.f32 %v1913_v38, %v1913_v38 }
 0x151   :  { %v989_v60 = vadd.f32 %v988_v36, %v926_v53  ;;  %v857_v7 = vadd.f32 %v856_v41, %v1890_v30 }
 0x153   :  { %v858_v40 = vadd.f32 %v1871_v56, %v857_v7  ;;  %v990_v51 = vadd.f32 %v989_v60, %v927_v42  ;;  %v932_v56 = vmul.f32 %v1907_v49, %v1907_v49 }
 0x155   :  { %v991_v43 = vadd.f32 %v990_v51, %v928_v50  ;;  %v859_v61 = vadd.f32 %v1884_v29, %v858_v40  ;;  %v933_v29 = vmul.f32 %v1920_v17, %v1920_v17 }
 0x157   :  { %v860_v8 = vadd.f32 %v859_v61, %v1913_v38  ;;  %v992_v44 = vadd.f32 %v991_v43, %v929_v1  ;;  %v934_v38 = vmul.f32 %v1949_v4, %v1949_v4 }
 0x159   :  { %v993_v46 = vadd.f32 %v992_v44, %v930_v24  ;;  %v861_v30 = vadd.f32 %v860_v8, %v1926_v6 }
 0x15b   :  { %v862_v63 = vadd.f32 %v1907_v49, %v861_v30  ;;  %v994_v26 = vadd.f32 %v993_v46, %v931_v48  ;;  %v936_v49 = vmul.f32 %v1943_v37, %v1943_v37 }
 0x15d   :  { %v995_v52 = vadd.f32 %v994_v26, %v932_v56  ;;  %v863_v57 = vadd.f32 %v1920_v17, %v862_v63  ;;  %v937_v17 = vmul.f32 %v1956_v58, %v1956_v58 }
 0x15f   :  { %v864_v59 = vadd.f32 %v863_v57, %v1949_v4  ;;  %v996_v20 = vadd.f32 %v995_v52, %v933_v29 }
 0x161   :  { %v997_v0 = vadd.f32 %v996_v20, %v934_v38  ;;  %v865_v6 = vadd.f32 %v864_v59, %v1962_v54 }
 0x163   :  { %v866_v9 = vadd.f32 %v1943_v37, %v865_v6  ;;  %v998_v10 = vadd.f32 %v997_v0, %v935_v2 }
 0x165   :  { %v867_v55 = vadd.f32 %v1956_v58, %v866_v9  ;;  %v999_v13 = vadd.f32 %v998_v10, %v936_v49 }
 0x167   :  { %v868_v4 = vrot.slane %v867_v55, 4  ;;  %v1000_v25 = vadd.f32 %v999_v13, %v937_v17 }
 0x169   :  { %v869_v14 = vadd.f32 %v868_v4, %v867_v55  ;;  %v1001_v15 = vrot.slane %v1000_v25, 4 }
 0x16b   :  { %v870_v19 = vrot.slane %v869_v14, 2  ;;  %v1002_v21 = vadd.f32 %v1001_v15, %v1000_v25 }
 0x16d   :  { %v871_v22 = vadd.f32 %v870_v19, %v869_v14  ;;  %v1003_v54 = vrot.slane %v1002_v21, 2 }
 0x16f   :  { %v872_v18 = vrot.slane %v871_v22, 1  ;;  %v1004_v23 = vadd.f32 %v1003_v54, %v1002_v21 }
 0x171   :  { %v873_v27 = vadd.f32 %v872_v18, %v871_v22  ;;  %v1005_v12 = vrot.slane %v1004_v23, 1 }
 0x173   :  { %v1006_v37 = vadd.f32 %v1005_v12, %v1004_v23  ;;  %1007 = vst [vmem:[%s2048_s5] sm:$0xff] %v873_v27 }
 0x175   :  { %1008 = vst [vmem:[%s2049_s6] sm:$0xff] %v1006_v37 }

</bundles_post_ra>
